<compile_context>
chip_gen: v5e
topology: v5e:2x2
jax: 0.10.0
libtpu: 0.0.40
codegen_flags: <defaults>
</compile_context>

<pallas_src>
import jax
import jax.numpy as jnp
from jax import lax
from jax.experimental import pallas as pl
from jax.experimental.pallas import tpu as pltpu


def _round_up(v, m):
    return (v + m - 1) // m * m


def _pairwise_score_kernel(x_ref, sij_ref, w1_ref, b1_ref, w2_ref, b2_ref,
                           w3_ref, o_ref):
    # Layer 1: [tm, Ep]bf16 @ [Ep, Hp]bf16 -> f32 (MXU); bias + ReLU in f32 (VPU).
    h1 = jnp.dot(x_ref[...], w1_ref[...], preferred_element_type=jnp.float32)
    h1 = jnp.maximum(h1 + b1_ref[...], 0.0)
    # Layer 2: [tm, Hp]bf16 @ [Hp, Hp]bf16 -> f32 (MXU); bias + ReLU in f32 (VPU).
    h2 = jnp.dot(h1.astype(jnp.bfloat16), w2_ref[...],
                 preferred_element_type=jnp.float32)
    h2 = jnp.maximum(h2 + b2_ref[...], 0.0)
    # Layer 3 on the MXU: [1, Hp] x [tm, Hp] contracted over Hp -> [1, tm] f32.
    # Produces the lane-dense output row directly (no XLU reduce / transpose).
    s3 = lax.dot_general(w3_ref[...], h2.astype(jnp.bfloat16),
                         dimension_numbers=(((1,), (1,)), ((), ())),
                         preferred_element_type=jnp.float32)
    # Fuse coref = s_ij + (s_i + s_j + b3)  (pre-summed slab from the wrapper).
    o_ref[...] = s3 + sij_ref[...]


def pairwise_score_forward(pairs, s_i, s_j, packed_params, *, tm=512):
    """coref pair scores: s_i + s_j + Score(pairs).  Returns [N, 1] float32.

    pairs: [N, gij_dim] float pair features  (i_g ++ j_g ++ i_g*j_g ++ phi)
    s_i, s_j: [N] float mention scores gathered for each pair
    packed_params: output of pack_score_params()
    """
    w1, b1, w2, b2, w3, b3 = packed_params
    n, e = pairs.shape
    ep, hp = w1.shape
    assert e <= ep

    # Don't over-tile tiny inputs; keep tm a multiple of 128 (lane-dense rows).
    tm = min(tm, max(128, _round_up(n, 128)))
    assert tm % 128 == 0, "tm must be a multiple of 128"

    grid_m = pl.cdiv(n, tm)
    n_pad = grid_m * tm
    pad_rows = n_pad - n
    pad_cols = ep - e

    # Cast to bf16 *before* padding so the wrapper never materializes a padded
    # f32 slab (in production the cast fuses into the feature-concat producer).
    x = pairs.astype(jnp.bfloat16)
    if pad_rows or pad_cols:
        x = jnp.pad(x, ((0, pad_rows), (0, pad_cols)))          # zero pad: exact

    # Single pre-summed slab: s_i + s_j + b3  (one tiny DMA per grid step).
    sij = s_i.astype(jnp.float32) + s_j.astype(jnp.float32) + b3
    if pad_rows:
        sij = jnp.pad(sij, (0, pad_rows))
    sij_row = sij.reshape(1, n_pad)

    out_row = pl.pallas_call(
        _pairwise_score_kernel,
        out_shape=jax.ShapeDtypeStruct((1, n_pad), jnp.float32),
        grid=(grid_m,),
        in_specs=[
            pl.BlockSpec((tm, ep), lambda i: (i, 0)),    # pair-feature tile (bf16)
            pl.BlockSpec((1, tm), lambda i: (0, i)),     # s_i + s_j + b3 lane slab
            # Constant index maps: weights/biases are fetched once and stay
            # VMEM-resident across all grid steps (~0.5 MiB total).
            pl.BlockSpec((ep, hp), lambda i: (0, 0)),    # W1 (bf16)
            pl.BlockSpec((1, hp), lambda i: (0, 0)),     # b1 (f32)
            pl.BlockSpec((hp, hp), lambda i: (0, 0)),    # W2 (bf16)
            pl.BlockSpec((1, hp), lambda i: (0, 0)),     # b2 (f32)
            pl.BlockSpec((1, hp), lambda i: (0, 0)),     # w3 lane row (bf16)
        ],
        out_specs=pl.BlockSpec((1, tm), lambda i: (0, i)),  # lane-dense score row
        compiler_params=pltpu.CompilerParams(
            dimension_semantics=("parallel",),   # independent tiles; both v7x TCs
        ),
    )(x, sij_row, w1, b1, w2, b2, w3)

    return out_row.reshape(-1)[:n].reshape(n, 1)


def init_score_params(key, embeds_dim, hidden_dim=150):
    """Synthetic nn.Linear-shaped params; weights stored [in, out] (torch W.T)."""
    k1, k2, k3, k4, k5, k6 = jax.random.split(key, 6)
    s1 = 1.0 / jnp.sqrt(embeds_dim)
    s2 = 1.0 / jnp.sqrt(hidden_dim)
    w1 = jax.random.uniform(k1, (embeds_dim, hidden_dim), jnp.float32, -s1, s1)
    b1 = jax.random.uniform(k2, (hidden_dim,), jnp.float32, -s1, s1)
    w2 = jax.random.uniform(k3, (hidden_dim, hidden_dim), jnp.float32, -s2, s2)
    b2 = jax.random.uniform(k4, (hidden_dim,), jnp.float32, -s2, s2)
    w3 = jax.random.uniform(k5, (hidden_dim, 1), jnp.float32, -s2, s2)
    b3 = jax.random.uniform(k6, (1,), jnp.float32, -s2, s2)
    return (w1, b1, w2, b2, w3, b3)


def pack_score_params(params, feature_pad=None, hidden_pad=None):
    """One-time repack for the kernel: pad feature dim E and hidden dim H to
    multiples of 128, cast MXU operands to bf16, lay biases out as [1, Hp] rows.
    Zero padding is exact: padded W1 rows multiply padded zero x columns, padded
    h1/h2 columns are ReLU(0+0)=0, and padded w3 entries are 0."""
    w1, b1, w2, b2, w3, b3 = params
    e, h = w1.shape
    ep = feature_pad if feature_pad is not None else _round_up(e, 128)
    hp = hidden_pad if hidden_pad is not None else _round_up(h, 128)
    pe, ph = ep - e, hp - h
    w1p = jnp.pad(w1, ((0, pe), (0, ph))).astype(jnp.bfloat16)          # [Ep, Hp]
    b1p = jnp.pad(b1.reshape(1, h), ((0, 0), (0, ph))).astype(jnp.float32)
    w2p = jnp.pad(w2, ((0, ph), (0, ph))).astype(jnp.bfloat16)          # [Hp, Hp]
    b2p = jnp.pad(b2.reshape(1, h), ((0, 0), (0, ph))).astype(jnp.float32)
    w3p = jnp.pad(w3.reshape(1, h), ((0, 0), (0, ph))).astype(jnp.bfloat16)  # [1, Hp]
    b3s = b3.reshape(()).astype(jnp.float32)                            # scalar
    return (w1p, b1p, w2p, b2p, w3p, b3s)


def coref_scores_reference(pairs, s_i, s_j, params):
    """Plain-JAX f32 reference of the same forward (dropout = identity)."""
    w1, b1, w2, b2, w3, b3 = params
    h1 = jnp.maximum(pairs @ w1 + b1, 0.0)
    h2 = jnp.maximum(h1 @ w2 + b2, 0.0)
    s_ij = h2 @ w3 + b3
    return s_ij + s_i[:, None] + s_j[:, None]


if __name__ == "__main__":
    key = jax.random.PRNGKey(0)
    ks = jax.random.split(key, 12)

    # Small shapes consistent with PairwiseScore: gij_dim = 3*g + dist + genre + spk.
    n_spans, g_dim = 64, 64
    distance_dim = genre_dim = speaker_dim = 20
    gij_dim = 3 * g_dim + distance_dim + genre_dim + speaker_dim   # 252
    hidden = 150
    n_pairs = 1024            # mention/antecedent pairs -> grid of 2 steps at tm=512
    tm = 512

    # Stand-ins for upstream encoder outputs.
    g_i = jax.random.normal(ks[0], (n_spans, g_dim), jnp.float32)
    mention_scores = jax.random.normal(ks[1], (n_spans,), jnp.float32)

    # Pair bookkeeping (i.id, j.id, i.i2 - j.i1, genre, speaker) as integer ids.
    mention_ids = jax.random.randint(ks[2], (n_pairs,), 0, n_spans)
    antecedent_ids = jax.random.randint(ks[3], (n_pairs,), 0, n_spans)
    distances = jax.random.randint(ks[4], (n_pairs,), 0, 100)
    genre_ids = jax.random.randint(ks[5], (n_pairs,), 0, 8)     # 7 genres + unk(0)
    speaker_ids = jax.random.randint(ks[6], (n_pairs,), 0, 3)

    # Distance / Genre / Speaker embedding tables (Dropout = identity at inference).
    dist_table = 0.1 * jax.random.normal(ks[7], (9, distance_dim), jnp.float32)
    genre_table = 0.1 * jax.random.normal(ks[8], (8, genre_dim), jnp.float32)
    genre_table = genre_table.at[0].set(0.0)      # padding_idx=0
    speaker_table = 0.1 * jax.random.normal(ks[9], (3, speaker_dim), jnp.float32)
    speaker_table = speaker_table.at[0].set(0.0)  # padding_idx=0

    # Distance.stoi: bin index = sum(d >= bin) over bins [1,2,3,4,8,16,32,64].
    bins = jnp.array([1, 2, 3, 4, 8, 16, 32, 64], jnp.int32)
    dist_bin = jnp.sum(distances[:, None] >= bins[None, :], axis=1)

    # phi = cat(distance_emb, genre_emb, speaker_emb); pairs = cat(i_g, j_g, i_g*j_g, phi)
    phi = jnp.concatenate([dist_table[dist_bin],
                           genre_table[genre_ids],
                           speaker_table[speaker_ids]], axis=1)
    i_g = g_i[mention_ids]
    j_g = g_i[antecedent_ids]
    pairs = jnp.concatenate([i_g, j_g, i_g * j_g, phi], axis=1)   # [n_pairs, gij_dim]
    s_i = mention_scores[mention_ids]
    s_j = mention_scores[antecedent_ids]

    raw_params = init_score_params(ks[10], gij_dim, hidden)
    packed_params = pack_score_params(raw_params)

    out = pairwise_score_forward(pairs, s_i, s_j, packed_params, tm=tm)
    out = jax.block_until_ready(out)

    ref = coref_scores_reference(pairs, s_i, s_j, raw_params)
    assert out.shape == (n_pairs, 1), out.shape
    # bf16 matmul inputs with f32 accumulation -> loosened tolerance vs f32 reference.
    assert jnp.allclose(out, ref, atol=5e-2, rtol=5e-2), "mismatch vs reference"

    print("KERNEL_OK")
</pallas_src>

<mosaic_0001>
module attributes {stable_mosaic.version = 11 : i64} {
  func.func @_pairwise_score_kernel(%arg0: i32, %arg1: memref<512x256xbf16, #tpu.memory_space<vmem>>, %arg2: memref<1x512xf32, #tpu.memory_space<vmem>>, %arg3: memref<256x256xbf16, #tpu.memory_space<vmem>>, %arg4: memref<1x256xf32, #tpu.memory_space<vmem>>, %arg5: memref<256x256xbf16, #tpu.memory_space<vmem>>, %arg6: memref<1x256xf32, #tpu.memory_space<vmem>>, %arg7: memref<1x256xbf16, #tpu.memory_space<vmem>>, %arg8: memref<1x512xf32, #tpu.memory_space<vmem>>) attributes {dimension_semantics = [#tpu.dimension_semantics<parallel>], iteration_bounds = array<i64: 2>, scalar_prefetch = 0 : i64, scratch_operands = 0 : i64, tpu.core_type = #tpu.core_type<tc>, window_params = [{transform_indices = @transform_0, window_bounds = array<i64: 512, 256>}, {transform_indices = @transform_1, window_bounds = array<i64: 1, 512>}, {pipeline_mode = #tpu.pipeline_mode<synchronous>, transform_indices = @transform_2, window_bounds = array<i64: 256, 256>}, {pipeline_mode = #tpu.pipeline_mode<synchronous>, transform_indices = @transform_3, window_bounds = array<i64: 1, 256>}, {pipeline_mode = #tpu.pipeline_mode<synchronous>, transform_indices = @transform_4, window_bounds = array<i64: 256, 256>}, {pipeline_mode = #tpu.pipeline_mode<synchronous>, transform_indices = @transform_5, window_bounds = array<i64: 1, 256>}, {pipeline_mode = #tpu.pipeline_mode<synchronous>, transform_indices = @transform_6, window_bounds = array<i64: 1, 256>}, {transform_indices = @transform_7, window_bounds = array<i64: 1, 512>}]} {
    %c0 = arith.constant 0 : index
    %c0_0 = arith.constant 0 : index
    %0 = vector.load %arg1[%c0, %c0_0] : memref<512x256xbf16, #tpu.memory_space<vmem>>, vector<512x256xbf16>
    %c0_1 = arith.constant 0 : index
    %c0_2 = arith.constant 0 : index
    %1 = vector.load %arg3[%c0_1, %c0_2] : memref<256x256xbf16, #tpu.memory_space<vmem>>, vector<256x256xbf16>
    %cst = arith.constant dense<0.000000e+00> : vector<512x256xf32>
    %2 = tpu.matmul %0, %1, %cst {dimension_numbers = #tpu.dot_dimension_numbers<[1], [0], [0], [1], [0, 0, 1, 1], [], []>} : vector<512x256xbf16>, vector<256x256xbf16>, vector<512x256xf32> -> vector<512x256xf32>
    %c0_3 = arith.constant 0 : index
    %c0_4 = arith.constant 0 : index
    %3 = vector.load %arg4[%c0_3, %c0_4] : memref<1x256xf32, #tpu.memory_space<vmem>>, vector<1x256xf32>
    %4 = vector.broadcast %3 : vector<1x256xf32> to vector<512x256xf32>
    %5 = arith.addf %2, %4 : vector<512x256xf32>
    %cst_5 = arith.constant 0.000000e+00 : f32
    %6 = vector.broadcast %cst_5 : f32 to vector<512x256xf32>
    %7 = arith.maximumf %5, %6 : vector<512x256xf32>
    %8 = arith.truncf %7 : vector<512x256xf32> to vector<512x256xbf16>
    %c0_6 = arith.constant 0 : index
    %c0_7 = arith.constant 0 : index
    %9 = vector.load %arg5[%c0_6, %c0_7] : memref<256x256xbf16, #tpu.memory_space<vmem>>, vector<256x256xbf16>
    %cst_8 = arith.constant dense<0.000000e+00> : vector<512x256xf32>
    %10 = tpu.matmul %8, %9, %cst_8 {dimension_numbers = #tpu.dot_dimension_numbers<[1], [0], [0], [1], [0, 0, 1, 1], [], []>} : vector<512x256xbf16>, vector<256x256xbf16>, vector<512x256xf32> -> vector<512x256xf32>
    %c0_9 = arith.constant 0 : index
    %c0_10 = arith.constant 0 : index
    %11 = vector.load %arg6[%c0_9, %c0_10] : memref<1x256xf32, #tpu.memory_space<vmem>>, vector<1x256xf32>
    %12 = vector.broadcast %11 : vector<1x256xf32> to vector<512x256xf32>
    %13 = arith.addf %10, %12 : vector<512x256xf32>
    %cst_11 = arith.constant 0.000000e+00 : f32
    %14 = vector.broadcast %cst_11 : f32 to vector<512x256xf32>
    %15 = arith.maximumf %13, %14 : vector<512x256xf32>
    %c0_12 = arith.constant 0 : index
    %c0_13 = arith.constant 0 : index
    %16 = vector.load %arg7[%c0_12, %c0_13] : memref<1x256xbf16, #tpu.memory_space<vmem>>, vector<1x256xbf16>
    %17 = arith.truncf %15 : vector<512x256xf32> to vector<512x256xbf16>
    %cst_14 = arith.constant dense<0.000000e+00> : vector<1x512xf32>
    %18 = tpu.matmul %16, %17, %cst_14 {dimension_numbers = #tpu.dot_dimension_numbers<[1], [1], [0], [0], [0, 0, 1, 0], [], []>} : vector<1x256xbf16>, vector<512x256xbf16>, vector<1x512xf32> -> vector<1x512xf32>
    %c0_15 = arith.constant 0 : index
    %c0_16 = arith.constant 0 : index
    %19 = vector.load %arg2[%c0_15, %c0_16] : memref<1x512xf32, #tpu.memory_space<vmem>>, vector<1x512xf32>
    %20 = arith.addf %18, %19 : vector<1x512xf32>
    %c0_17 = arith.constant 0 : index
    %c0_18 = arith.constant 0 : index
    %21 = vector.load %arg8[%c0_17, %c0_18] : memref<1x512xf32, #tpu.memory_space<vmem>>, vector<1x512xf32>
    tpu.vector_store %arg8[%c0_17, %c0_18], %20 {strides = array<i32>} : memref<1x512xf32, #tpu.memory_space<vmem>>, vector<1x512xf32>,
    return
  }
  func.func @transform_0(%arg0: i32) -> (i32, i32) {
    %c0_i32 = arith.constant 0 : i32
    %c0_i32_0 = arith.constant 0 : i32
    return %arg0, %c0_i32 : i32, i32
  }
  func.func @transform_1(%arg0: i32) -> (i32, i32) {
    %c0_i32 = arith.constant 0 : i32
    %c0_i32_0 = arith.constant 0 : i32
    return %c0_i32, %arg0 : i32, i32
  }
  func.func @transform_2(%arg0: i32) -> (i32, i32) {
    %c0_i32 = arith.constant 0 : i32
    %c0_i32_0 = arith.constant 0 : i32
    %c0_i32_1 = arith.constant 0 : i32
    return %c0_i32, %c0_i32_0 : i32, i32
  }
  func.func @transform_3(%arg0: i32) -> (i32, i32) {
    %c0_i32 = arith.constant 0 : i32
    %c0_i32_0 = arith.constant 0 : i32
    %c0_i32_1 = arith.constant 0 : i32
    return %c0_i32, %c0_i32_0 : i32, i32
  }
  func.func @transform_4(%arg0: i32) -> (i32, i32) {
    %c0_i32 = arith.constant 0 : i32
    %c0_i32_0 = arith.constant 0 : i32
    %c0_i32_1 = arith.constant 0 : i32
    return %c0_i32, %c0_i32_0 : i32, i32
  }
  func.func @transform_5(%arg0: i32) -> (i32, i32) {
    %c0_i32 = arith.constant 0 : i32
    %c0_i32_0 = arith.constant 0 : i32
    %c0_i32_1 = arith.constant 0 : i32
    return %c0_i32, %c0_i32_0 : i32, i32
  }
  func.func @transform_6(%arg0: i32) -> (i32, i32) {
    %c0_i32 = arith.constant 0 : i32
    %c0_i32_0 = arith.constant 0 : i32
    %c0_i32_1 = arith.constant 0 : i32
    return %c0_i32, %c0_i32_0 : i32, i32
  }
  func.func @transform_7(%arg0: i32) -> (i32, i32) {
    %c0_i32 = arith.constant 0 : i32
    %c0_i32_0 = arith.constant 0 : i32
    return %c0_i32, %arg0 : i32, i32
  }
}

</mosaic_0001>

<bundles_post_ra>
// kernel: tpu_custom_call.1
= control target key start
LH: loop header
LB: loop body
LE: loop exit
PB: predicated region body
PF: predicated region fallthrough
CT: control target
= control target key end

     0   :  { %s5257_s0 = inlined_call_operand.hbm [shape: bf16[1024,256], index: 0, kind: input, shape index: {}]   ;;  %s5258_s1 = inlined_call_operand.hbm [shape: f32[1,1024], index: 1, kind: input, shape index: {}]   ;;  %s5259_s2 = inlined_call_operand.hbm [shape: bf16[256,256], index: 2, kind: input, shape index: {}]   ;;  %s5260_s3 = inlined_call_operand.vmem [shape: f32[1,256], index: 3, kind: input, shape index: {}]   ;;  %s5261_s4 = inlined_call_operand.hbm [shape: bf16[256,256], index: 4, kind: input, shape index: {}]   ;;  %s5262_s5 = inlined_call_operand.vmem [shape: f32[1,256], index: 5, kind: input, shape index: {}]   ;;  %s5263_s6 = inlined_call_operand.hbm [shape: bf16[1,256], index: 6, kind: input, shape index: {}]   ;;  %s5264_s7 = inlined_call_operand.hbm [shape: f32[1,1024], index: 7, kind: output, shape index: {}]  }
   0x1   :  { %5287 = sst [smem:[#allocation37_spill]] %s5259_s2 }
   0x2   :  { %5288 = sst [smem:[#allocation38_spill]] %s5261_s4 }
   0x3   :  { %5289 = sst [smem:[#allocation39_spill]] %s5263_s6 }
   0x4   :  { %12 = vsyncpa [#allocation3], 0 }
   0x5   :  { %14 = vsyncpa [#allocation3 + $0x1], 0 }
   0x6   :  { %15 = vsyncpa [#allocation6], 0 }
   0x7   :  { %17 = vsyncpa [#allocation6 + $0x1], 0 }
   0x8   :  { %18 = vsyncpa [#allocation9], 0 }
   0x9   :  { %19 = vsyncpa [#allocation4], 0 }
   0xa   :  { %21 = vsyncpa [#allocation4 + $0x1], 0  ;;  %s4206_s24 = smov 0   ;;  %s4208_s25 = smov 0  }
   0xb   :  { %s4210_s26 = smov 0   ;;  %s4212_s27 = smov 0  }
   0xc LB: > { %5290 = sst [smem:[#allocation17_spill]] %s4155_s26  ;;  %s4227_s28 = sadd.s32 4294967295, %s4159_s27   ;;  %s4159_s27 = sphi %s4212_s27, %s5339_s27   ;;  %s4155_s26 = sphi %s4210_s26, %s5341_s26   ;;  %s4151_s25 = sphi %s4208_s25, %s5343_s25   ;;  %s4147_s24 = sphi %s4206_s24, %s5342_s24  }
   0xd   : > { %s3182_s29 = sadd.s32 4294967294, %s4159_s27   ;;  %p47_p0 = scmp.ne.s32.totalorder %s4151_s25, %s4147_s24 }
   0xe   : > { %p48_p1 = scmp.eq.s32.totalorder %s4227_s28, 0  ;;  %p202_p2 = scmp.eq.s32.totalorder %s4227_s28, 1 }
   0xf   : > { %p208_p3 = scmp.eq.s32.totalorder %s3182_s29, 1  ;;  %p3183_p5 = scmp.ge.s32.totalorder %s4159_s27, 1 }
  0x10   : > { %p4236_p4 = por %p48_p1, %p47_p0  ;;  %p215_p7 = scmp.lt.s32.totalorder %s4159_s27, 3 }
  0x11   : > { %p4241_p6 = por %p208_p3, %p47_p0  ;;  %s5293_s2 = sld [smem:[#allocation37_spill]] }
  0x12   : > { %p4249_p8 = pnand %p3183_p5, %p215_p7  ;;  %s4161_s13 = smov [#allocation7]  }
  0x13   : > { %s228_s14 = sshll.u32 %s4161_s13, 4  ;;  %s5296_s4 = sld [smem:[#allocation38_spill]]  ;;  %s229_s14 = int_to_ptr.vmem [resolvable:$true] %s228_s14 }
  0x14   : > { %p3865_p9 = pneg %p4249_p8  ;;  %s5265_s19 = smov 128  }
  0x15   : > { %s5266_s20 = smov 8   ;;  %s4164_s21 = smov [#allocation8]  }
  0x16   : > { %p4257_p10 = pnand %p3865_p9, %p48_p1  ;;  %s245_s22 = sshll.u32 %s4164_s21, 4  ;;  %s246_s22 = int_to_ptr.vmem [resolvable:$true] %s245_s22 }
  0x17   : > { %s226_s11 = sshll.u32 %s5293_s2, 4  ;;  %s5297_s6 = sld [smem:[#allocation39_spill]]  ;;  %s227_s11 = int_to_ptr.hbm [resolvable:$true] %s226_s11 }
  0x18   : > { %3868 = dma.hbm_to_vmem [thread:$0]  (!%p4257_p10), %s227_s11, 4096, %s229_s14, [#allocation6], %s5265_s19, %s5265_s19, %s5266_s20  }
  0x19   : > { %s243_s18 = sshll.u32 %s5296_s4, 4  ;;  %s4165_s10 = smov [#allocation10]   ;;  %s244_s18 = int_to_ptr.hbm [resolvable:$true] %s243_s18 }
  0x1a   : > { %3871 = dma.hbm_to_vmem [thread:$0]  (!%p4257_p10), %s244_s18, 4096, %s246_s22, [#allocation9], %s5265_s19, %s5265_s19, %s5266_s20  }
  0x1b   : > { %s263_s11 = sshll.u32 %s4165_s10, 4  ;;  %s4279_s13 = sadd.s32 1, %s4159_s27   ;;  %s264_s11 = int_to_ptr.vmem [resolvable:$true] %s263_s11 }
  0x1c   : > { %5298 = sst [smem:[#allocation18_spill]] %s4279_s13  ;;  %s31_s14 = ssub.s32 %s4159_s27, %s4279_s13 }
  0x1d   : > { %s261_s9 = sshll.u32 %s5297_s6, 4  ;;  %s34_s16 = sadd.s32 1, %s4155_s26  ;;  %s262_s9 = int_to_ptr.hbm [resolvable:$true] %s261_s9 }
  0x1e   : > { %3874 = dma.hbm_to_vmem [thread:$0]  (!%p4257_p10), %s262_s9, 32, %s264_s11, [#allocation9]  }
  0x1f   : > { %p32_p12 = scmp.eq.s32.totalorder %s31_s14, 0  ;;  %p41_p13 = scmp.ne.s32.totalorder %s4155_s26, %s4151_s25 }
  0x20   : > { %p42_p0 = scmp.eq.s32.totalorder %s4159_s27, 0  ;;  %p3889_p3 = scmp.lt.s32.totalorder %s4159_s27, 2 }
  0x21   : > { %s4291_s17 = scalar_select %p32_p12, %s4155_s26, %s34_s16  }
  0x22   : > { %p43_p5 = por %p42_p0, %p41_p13  ;;  %p4295_p7 = por %p202_p2, %p41_p13 }
  0x23   : > { %5299 = sst [smem:[#allocation19_spill]] %s4291_s17  ;;  %s4300_s21 = sand.u32 1, %s4155_s26  }
  0x24   : > { %s3718_s15 = sshll.u32 %s4159_s27, 9  ;;  %s3188_s22 = sshll.u32 %s4300_s21, 9 }
  0x25   : > { %s284_s9 = scalar_lea.hbm %s5257_s0, %s3718_s15  ;;  %s278_s11 = scalar_lea.vmem [#allocation2], %s3188_s22 }
  0x26   : > { %s285_s10 = sshll.u32 %s284_s9, 4  ;;  %s287_s14 = sshll.u32 %s278_s11, 4  ;;  %s286_s10 = int_to_ptr.hbm [resolvable:$true] %s285_s10  ;;  %s288_s14 = int_to_ptr.vmem [resolvable:$true] %s287_s14 }
  0x27   : > { %p4309_p2 = pnand %p3889_p3, %p43_p5  ;;  %s297_s19 = sand.u32 1, %s4159_s27  }
  0x28   : > { %s3192_s20 = sshll.u32 %s4300_s21, 2  ;;  %s275_s2 = scalar_lea.sflag [#allocation3], %s4300_s21 }
  0x29   : > { %s4021_s4 = sshra.s32 %s286_s10, 4  ;;  %p4025_p10 = pneg %p4309_p2  ;;  %s4022_s4 = int_to_ptr.hbm [resolvable:$true] %s4021_s4 }
  0x2a   : > { %s4023_s6 = scalar_lea.hbm %s4022_s4, 512  ;;  %s4028_s23 = scalar_lea.hbm %s5257_s0, 1024 }
  0x2b   : > { %p4024_p9 = scmp.ne.s32.totalorder %s4022_s4, %s4023_s6  ;;  %p4029_p0 = scmp.lt.s32.totalorder %s4022_s4, %s5257_s0 }
  0x2c   : > { %p4030_p3 = scmp.lt.s32.totalorder %s4028_s23, %s4023_s6 }
  0x2d   : > { %p4026_p12 = pnand %p4025_p10, %p4024_p9 }
  0x2e   : > { %p4031_p5 = por %p4030_p3, %p4029_p0 }
  0x2f   : > { %p4027_p13 = pneg %p4026_p12 }
  0x31   : > { %p4032_p11 = pnand %p4031_p5, %p4027_p13 }
  0x33   : > { %4035 = shalt.err (!%p4032_p11)
}
  0x34   : > { %s5302_s21 = smov 8   ;;  %s5303_s11 = smov 128  }
  0x35   : > { %3878 = dma.hbm_to_vmem [thread:$0]  (!%p4309_p2), %s286_s10, 8192, %s288_s14, %s275_s2, %s5303_s11, %s5303_s11, %s5302_s21  }
  0x36   : > { %s3193_s17 = sshll.u32 %s4159_s27, 2  ;;  %s301_s26 = scalar_lea.vmem [#allocation5], %s3192_s20 }
  0x37   : > { %s309_s15 = sshll.u32 %s301_s26, 4  ;;  %s305_s29 = scalar_lea.hbm %s5258_s1, %s3193_s17  ;;  %s310_s15 = int_to_ptr.vmem [resolvable:$true] %s309_s15 }
  0x38   : > { %s307_s4 = sshll.u32 %s305_s29, 4  ;;  %s298_s6 = scalar_lea.sflag [#allocation6], %s297_s19  ;;  %s308_s4 = int_to_ptr.hbm [resolvable:$true] %s307_s4 }
  0x39   : > { %s4051_s23 = sshra.s32 %s308_s4, 4  ;;  %s4058_s26 = scalar_lea.hbm %s5258_s1, 8  ;;  %s4052_s23 = int_to_ptr.hbm [resolvable:$true] %s4051_s23 }
  0x3a   : > { %s4053_s9 = scalar_lea.hbm %s4052_s23, 4  ;;  %p4059_p13 = scmp.lt.s32.totalorder %s4052_s23, %s5258_s1 }
  0x3b   : > { %p4054_p11 = scmp.ne.s32.totalorder %s4052_s23, %s4053_s9  ;;  %p4060_p0 = scmp.lt.s32.totalorder %s4058_s26, %s4053_s9 }
  0x3d   : > { %p4056_p9 = pnand %p4054_p11, %p4025_p10  ;;  %p4061_p3 = por %p4060_p0, %p4059_p13 }
  0x3f   : > { %p4057_p12 = pneg %p4056_p9 }
  0x41   : > { %p4062_p5 = pnand %p4061_p3, %p4057_p12 }
  0x43   : > { %4065 = shalt.err (!%p4062_p5)
}
  0x44   : > { %3881 = dma.hbm_to_vmem [thread:$0]  (!%p4309_p2), %s308_s4, 64, %s310_s15, %s298_s6  }
  0x45   : > { %318 = sbr.rel (%p4249_p8) target bundleno = 1482 (0x5ca), region = 48 }
  0x4a   : > { %s4350_s19 = sand.u32 1, %s4151_s25  }
  0x4b   : > { %s3195_s13 = sshll.u32 %s4350_s19, 9  ;;  %s321_s17 = scalar_lea.sflag [#allocation3], %s4350_s19 }
  0x4c   : > { %s4354_s21 = scalar_lea.vmem [#allocation2], %s3195_s13 }
  0x4d   : > { %4126 = dma.done.wait (%p4236_p4), %s321_s17, 8192  }
  0x4e   : > { %4128 = vsyncadd (%p4236_p4), %s321_s17, 4294959104  ;;  %s330_s12 = sand.u32 1, %s4227_s28   ;;  %s3196_s16 = sshll.u32 %s4350_s19, 2 }
  0x4f   : > { %s331_s11 = scalar_lea.sflag [#allocation6], %s330_s12  ;;  %s4364_s15 = scalar_lea.vmem [#allocation5], %s3196_s16 }
  0x50   : > { %4130 = dma.done.wait (%p4236_p4), %s331_s11, 64  }
  0x51   : > { %4132 = vsyncadd (%p4236_p4), %s331_s11, 4294967232 }
  0x52   : > { %4134 = dma.done.wait (%p48_p1), [#allocation6], 4096  }
  0x53   : > { %4136 = vsyncadd (%p48_p1), [#allocation6], 4294963200 }
  0x54   : > { %4138 = dma.done.wait (%p48_p1), [#allocation9], 4128  }
  0x55   : > { %4140 = vsyncadd (%p48_p1), [#allocation9], 4294963168  ;;  %v3515_v0 = vld [vmem:[#allocation7 + $0x70] sm:$0xf]  ;;  %v3798_v1 = vld [vmem:[#allocation7 + $0x74] sm:$0xf0] }
  0x56   : > { %v3579_v2 = vld [vmem:[#allocation7 + $0xf0] sm:$0xf]  ;;  %v3516_v3 = vor.u32 %v3798_v1, %v3515_v0  ;;  %v3814_v4 = vld [vmem:[#allocation7 + $0xf4] sm:$0xf0]  ;;  %v3797_v5 = vld [vmem:[#allocation7 + $0x74] sm:$0xf] }
  0x57   : > { %v3517_v6 = vld [vmem:[#allocation7 + $0x78] sm:$0xf0]  ;;  %v3580_v7 = vor.u32 %v3814_v4, %v3579_v2  ;;  %v3813_v9 = vld [vmem:[#allocation7 + $0xf4] sm:$0xf]  ;;  %v3507_v11 = vld [vmem:[#allocation7 + $0x60] sm:$0xf] }
  0x58   : > { %v3520_v8 = vor.u32 %v3797_v5, %v3517_v6  ;;  %v3581_v10 = vld [vmem:[#allocation7 + $0xf8] sm:$0xf0]  ;;  %971 = vmatpush.bf16.msra.mxu0 %v3516_v3  ;;  %v3796_v13 = vld [vmem:[#allocation7 + $0x64] sm:$0xf0]  ;;  %v3571_v14 = vld [vmem:[#allocation7 + $0xe0] sm:$0xf] }
  0x59   : > { %v3584_v12 = vor.u32 %v3813_v9, %v3581_v10  ;;  %v3812_v15 = vld [vmem:[#allocation7 + $0xe4] sm:$0xf0]  ;;  %1140 = vmatpush.bf16.msra.mxu1 %v3580_v7  ;;  %v3508_v16 = vor.u32 %v3796_v13, %v3507_v11  ;;  %v3795_v18 = vld [vmem:[#allocation7 + $0x64] sm:$0xf]  ;;  %v3509_v19 = vld [vmem:[#allocation7 + $0x68] sm:$0xf0] }
  0x5a   : > { %1309 = vmatpush.bf16.msra.mxu2 %v3520_v8  ;;  %v3572_v17 = vor.u32 %v3812_v15, %v3571_v14  ;;  %v3811_v20 = vld [vmem:[#allocation7 + $0xe4] sm:$0xf]  ;;  %v3512_v21 = vor.u32 %v3795_v18, %v3509_v19  ;;  %v3573_v22 = vld [vmem:[#allocation7 + $0xe8] sm:$0xf0]  ;;  %v3499_v23 = vld [vmem:[#allocation7 + $0x50] sm:$0xf] }
  0x5b   : > { %1478 = vmatpush.bf16.msra.mxu3 %v3584_v12  ;;  %v3794_v24 = vld [vmem:[#allocation7 + $0x54] sm:$0xf0]  ;;  %v3576_v25 = vor.u32 %v3811_v20, %v3573_v22  ;;  %v3563_v26 = vld [vmem:[#allocation7 + $0xd0] sm:$0xf]  ;;  %v3793_v28 = vld [vmem:[#allocation7 + $0x54] sm:$0xf] }
  0x5c   : > { %v3810_v27 = vld [vmem:[#allocation7 + $0xd4] sm:$0xf0]  ;;  %972 = vmatpush.bf16.msra.mxu0 %v3508_v16  ;;  %v3500_v29 = vor.u32 %v3794_v24, %v3499_v23  ;;  %v3501_v30 = vld [vmem:[#allocation7 + $0x58] sm:$0xf0]  ;;  %v3809_v31 = vld [vmem:[#allocation7 + $0xd4] sm:$0xf] }
  0x5d   : > { %v3565_v32 = vld [vmem:[#allocation7 + $0xd8] sm:$0xf0]  ;;  %1141 = vmatpush.bf16.msra.mxu1 %v3572_v17  ;;  %v3564_v33 = vor.u32 %v3810_v27, %v3563_v26  ;;  %v3504_v34 = vor.u32 %v3793_v28, %v3501_v30  ;;  %v3491_v35 = vld [vmem:[#allocation7 + $0x40] sm:$0xf]  ;;  %v3792_v36 = vld [vmem:[#allocation7 + $0x44] sm:$0xf0] }
  0x5e   : > { %1310 = vmatpush.bf16.msra.mxu2 %v3512_v21  ;;  %v3555_v37 = vld [vmem:[#allocation7 + $0xc0] sm:$0xf]  ;;  %v3568_v38 = vor.u32 %v3809_v31, %v3565_v32  ;;  %v3808_v39 = vld [vmem:[#allocation7 + $0xc4] sm:$0xf0]  ;;  %v3791_v40 = vld [vmem:[#allocation7 + $0x44] sm:$0xf]  ;;  %v3492_v44 = vor.u32 %v3792_v36, %v3491_v35 }
  0x5f   : > { %1479 = vmatpush.bf16.msra.mxu3 %v3576_v25  ;;  %v3493_v41 = vld [vmem:[#allocation7 + $0x48] sm:$0xf0]  ;;  %v3807_v42 = vld [vmem:[#allocation7 + $0xc4] sm:$0xf]  ;;  %v3556_v45 = vor.u32 %v3808_v39, %v3555_v37  ;;  %v3483_v47 = vld [vmem:[#allocation7 + $0x30] sm:$0xf] }
  0x60   : > { %v3557_v43 = vld [vmem:[#allocation7 + $0xc8] sm:$0xf0]  ;;  %973 = vmatpush.bf16.msra.mxu0 %v3500_v29  ;;  %v3496_v46 = vor.u32 %v3791_v40, %v3493_v41  ;;  %v3790_v48 = vld [vmem:[#allocation7 + $0x34] sm:$0xf0]  ;;  %v3547_v49 = vld [vmem:[#allocation7 + $0xb0] sm:$0xf] }
  0x61   : > { %1142 = vmatpush.bf16.msra.mxu1 %v3564_v33  ;;  %v3560_v50 = vor.u32 %v3807_v42, %v3557_v43  ;;  %v3806_v51 = vld [vmem:[#allocation7 + $0xb4] sm:$0xf0]  ;;  %v3789_v52 = vld [vmem:[#allocation7 + $0x34] sm:$0xf]  ;;  %v3485_v53 = vld [vmem:[#allocation7 + $0x38] sm:$0xf0]  ;;  %v3484_v56 = vor.u32 %v3790_v48, %v3483_v47 }
  0x62   : > { %1311 = vmatpush.bf16.msra.mxu2 %v3504_v34  ;;  %v3805_v54 = vld [vmem:[#allocation7 + $0xb4] sm:$0xf]  ;;  %v3549_v55 = vld [vmem:[#allocation7 + $0xb8] sm:$0xf0]  ;;  %v3548_v57 = vor.u32 %v3806_v51, %v3547_v49  ;;  %v3488_v58 = vor.u32 %v3789_v52, %v3485_v53  ;;  %v3475_v59 = vld [vmem:[#allocation7 + $0x20] sm:$0xf] }
  0x63   : > { %1480 = vmatpush.bf16.msra.mxu3 %v3568_v38  ;;  %v3788_v60 = vld [vmem:[#allocation7 + $0x24] sm:$0xf0]  ;;  %v3539_v61 = vld [vmem:[#allocation7 + $0xa0] sm:$0xf]  ;;  %v3552_v62 = vor.u32 %v3805_v54, %v3549_v55  ;;  %v3787_v0 = vld [vmem:[#allocation7 + $0x24] sm:$0xf] }
  0x64   : > { %974 = vmatpush.bf16.msra.mxu0 %v3492_v44  ;;  %v3804_v63 = vld [vmem:[#allocation7 + $0xa4] sm:$0xf0]  ;;  %v3477_v1 = vld [vmem:[#allocation7 + $0x28] sm:$0xf0]  ;;  %v3803_v2 = vld [vmem:[#allocation7 + $0xa4] sm:$0xf]  ;;  %v3476_v4 = vor.u32 %v3788_v60, %v3475_v59 }
  0x65   : > { %1143 = vmatpush.bf16.msra.mxu1 %v3556_v45  ;;  %v3541_v3 = vld [vmem:[#allocation7 + $0xa8] sm:$0xf0]  ;;  %v3540_v5 = vor.u32 %v3804_v63, %v3539_v61  ;;  %v3480_v6 = vor.u32 %v3787_v0, %v3477_v1  ;;  %v3467_v7 = vld [vmem:[#allocation7 + $0x10] sm:$0xf]  ;;  %v3786_v8 = vld [vmem:[#allocation7 + $0x14] sm:$0xf0] }
  0x66   : > { %1312 = vmatpush.bf16.msra.mxu2 %v3496_v46  ;;  %v3531_v9 = vld [vmem:[#allocation7 + $0x90] sm:$0xf]  ;;  %v3544_v10 = vor.u32 %v3803_v2, %v3541_v3  ;;  %v3802_v11 = vld [vmem:[#allocation7 + $0x94] sm:$0xf0]  ;;  %v3785_v12 = vld [vmem:[#allocation7 + $0x14] sm:$0xf]  ;;  %v3468_v16 = vor.u32 %v3786_v8, %v3467_v7 }
  0x67   : > { %1481 = vmatpush.bf16.msra.mxu3 %v3560_v50  ;;  %v3469_v13 = vld [vmem:[#allocation7 + $0x18] sm:$0xf0]  ;;  %v3801_v14 = vld [vmem:[#allocation7 + $0x94] sm:$0xf]  ;;  %v3532_v17 = vor.u32 %v3802_v11, %v3531_v9  ;;  %v3459_v19 = vld [vmem:[#allocation7] sm:$0xf] }
  0x68   : > { %975 = vmatpush.bf16.msra.mxu0 %v3484_v56  ;;  %v3533_v15 = vld [vmem:[#allocation7 + $0x98] sm:$0xf0]  ;;  %v3472_v18 = vor.u32 %v3785_v12, %v3469_v13  ;;  %v3784_v20 = vld [vmem:[#allocation7 + $0x4] sm:$0xf0]  ;;  %v3523_v21 = vld [vmem:[#allocation7 + $0x80] sm:$0xf] }
  0x69   : > { %1144 = vmatpush.bf16.msra.mxu1 %v3548_v57  ;;  %v3536_v22 = vor.u32 %v3801_v14, %v3533_v15  ;;  %v3800_v23 = vld [vmem:[#allocation7 + $0x84] sm:$0xf0]  ;;  %v3783_v24 = vld [vmem:[#allocation7 + $0x4] sm:$0xf]  ;;  %v3461_v25 = vld [vmem:[#allocation7 + $0x8] sm:$0xf0]  ;;  %v3460_v28 = vor.u32 %v3784_v20, %v3459_v19 }
  0x6a   : > { %1313 = vmatpush.bf16.msra.mxu2 %v3488_v58  ;;  %v3799_v26 = vld [vmem:[#allocation7 + $0x84] sm:$0xf]  ;;  %v3525_v27 = vld [vmem:[#allocation7 + $0x88] sm:$0xf0]  ;;  %v3203_v29 = vld [vmem:[%s4354_s21] sm:$0xf]  ;;  %v3524_v31 = vor.u32 %v3800_v23, %v3523_v21  ;;  %v3464_v32 = vor.u32 %v3783_v24, %v3461_v25 }
  0x6b   : > { %1482 = vmatpush.bf16.msra.mxu3 %v3552_v62  ;;  %v3720_v30 = vld [vmem:[%s4354_s21 + $0x4] sm:$0xf0]  ;;  %v3719_v33 = vld [vmem:[%s4354_s21 + $0x4] sm:$0xf]  ;;  %v3205_v34 = vld [vmem:[%s4354_s21 + $0x8] sm:$0xf0]  ;;  %v3528_v35 = vor.u32 %v3799_v26, %v3525_v27 }
  0x6c   : > { %976 = vmatpush.bf16.msra.mxu0 %v3476_v4  ;;  %v3204_v36 = vor.u32 %v3720_v30, %v3203_v29  ;;  %v3208_v37 = vor.u32 %v3719_v33, %v3205_v34  ;;  %v3211_v38 = vld [vmem:[%s4354_s21 + $0x10] sm:$0xf]  ;;  %v3722_v39 = vld [vmem:[%s4354_s21 + $0x14] sm:$0xf0]  ;;  %v3721_v40 = vld [vmem:[%s4354_s21 + $0x14] sm:$0xf] }
  0x6d   : > { %1145 = vmatpush.bf16.msra.mxu1 %v3540_v5  ;;  %v3213_v41 = vld [vmem:[%s4354_s21 + $0x18] sm:$0xf0]  ;;  %v3212_v42 = vor.u32 %v3722_v39, %v3211_v38  ;;  %v3219_v44 = vld [vmem:[%s4354_s21 + $0x20] sm:$0xf]  ;;  %v3724_v45 = vld [vmem:[%s4354_s21 + $0x24] sm:$0xf0] }
  0x6e   : > { %1314 = vmatpush.bf16.msra.mxu2 %v3480_v6  ;;  %v3216_v43 = vor.u32 %v3721_v40, %v3213_v41  ;;  %v3723_v46 = vld [vmem:[%s4354_s21 + $0x24] sm:$0xf]  ;;  %v3221_v47 = vld [vmem:[%s4354_s21 + $0x28] sm:$0xf0]  ;;  %v3220_v48 = vor.u32 %v3724_v45, %v3219_v44  ;;  %v3227_v50 = vld [vmem:[%s4354_s21 + $0x30] sm:$0xf] }
  0x6f   : > { %1483 = vmatpush.bf16.msra.mxu3 %v3544_v10  ;;  %v3224_v49 = vor.u32 %v3723_v46, %v3221_v47  ;;  %v3726_v51 = vld [vmem:[%s4354_s21 + $0x34] sm:$0xf0]  ;;  %v3725_v52 = vld [vmem:[%s4354_s21 + $0x34] sm:$0xf]  ;;  %v3229_v53 = vld [vmem:[%s4354_s21 + $0x38] sm:$0xf0] }
  0x70   : > { %977 = vmatpush.bf16.msra.mxu0 %v3468_v16  ;;  %v3228_v54 = vor.u32 %v3726_v51, %v3227_v50  ;;  %v3232_v55 = vor.u32 %v3725_v52, %v3229_v53  ;;  %v3235_v56 = vld [vmem:[%s4354_s21 + $0x40] sm:$0xf]  ;;  %v3728_v57 = vld [vmem:[%s4354_s21 + $0x44] sm:$0xf0]  ;;  %v3727_v58 = vld [vmem:[%s4354_s21 + $0x44] sm:$0xf] }
  0x71   : > { %1146 = vmatpush.bf16.msra.mxu1 %v3532_v17  ;;  %v3237_v59 = vld [vmem:[%s4354_s21 + $0x48] sm:$0xf0]  ;;  %v3236_v60 = vor.u32 %v3728_v57, %v3235_v56  ;;  %v3243_v62 = vld [vmem:[%s4354_s21 + $0x50] sm:$0xf]  ;;  %v3730_v63 = vld [vmem:[%s4354_s21 + $0x54] sm:$0xf0] }
  0x72   : > { %1315 = vmatpush.bf16.msra.mxu2 %v3472_v18  ;;  %v3240_v61 = vor.u32 %v3727_v58, %v3237_v59  ;;  %v3729_v0 = vld [vmem:[%s4354_s21 + $0x54] sm:$0xf]  ;;  %v3245_v1 = vld [vmem:[%s4354_s21 + $0x58] sm:$0xf0]  ;;  %v3244_v2 = vor.u32 %v3730_v63, %v3243_v62  ;;  %v3251_v4 = vld [vmem:[%s4354_s21 + $0x60] sm:$0xf] }
  0x73   : > { %1484 = vmatpush.bf16.msra.mxu3 %v3536_v22  ;;  %v3248_v3 = vor.u32 %v3729_v0, %v3245_v1  ;;  %v3732_v5 = vld [vmem:[%s4354_s21 + $0x64] sm:$0xf0]  ;;  %v3731_v6 = vld [vmem:[%s4354_s21 + $0x64] sm:$0xf]  ;;  %v3253_v7 = vld [vmem:[%s4354_s21 + $0x68] sm:$0xf0] }
  0x74   : > { %978 = vmatpush.bf16.msra.mxu0 %v3460_v28  ;;  %v3252_v8 = vor.u32 %v3732_v5, %v3251_v4  ;;  %v3256_v9 = vor.u32 %v3731_v6, %v3253_v7  ;;  %v3259_v10 = vld [vmem:[%s4354_s21 + $0x70] sm:$0xf]  ;;  %v3734_v11 = vld [vmem:[%s4354_s21 + $0x74] sm:$0xf0]  ;;  %v3733_v12 = vld [vmem:[%s4354_s21 + $0x74] sm:$0xf] }
  0x75   : > { %1147 = vmatpush.bf16.msra.mxu1 %v3524_v31  ;;  %v3261_v13 = vld [vmem:[%s4354_s21 + $0x78] sm:$0xf0]  ;;  %v3260_v14 = vor.u32 %v3734_v11, %v3259_v10  ;;  %v485_v16 = vld [vmem:[%s5260_s3] sm:$0x3]  ;;  %v3267_v17 = vld [vmem:[%s4354_s21 + $0x80] sm:$0xf] }
  0x76   : > { %1316 = vmatpush.bf16.msra.mxu2 %v3464_v32  ;;  %v3264_v15 = vor.u32 %v3733_v12, %v3261_v13  ;;  %v3736_v18 = vld [vmem:[%s4354_s21 + $0x84] sm:$0xf0]  ;;  %v4415_v19 = vperm.slane %v485_v16, 0  ;;  %v3735_v20 = vld [vmem:[%s4354_s21 + $0x84] sm:$0xf]  ;;  %v4420_v28 = vperm.slane %v485_v16, 1 }
  0x77   : > { %1485 = vmatpush.bf16.msra.mxu3 %v3528_v35  ;;  %979 = vmatmul.bf16.vlgmr.msra.gmra.mxu0 %v3204_v36  ;;  %v3269_v21 = vld [vmem:[%s4354_s21 + $0x88] sm:$0xf0]  ;;  %v3268_v22 = vor.u32 %v3736_v18, %v3267_v17  ;;  %v3738_v38 = vld [vmem:[%s4354_s21 + $0x94] sm:$0xf0]  ;;  %v3737_v41 = vld [vmem:[%s4354_s21 + $0x94] sm:$0xf] }
  0x78   : > { %1148 = vmatmul.bf16.vlgmr.msra.gmra.mxu1 %v3208_v37  ;;  %v3272_v24 = vor.u32 %v3735_v20, %v3269_v21  ;;  %v3283_v1 = vld [vmem:[%s4354_s21 + $0xa0] sm:$0xf]  ;;  %v3739_v5 = vld [vmem:[%s4354_s21 + $0xa4] sm:$0xf]  ;;  %v3285_v6 = vld [vmem:[%s4354_s21 + $0xa8] sm:$0xf0] }
  0x79   : > { %1317 = vmatmul.bf16.vlgmr.msra.gmra.mxu2 %v3204_v36  ;;  %v3288_v13 = vor.u32 %v3739_v5, %v3285_v6  ;;  %v3709_v5 = vld [vmem:[#allocation8 + $0xf8] sm:$0xf0]  ;;  %s3714_s6 = sshll.u32 %s4227_s28, 2  ;;  %vm3033_vm0 = vcmask 1040384   ;;  %vm3035_vm1 = vcmask 1042434   ;;  %s385_s28 = scalar_lea.vmem [#allocation11], %s3196_s16 }
  0x7a   : > { %1486 = vmatmul.bf16.vlgmr.msra.gmra.mxu3 %v3208_v37  ;;  %v3275_v37 = vld [vmem:[%s4354_s21 + $0x90] sm:$0xf]  ;;  %s3056_s2 = scalar_lea.hbm %s5264_s7, %s3714_s6  ;;  %s3058_s10 = sshll.u32 %s385_s28, 4  ;;  %vm3037_vm2 = vcmask 1041408   ;;  %s3059_s10 = int_to_ptr.vmem [resolvable:$true] %s3058_s10 }
  0x7b   : > { %v3276_v45 = vor.u32 %v3738_v38, %v3275_v37  ;;  %s3060_s26 = sshll.u32 %s3056_s2, 4  ;;  %s3046_s20 = scalar_lea.sflag [#allocation4], %s4350_s19  ;;  %s3061_s26 = int_to_ptr.hbm [resolvable:$true] %s3060_s26 }
  0x7c   : > { %s4095_s14 = sshra.s32 %s3061_s26, 4  ;;  %s4101_s12 = scalar_lea.hbm %s5264_s7, 8  ;;  %s4096_s14 = int_to_ptr.hbm [resolvable:$true] %s4095_s14 }
  0x7d   : > { %s4097_s13 = scalar_lea.hbm %s4096_s14, 4  ;;  %p4102_p2 = scmp.lt.s32.totalorder %s4096_s14, %s5264_s7 }
  0x7e   : > { %p4098_p1 = scmp.ne.s32.totalorder %s4096_s14, %s4097_s13  ;;  %p4103_p10 = scmp.lt.s32.totalorder %s4101_s12, %s4097_s13 }
  0x80   : > { %p4099_p4 = pnand %p4098_p1, %p4295_p7  ;;  %p4104_p11 = por %p4103_p10, %p4102_p2 }
  0x82   : > { %p4100_p8 = pneg %p4099_p4 }
  0x84   : > { %p4105_p9 = pnand %p4104_p11, %p4100_p8 }
  0x87   : > { %984 = vmatmul.bf16.gmra.mxu0 %v3212_v42 }
  0x88   : > { %1153 = vmatmul.bf16.gmra.mxu1 %v3216_v43 }
  0x89   : > { %1322 = vmatmul.bf16.gmra.mxu2 %v3212_v42  ;;  %v3277_v42 = vld [vmem:[%s4354_s21 + $0x98] sm:$0xf0] }
  0x8a   : > { %1491 = vmatmul.bf16.gmra.mxu3 %v3216_v43 }
  0x97   : > { %989 = vmatmul.bf16.gmra.mxu0 %v3220_v48 }
  0x98   : > { %1158 = vmatmul.bf16.gmra.mxu1 %v3224_v49 }
  0x99   : > { %1327 = vmatmul.bf16.gmra.mxu2 %v3220_v48 }
  0x9a   : > { %1496 = vmatmul.bf16.gmra.mxu3 %v3224_v49  ;;  %v3280_v49 = vor.u32 %v3737_v41, %v3277_v42 }
  0xa7   : > { %994 = vmatmul.bf16.gmra.mxu0 %v3228_v54 }
  0xa8   : > { %1163 = vmatmul.bf16.gmra.mxu1 %v3232_v55 }
  0xa9   : > { %1332 = vmatmul.bf16.gmra.mxu2 %v3228_v54 }
  0xaa   : > { %1501 = vmatmul.bf16.gmra.mxu3 %v3232_v55 }
  0xb7   : > { %999 = vmatmul.bf16.gmra.mxu0 %v3236_v60 }
  0xb8   : > { %1168 = vmatmul.bf16.gmra.mxu1 %v3240_v61 }
  0xb9   : > { %1337 = vmatmul.bf16.gmra.mxu2 %v3236_v60 }
  0xba   : > { %1506 = vmatmul.bf16.gmra.mxu3 %v3240_v61 }
  0xc7   : > { %1004 = vmatmul.bf16.gmra.mxu0 %v3244_v2 }
  0xc8   : > { %1173 = vmatmul.bf16.gmra.mxu1 %v3248_v3 }
  0xc9   : > { %1342 = vmatmul.bf16.gmra.mxu2 %v3244_v2  ;;  %v3740_v2 = vld [vmem:[%s4354_s21 + $0xa4] sm:$0xf0] }
  0xca   : > { %1511 = vmatmul.bf16.gmra.mxu3 %v3248_v3 }
  0xd7   : > { %1009 = vmatmul.bf16.gmra.mxu0 %v3252_v8 }
  0xd8   : > { %1178 = vmatmul.bf16.gmra.mxu1 %v3256_v9 }
  0xd9   : > { %1347 = vmatmul.bf16.gmra.mxu2 %v3252_v8  ;;  %v3284_v8 = vor.u32 %v3740_v2, %v3283_v1  ;;  %v3744_v1 = vld [vmem:[%s4354_s21 + $0xc4] sm:$0xf0]  ;;  %v3743_v2 = vld [vmem:[%s4354_s21 + $0xc4] sm:$0xf] }
  0xda   : > { %1516 = vmatmul.bf16.gmra.mxu3 %v3256_v9 }
  0xe7   : > { %1014 = vmatmul.bf16.gmra.mxu0 %v3260_v14 }
  0xe8   : > { %1183 = vmatmul.bf16.gmra.mxu1 %v3264_v15 }
  0xe9   : > { %1352 = vmatmul.bf16.gmra.mxu2 %v3260_v14 }
  0xea   : > { %1521 = vmatmul.bf16.gmra.mxu3 %v3264_v15 }
  0xf4   : > { %v980_v23 = vpop.f32.mrf.mxu0 }
  0xf5   : > { %v981_v25 = vadd.f32 %v980_v23, %v4415_v19  ;;  %v1149_v26 = vpop.f32.mrf.mxu1 }
  0xf7   : > { %v1150_v27 = vadd.f32 %v1149_v26, %v981_v25  ;;  %1019 = vmatmul.bf16.gmra.mxu0 %v3268_v22 }
  0xf8   : > { %1188 = vmatmul.bf16.gmra.mxu1 %v3272_v24 }
  0xf9   : > { %1357 = vmatmul.bf16.gmra.mxu2 %v3268_v22  ;;  %v1647_v39 = vmax.f32 %v1150_v27, 0.0 }
  0xfa   : > { %1526 = vmatmul.bf16.gmra.mxu3 %v3272_v24 }
  0xfc   : > { %v1318_v29 = vpop.f32.mrf.mxu2  ;;  %v982_v32 = vpop.f32.mrf.mxu0 }
  0xfd   : > { %v1319_v30 = vadd.f32 %v1318_v29, %v4420_v28  ;;  %v1487_v31 = vpop.f32.mrf.mxu3  ;;  %v983_v33 = vadd.f32 %v982_v32, %v4415_v19  ;;  %v1151_v34 = vpop.f32.mrf.mxu1  ;;  %v3742_v32 = vld [vmem:[%s4354_s21 + $0xb4] sm:$0xf0] }
  0xff   : > { %v1488_v35 = vadd.f32 %v1487_v31, %v1319_v30  ;;  %v1152_v36 = vadd.f32 %v1151_v34, %v983_v33  ;;  %v3291_v31 = vld [vmem:[%s4354_s21 + $0xb0] sm:$0xf] }
 0x100   : > { %v3292_v38 = vor.u32 %v3742_v32, %v3291_v31 }
 0x101   : > { %v1649_v40 = vmax.f32 %v1152_v36, 0.0  ;;  %v1648_v54 = vmax.f32 %v1488_v35, 0.0  ;;  %v3741_v35 = vld [vmem:[%s4354_s21 + $0xb4] sm:$0xf]  ;;  %v3293_v36 = vld [vmem:[%s4354_s21 + $0xb8] sm:$0xf0] }
 0x103   : > { %v4428_v43 = vpack.c.bf16 %v1649_v40, %v1647_v39 }
 0x104   : > { %v1320_v44 = vpop.f32.mrf.mxu2  ;;  %v985_v48 = vpop.f32.mrf.mxu0 }
 0x105   : > { %v1321_v46 = vadd.f32 %v1320_v44, %v4420_v28  ;;  %v1489_v47 = vpop.f32.mrf.mxu3  ;;  %v986_v50 = vadd.f32 %v985_v48, %v4415_v19  ;;  %v1154_v51 = vpop.f32.mrf.mxu1  ;;  %v3296_v44 = vor.u32 %v3741_v35, %v3293_v36 }
 0x107   : > { %v1490_v52 = vadd.f32 %v1489_v47, %v1321_v46  ;;  %v1155_v53 = vadd.f32 %v1154_v51, %v986_v50  ;;  %1024 = vmatmul.bf16.gmra.mxu0 %v3276_v45  ;;  %v3829_v51 = vld [vmem:[#allocation8 + $0x74] sm:$0xf] }
 0x108   : > { %1193 = vmatmul.bf16.gmra.mxu1 %v3280_v49 }
 0x109   : > { %v1650_v55 = vmax.f32 %v1490_v52, 0.0  ;;  %1362 = vmatmul.bf16.gmra.mxu2 %v3276_v45  ;;  %v1651_v3 = vmax.f32 %v1155_v53, 0.0  ;;  %v3645_v52 = vld [vmem:[#allocation8 + $0x78] sm:$0xf0] }
 0x10a   : > { %1531 = vmatmul.bf16.gmra.mxu3 %v3280_v49  ;;  %v3648_v53 = vor.u32 %v3829_v51, %v3645_v52 }
 0x10b   : > { %v4432_v56 = vpack.c.bf16 %v1650_v55, %v1648_v54 }
 0x10c   : > { %v1323_v57 = vpop.f32.mrf.mxu2  ;;  %v987_v60 = vpop.f32.mrf.mxu0  ;;  %2375 = vmatpush.bf16.msrb.mxu2 %v3648_v53 }
 0x10d   : > { %v1324_v58 = vadd.f32 %v1323_v57, %v4420_v28  ;;  %v1492_v59 = vpop.f32.mrf.mxu3  ;;  %v988_v61 = vadd.f32 %v987_v60, %v4415_v19  ;;  %v1156_v62 = vpop.f32.mrf.mxu1 }
 0x10f   : > { %v1493_v63 = vadd.f32 %v1492_v59, %v1324_v58  ;;  %v1157_v0 = vadd.f32 %v1156_v62, %v988_v61 }
 0x111   : > { %v1653_v4 = vmax.f32 %v1157_v0, 0.0  ;;  %v1652_v18 = vmax.f32 %v1493_v63, 0.0  ;;  %v3299_v0 = vld [vmem:[%s4354_s21 + $0xc0] sm:$0xf] }
 0x113   : > { %v4440_v9 = vpack.c.bf16 %v1653_v4, %v1651_v3  ;;  %v3301_v3 = vld [vmem:[%s4354_s21 + $0xc8] sm:$0xf0]  ;;  %v3845_v4 = vld [vmem:[#allocation8 + $0xf4] sm:$0xf] }
 0x114   : > { %v1325_v7 = vpop.f32.mrf.mxu2  ;;  %v990_v12 = vpop.f32.mrf.mxu0 }
 0x115   : > { %v1326_v10 = vadd.f32 %v1325_v7, %v4420_v28  ;;  %v1494_v11 = vpop.f32.mrf.mxu3  ;;  %v991_v14 = vadd.f32 %v990_v12, %v4415_v19  ;;  %v1159_v15 = vpop.f32.mrf.mxu1 }
 0x117   : > { %v1495_v16 = vadd.f32 %v1494_v11, %v1326_v10  ;;  %v1160_v17 = vadd.f32 %v1159_v15, %v991_v14  ;;  %1029 = vmatmul.bf16.gmra.mxu0 %v3284_v8  ;;  %v3643_v10 = vld [vmem:[#allocation8 + $0x70] sm:$0xf]  ;;  %v3830_v11 = vld [vmem:[#allocation8 + $0x74] sm:$0xf0] }
 0x118   : > { %1198 = vmatmul.bf16.gmra.mxu1 %v3288_v13  ;;  %v3644_v12 = vor.u32 %v3830_v11, %v3643_v10  ;;  %v3846_v14 = vld [vmem:[#allocation8 + $0xf4] sm:$0xf0]  ;;  %v3748_v11 = vld [vmem:[%s4354_s21 + $0xe4] sm:$0xf0] }
 0x119   : > { %v1654_v20 = vmax.f32 %v1495_v16, 0.0  ;;  %1367 = vmatmul.bf16.gmra.mxu2 %v3284_v8  ;;  %v1655_v33 = vmax.f32 %v1160_v17, 0.0  ;;  %v3712_v8 = vor.u32 %v3845_v4, %v3709_v5  ;;  %v3300_v16 = vor.u32 %v3744_v1, %v3299_v0  ;;  %v3315_v10 = vld [vmem:[%s4354_s21 + $0xe0] sm:$0xf] }
 0x11a   : > { %1536 = vmatmul.bf16.gmra.mxu3 %v3288_v13  ;;  %v3707_v13 = vld [vmem:[#allocation8 + $0xf0] sm:$0xf]  ;;  %2037 = vmatpush.bf16.msrb.mxu0 %v3644_v12 }
 0x11b   : > { %v4444_v21 = vpack.c.bf16 %v1654_v20, %v1652_v18  ;;  %2544 = vmatpush.bf16.msrb.mxu3 %v3712_v8  ;;  %v3708_v17 = vor.u32 %v3846_v14, %v3707_v13  ;;  %v3747_v14 = vld [vmem:[%s4354_s21 + $0xe4] sm:$0xf] }
 0x11c   : > { %v1328_v22 = vpop.f32.mrf.mxu2  ;;  %v992_v25 = vpop.f32.mrf.mxu0 }
 0x11d   : > { %v1329_v23 = vadd.f32 %v1328_v22, %v4420_v28  ;;  %v1497_v24 = vpop.f32.mrf.mxu3  ;;  %v993_v26 = vadd.f32 %v992_v25, %v4415_v19  ;;  %v1161_v27 = vpop.f32.mrf.mxu1  ;;  %2206 = vmatpush.bf16.msrb.mxu1 %v3708_v17  ;;  %v3316_v17 = vor.u32 %v3748_v11, %v3315_v10 }
 0x11f   : > { %v1498_v29 = vadd.f32 %v1497_v24, %v1329_v23  ;;  %v1162_v30 = vadd.f32 %v1161_v27, %v993_v26  ;;  %v3304_v24 = vor.u32 %v3743_v2, %v3301_v3 }
 0x121   : > { %v1657_v34 = vmax.f32 %v1162_v30, 0.0  ;;  %v1656_v49 = vmax.f32 %v1498_v29, 0.0 }
 0x123   : > { %v4452_v39 = vpack.c.bf16 %v1657_v34, %v1655_v33 }
 0x124   : > { %v1330_v37 = vpop.f32.mrf.mxu2  ;;  %v995_v42 = vpop.f32.mrf.mxu0 }
 0x125   : > { %v1331_v40 = vadd.f32 %v1330_v37, %v4420_v28  ;;  %v1499_v41 = vpop.f32.mrf.mxu3  ;;  %v996_v45 = vadd.f32 %v995_v42, %v4415_v19  ;;  %v1164_v46 = vpop.f32.mrf.mxu1  ;;  %v3307_v42 = vld [vmem:[%s4354_s21 + $0xd0] sm:$0xf] }
 0x127   : > { %v1500_v47 = vadd.f32 %v1499_v41, %v1331_v40  ;;  %v1165_v48 = vadd.f32 %v1164_v46, %v996_v45  ;;  %1034 = vmatmul.bf16.gmra.mxu0 %v3292_v38 }
 0x128   : > { %1203 = vmatmul.bf16.gmra.mxu1 %v3296_v44 }
 0x129   : > { %v1658_v50 = vmax.f32 %v1500_v47, 0.0  ;;  %1372 = vmatmul.bf16.gmra.mxu2 %v3292_v38  ;;  %v1659_v6 = vmax.f32 %v1165_v48, 0.0  ;;  %v3745_v47 = vld [vmem:[%s4354_s21 + $0xd4] sm:$0xf]  ;;  %v3309_v48 = vld [vmem:[%s4354_s21 + $0xd8] sm:$0xf0] }
 0x12a   : > { %1541 = vmatmul.bf16.gmra.mxu3 %v3296_v44  ;;  %v3746_v44 = vld [vmem:[%s4354_s21 + $0xd4] sm:$0xf0] }
 0x12b   : > { %v4456_v54 = vpack.c.bf16 %v1658_v50, %v1656_v49  ;;  %v3308_v50 = vor.u32 %v3746_v44, %v3307_v42 }
 0x12c   : > { %v1333_v55 = vpop.f32.mrf.mxu2  ;;  %v997_v59 = vpop.f32.mrf.mxu0 }
 0x12d   : > { %v1334_v57 = vadd.f32 %v1333_v55, %v4420_v28  ;;  %v1502_v58 = vpop.f32.mrf.mxu3  ;;  %v998_v60 = vadd.f32 %v997_v59, %v4415_v19  ;;  %v1166_v61 = vpop.f32.mrf.mxu1 }
 0x12f   : > { %v1503_v62 = vadd.f32 %v1502_v58, %v1334_v57  ;;  %v1167_v63 = vadd.f32 %v1166_v61, %v998_v60  ;;  %v3312_v57 = vor.u32 %v3745_v47, %v3309_v48 }
 0x131   : > { %v1661_v7 = vmax.f32 %v1167_v63, 0.0  ;;  %v1660_v30 = vmax.f32 %v1503_v62, 0.0 }
 0x133   : > { %v4464_v18 = vpack.c.bf16 %v1661_v7, %v1659_v6 }
 0x134   : > { %v1335_v15 = vpop.f32.mrf.mxu2  ;;  %v1000_v23 = vpop.f32.mrf.mxu0 }
 0x135   : > { %v1336_v20 = vadd.f32 %v1335_v15, %v4420_v28  ;;  %v1504_v22 = vpop.f32.mrf.mxu3  ;;  %v1001_v25 = vadd.f32 %v1000_v23, %v4415_v19  ;;  %v1169_v26 = vpop.f32.mrf.mxu1  ;;  %v3317_v15 = vld [vmem:[%s4354_s21 + $0xe8] sm:$0xf0] }
 0x137   : > { %v1505_v27 = vadd.f32 %v1504_v22, %v1336_v20  ;;  %v1170_v29 = vadd.f32 %v1169_v26, %v1001_v25  ;;  %1039 = vmatmul.bf16.gmra.mxu0 %v3300_v16  ;;  %v3320_v25 = vor.u32 %v3747_v14, %v3317_v15 }
 0x138   : > { %1208 = vmatmul.bf16.gmra.mxu1 %v3304_v24 }
 0x139   : > { %v1662_v31 = vmax.f32 %v1505_v27, 0.0  ;;  %1377 = vmatmul.bf16.gmra.mxu2 %v3300_v16  ;;  %v1663_v45 = vmax.f32 %v1170_v29, 0.0 }
 0x13a   : > { %1546 = vmatmul.bf16.gmra.mxu3 %v3304_v24 }
 0x13b   : > { %v4468_v32 = vpack.c.bf16 %v1662_v31, %v1660_v30 }
 0x13c   : > { %v1338_v33 = vpop.f32.mrf.mxu2  ;;  %v1002_v36 = vpop.f32.mrf.mxu0 }
 0x13d   : > { %v1339_v34 = vadd.f32 %v1338_v33, %v4420_v28  ;;  %v1507_v35 = vpop.f32.mrf.mxu3  ;;  %v1003_v37 = vadd.f32 %v1002_v36, %v4415_v19  ;;  %v1171_v38 = vpop.f32.mrf.mxu1 }
 0x13f   : > { %v1508_v40 = vadd.f32 %v1507_v35, %v1339_v34  ;;  %v1172_v41 = vadd.f32 %v1171_v38, %v1003_v37 }
 0x141   : > { %v1665_v46 = vmax.f32 %v1172_v41, 0.0  ;;  %v1664_v62 = vmax.f32 %v1508_v40, 0.0 }
 0x143   : > { %v4476_v51 = vpack.c.bf16 %v1665_v46, %v1663_v45  ;;  %v3323_v45 = vld [vmem:[%s4354_s21 + $0xf0] sm:$0xf]  ;;  %v3750_v46 = vld [vmem:[%s4354_s21 + $0xf4] sm:$0xf0] }
 0x144   : > { %v1340_v49 = vpop.f32.mrf.mxu2  ;;  %v1005_v55 = vpop.f32.mrf.mxu0 }
 0x145   : > { %v1341_v52 = vadd.f32 %v1340_v49, %v4420_v28  ;;  %v1509_v53 = vpop.f32.mrf.mxu3  ;;  %v1006_v58 = vadd.f32 %v1005_v55, %v4415_v19  ;;  %v1174_v59 = vpop.f32.mrf.mxu1  ;;  %v3749_v49 = vld [vmem:[%s4354_s21 + $0xf4] sm:$0xf] }
 0x147   : > { %v1510_v60 = vadd.f32 %v1509_v53, %v1341_v52  ;;  %v1175_v61 = vadd.f32 %v1174_v59, %v1006_v58  ;;  %1044 = vmatmul.bf16.gmra.mxu0 %v3308_v50  ;;  %v3324_v53 = vor.u32 %v3750_v46, %v3323_v45 }
 0x148   : > { %1213 = vmatmul.bf16.gmra.mxu1 %v3312_v57 }
 0x149   : > { %v1666_v63 = vmax.f32 %v1510_v60, 0.0  ;;  %1382 = vmatmul.bf16.gmra.mxu2 %v3308_v50  ;;  %v1667_v12 = vmax.f32 %v1175_v61, 0.0  ;;  %v3325_v50 = vld [vmem:[%s4354_s21 + $0xf8] sm:$0xf0] }
 0x14a   : > { %1551 = vmatmul.bf16.gmra.mxu3 %v3312_v57  ;;  %v3328_v60 = vor.u32 %v3749_v49, %v3325_v50 }
 0x14b   : > { %v4480_v0 = vpack.c.bf16 %v1666_v63, %v1664_v62 }
 0x14c   : > { %v1343_v1 = vpop.f32.mrf.mxu2  ;;  %v1007_v4 = vpop.f32.mrf.mxu0 }
 0x14d   : > { %v1344_v2 = vadd.f32 %v1343_v1, %v4420_v28  ;;  %v1512_v3 = vpop.f32.mrf.mxu3  ;;  %v1008_v5 = vadd.f32 %v1007_v4, %v4415_v19  ;;  %v1176_v6 = vpop.f32.mrf.mxu1  ;;  %v3827_v4 = vld [vmem:[#allocation8 + $0x64] sm:$0xf] }
 0x14f   : > { %v1513_v7 = vadd.f32 %v1512_v3, %v1344_v2  ;;  %v1177_v8 = vadd.f32 %v1176_v6, %v1008_v5  ;;  %v3637_v5 = vld [vmem:[#allocation8 + $0x68] sm:$0xf0] }
 0x150   : > { %v3640_v6 = vor.u32 %v3827_v4, %v3637_v5  ;;  %v3339_v4 = vld [vmem:[%s4354_s21 + $0x110] sm:$0xf]  ;;  %v3754_v5 = vld [vmem:[%s4354_s21 + $0x114] sm:$0xf0] }
 0x151   : > { %v1669_v13 = vmax.f32 %v1177_v8, 0.0  ;;  %v1668_v31 = vmax.f32 %v1513_v7, 0.0 }
 0x152   : > { %2376 = vmatpush.bf16.msrb.mxu2 %v3640_v6 }
 0x153   : > { %v4488_v20 = vpack.c.bf16 %v1669_v13, %v1667_v12 }
 0x154   : > { %v1345_v16 = vpop.f32.mrf.mxu2  ;;  %v1010_v24 = vpop.f32.mrf.mxu0 }
 0x155   : > { %v1346_v22 = vadd.f32 %v1345_v16, %v4420_v28  ;;  %v1514_v23 = vpop.f32.mrf.mxu3  ;;  %v1011_v26 = vadd.f32 %v1010_v24, %v4415_v19  ;;  %v1179_v27 = vpop.f32.mrf.mxu1  ;;  %v3333_v24 = vld [vmem:[%s4354_s21 + $0x108] sm:$0xf0] }
 0x157   : > { %v1515_v29 = vadd.f32 %v1514_v23, %v1346_v22  ;;  %v1180_v30 = vadd.f32 %v1179_v27, %v1011_v26  ;;  %1049 = vmatmul.bf16.gmra.mxu0 %v3316_v17  ;;  %v3752_v22 = vld [vmem:[%s4354_s21 + $0x104] sm:$0xf0]  ;;  %v3751_v23 = vld [vmem:[%s4354_s21 + $0x104] sm:$0xf]  ;;  %v3701_v26 = vld [vmem:[#allocation8 + $0xe8] sm:$0xf0] }
 0x158   : > { %1218 = vmatmul.bf16.gmra.mxu1 %v3320_v25 }
 0x159   : > { %v1670_v33 = vmax.f32 %v1515_v29, 0.0  ;;  %1387 = vmatmul.bf16.gmra.mxu2 %v3316_v17  ;;  %v1671_v47 = vmax.f32 %v1180_v30, 0.0  ;;  %v3331_v17 = vld [vmem:[%s4354_s21 + $0x100] sm:$0xf] }
 0x15a   : > { %1556 = vmatmul.bf16.gmra.mxu3 %v3320_v25  ;;  %v3843_v25 = vld [vmem:[#allocation8 + $0xe4] sm:$0xf] }
 0x15b   : > { %v4492_v34 = vpack.c.bf16 %v1670_v33, %v1668_v31  ;;  %v3704_v30 = vor.u32 %v3843_v25, %v3701_v26  ;;  %v3635_v31 = vld [vmem:[#allocation8 + $0x60] sm:$0xf]  ;;  %v3828_v33 = vld [vmem:[#allocation8 + $0x64] sm:$0xf0] }
 0x15c   : > { %v1348_v35 = vpop.f32.mrf.mxu2  ;;  %v1012_v38 = vpop.f32.mrf.mxu0 }
 0x15d   : > { %v1349_v36 = vadd.f32 %v1348_v35, %v4420_v28  ;;  %v1517_v37 = vpop.f32.mrf.mxu3  ;;  %v1013_v40 = vadd.f32 %v1012_v38, %v4415_v19  ;;  %v1181_v41 = vpop.f32.mrf.mxu1  ;;  %v3636_v35 = vor.u32 %v3828_v33, %v3635_v31  ;;  %2545 = vmatpush.bf16.msrb.mxu3 %v3704_v30 }
 0x15f   : > { %v1518_v42 = vadd.f32 %v1517_v37, %v1349_v36  ;;  %v1182_v44 = vadd.f32 %v1181_v41, %v1013_v40  ;;  %v3699_v36 = vld [vmem:[#allocation8 + $0xe0] sm:$0xf]  ;;  %v3844_v37 = vld [vmem:[#allocation8 + $0xe4] sm:$0xf0]  ;;  %v3332_v40 = vor.u32 %v3752_v22, %v3331_v17  ;;  %2038 = vmatpush.bf16.msrb.mxu0 %v3636_v35 }
 0x160   : > { %v3700_v41 = vor.u32 %v3844_v37, %v3699_v36 }
 0x161   : > { %v1673_v48 = vmax.f32 %v1182_v44, 0.0  ;;  %v1672_v2 = vmax.f32 %v1518_v42, 0.0 }
 0x162   : > { %2207 = vmatpush.bf16.msrb.mxu1 %v3700_v41 }
 0x163   : > { %v4500_v55 = vpack.c.bf16 %v1673_v48, %v1671_v47  ;;  %v3336_v47 = vor.u32 %v3751_v23, %v3333_v24 }
 0x164   : > { %v1350_v52 = vpop.f32.mrf.mxu2  ;;  %v1015_v59 = vpop.f32.mrf.mxu0 }
 0x165   : > { %v1351_v57 = vadd.f32 %v1350_v52, %v4420_v28  ;;  %v1519_v58 = vpop.f32.mrf.mxu3  ;;  %v1016_v61 = vadd.f32 %v1015_v59, %v4415_v19  ;;  %v1184_v62 = vpop.f32.mrf.mxu1 }
 0x167   : > { %v1520_v63 = vadd.f32 %v1519_v58, %v1351_v57  ;;  %v1185_v1 = vadd.f32 %v1184_v62, %v1016_v61  ;;  %1054 = vmatmul.bf16.gmra.mxu0 %v3324_v53 }
 0x168   : > { %1223 = vmatmul.bf16.gmra.mxu1 %v3328_v60 }
 0x169   : > { %v1674_v3 = vmax.f32 %v1520_v63, 0.0  ;;  %1392 = vmatmul.bf16.gmra.mxu2 %v3324_v53  ;;  %v1675_v27 = vmax.f32 %v1185_v1, 0.0 }
 0x16a   : > { %1561 = vmatmul.bf16.gmra.mxu3 %v3328_v60 }
 0x16b   : > { %v4504_v7 = vpack.c.bf16 %v1674_v3, %v1672_v2 }
 0x16c   : > { %v1353_v8 = vpop.f32.mrf.mxu2  ;;  %v1017_v12 = vpop.f32.mrf.mxu0 }
 0x16d   : > { %v1354_v10 = vadd.f32 %v1353_v8, %v4420_v28  ;;  %v1522_v11 = vpop.f32.mrf.mxu3  ;;  %v1018_v13 = vadd.f32 %v1017_v12, %v4415_v19  ;;  %v1186_v14 = vpop.f32.mrf.mxu1 }
 0x16f   : > { %v1523_v15 = vadd.f32 %v1522_v11, %v1354_v10  ;;  %v1187_v16 = vadd.f32 %v1186_v14, %v1018_v13  ;;  %v3753_v10 = vld [vmem:[%s4354_s21 + $0x114] sm:$0xf]  ;;  %v3341_v11 = vld [vmem:[%s4354_s21 + $0x118] sm:$0xf0]  ;;  %v3340_v13 = vor.u32 %v3754_v5, %v3339_v4 }
 0x170   : > { %v3344_v22 = vor.u32 %v3753_v10, %v3341_v11 }
 0x171   : > { %v1677_v29 = vmax.f32 %v1187_v16, 0.0  ;;  %v1676_v53 = vmax.f32 %v1523_v15, 0.0 }
 0x173   : > { %v4512_v42 = vpack.c.bf16 %v1677_v29, %v1675_v27 }
 0x174   : > { %v1355_v38 = vpop.f32.mrf.mxu2  ;;  %v1020_v46 = vpop.f32.mrf.mxu0 }
 0x175   : > { %v1356_v44 = vadd.f32 %v1355_v38, %v4420_v28  ;;  %v1524_v45 = vpop.f32.mrf.mxu3  ;;  %v1021_v48 = vadd.f32 %v1020_v46, %v4415_v19  ;;  %v1189_v49 = vpop.f32.mrf.mxu1 }
 0x177   : > { %v1525_v50 = vadd.f32 %v1524_v45, %v1356_v44  ;;  %v1190_v52 = vadd.f32 %v1189_v49, %v1021_v48  ;;  %1059 = vmatmul.bf16.gmra.mxu0 %v3332_v40  ;;  %v3347_v44 = vld [vmem:[%s4354_s21 + $0x120] sm:$0xf]  ;;  %v3756_v45 = vld [vmem:[%s4354_s21 + $0x124] sm:$0xf0]  ;;  %v3755_v48 = vld [vmem:[%s4354_s21 + $0x124] sm:$0xf] }
 0x178   : > { %1228 = vmatmul.bf16.gmra.mxu1 %v3336_v47  ;;  %v3349_v49 = vld [vmem:[%s4354_s21 + $0x128] sm:$0xf0] }
 0x179   : > { %v1678_v57 = vmax.f32 %v1525_v50, 0.0  ;;  %1397 = vmatmul.bf16.gmra.mxu2 %v3332_v40  ;;  %v1679_v6 = vmax.f32 %v1190_v52, 0.0  ;;  %v3348_v52 = vor.u32 %v3756_v45, %v3347_v44 }
 0x17a   : > { %1566 = vmatmul.bf16.gmra.mxu3 %v3336_v47 }
 0x17b   : > { %v4516_v58 = vpack.c.bf16 %v1678_v57, %v1676_v53 }
 0x17c   : > { %v1358_v59 = vpop.f32.mrf.mxu2  ;;  %v1022_v62 = vpop.f32.mrf.mxu0 }
 0x17d   : > { %v1359_v60 = vadd.f32 %v1358_v59, %v4420_v28  ;;  %v1527_v61 = vpop.f32.mrf.mxu3  ;;  %v1023_v63 = vadd.f32 %v1022_v62, %v4415_v19  ;;  %v1191_v1 = vpop.f32.mrf.mxu1 }
 0x17f   : > { %v1528_v2 = vadd.f32 %v1527_v61, %v1359_v60  ;;  %v1192_v3 = vadd.f32 %v1191_v1, %v1023_v63  ;;  %v3352_v61 = vor.u32 %v3755_v48, %v3349_v49  ;;  %v3629_v48 = vld [vmem:[#allocation8 + $0x58] sm:$0xf0] }
 0x181   : > { %v1681_v8 = vmax.f32 %v1192_v3, 0.0  ;;  %v1680_v27 = vmax.f32 %v1528_v2, 0.0 }
 0x183   : > { %v4524_v14 = vpack.c.bf16 %v1681_v8, %v1679_v6 }
 0x184   : > { %v1360_v12 = vpop.f32.mrf.mxu2  ;;  %v1025_v17 = vpop.f32.mrf.mxu0 }
 0x185   : > { %v1361_v15 = vadd.f32 %v1360_v12, %v4420_v28  ;;  %v1529_v16 = vpop.f32.mrf.mxu3  ;;  %v1026_v23 = vadd.f32 %v1025_v17, %v4415_v19  ;;  %v1194_v24 = vpop.f32.mrf.mxu1  ;;  %v3355_v17 = vld [vmem:[%s4354_s21 + $0x130] sm:$0xf] }
 0x187   : > { %v1530_v25 = vadd.f32 %v1529_v16, %v1361_v15  ;;  %v1195_v26 = vadd.f32 %v1194_v24, %v1026_v23  ;;  %1064 = vmatmul.bf16.gmra.mxu0 %v3340_v13 }
 0x188   : > { %1233 = vmatmul.bf16.gmra.mxu1 %v3344_v22 }
 0x189   : > { %v1682_v29 = vmax.f32 %v1530_v25, 0.0  ;;  %1402 = vmatmul.bf16.gmra.mxu2 %v3340_v13  ;;  %v1683_v46 = vmax.f32 %v1195_v26, 0.0  ;;  %v3757_v25 = vld [vmem:[%s4354_s21 + $0x134] sm:$0xf]  ;;  %v3357_v26 = vld [vmem:[%s4354_s21 + $0x138] sm:$0xf0] }
 0x18a   : > { %1571 = vmatmul.bf16.gmra.mxu3 %v3344_v22  ;;  %v3758_v22 = vld [vmem:[%s4354_s21 + $0x134] sm:$0xf0] }
 0x18b   : > { %v4528_v30 = vpack.c.bf16 %v1682_v29, %v1680_v27  ;;  %v3356_v29 = vor.u32 %v3758_v22, %v3355_v17  ;;  %v3691_v22 = vld [vmem:[#allocation8 + $0xd0] sm:$0xf] }
 0x18c   : > { %v1363_v31 = vpop.f32.mrf.mxu2  ;;  %v1027_v36 = vpop.f32.mrf.mxu0 }
 0x18d   : > { %v1364_v33 = vadd.f32 %v1363_v31, %v4420_v28  ;;  %v1532_v35 = vpop.f32.mrf.mxu3  ;;  %v1028_v37 = vadd.f32 %v1027_v36, %v4415_v19  ;;  %v1196_v38 = vpop.f32.mrf.mxu1 }
 0x18f   : > { %v1533_v40 = vadd.f32 %v1532_v35, %v1364_v33  ;;  %v1197_v41 = vadd.f32 %v1196_v38, %v1028_v37  ;;  %v3360_v37 = vor.u32 %v3757_v25, %v3357_v26 }
 0x191   : > { %v1685_v47 = vmax.f32 %v1197_v41, 0.0  ;;  %v1684_v3 = vmax.f32 %v1533_v40, 0.0 }
 0x193   : > { %v4536_v53 = vpack.c.bf16 %v1685_v47, %v1683_v46  ;;  %v3825_v47 = vld [vmem:[#allocation8 + $0x54] sm:$0xf] }
 0x194   : > { %v1365_v50 = vpop.f32.mrf.mxu2  ;;  %v1030_v60 = vpop.f32.mrf.mxu0  ;;  %v3632_v49 = vor.u32 %v3825_v47, %v3629_v48 }
 0x195   : > { %v1366_v57 = vadd.f32 %v1365_v50, %v4420_v28  ;;  %v1534_v59 = vpop.f32.mrf.mxu3  ;;  %v1031_v62 = vadd.f32 %v1030_v60, %v4415_v19  ;;  %v1199_v63 = vpop.f32.mrf.mxu1 }
 0x196   : > { %2377 = vmatpush.bf16.msrb.mxu2 %v3632_v49 }
 0x197   : > { %v1535_v1 = vadd.f32 %v1534_v59, %v1366_v57  ;;  %v1200_v2 = vadd.f32 %v1199_v63, %v1031_v62  ;;  %1069 = vmatmul.bf16.gmra.mxu0 %v3348_v52 }
 0x198   : > { %1238 = vmatmul.bf16.gmra.mxu1 %v3352_v61 }
 0x199   : > { %v1686_v4 = vmax.f32 %v1535_v1, 0.0  ;;  %1407 = vmatmul.bf16.gmra.mxu2 %v3348_v52  ;;  %v1687_v23 = vmax.f32 %v1200_v2, 0.0  ;;  %v3363_v2 = vld [vmem:[%s4354_s21 + $0x140] sm:$0xf] }
 0x19a   : > { %1576 = vmatmul.bf16.gmra.mxu3 %v3352_v61 }
 0x19b   : > { %v4540_v5 = vpack.c.bf16 %v1686_v4, %v1684_v3  ;;  %v3760_v3 = vld [vmem:[%s4354_s21 + $0x144] sm:$0xf0]  ;;  %v3759_v4 = vld [vmem:[%s4354_s21 + $0x144] sm:$0xf] }
 0x19c   : > { %v1368_v6 = vpop.f32.mrf.mxu2  ;;  %v1032_v11 = vpop.f32.mrf.mxu0  ;;  %v3364_v25 = vor.u32 %v3760_v3, %v3363_v2  ;;  %v3761_v3 = vld [vmem:[%s4354_s21 + $0x154] sm:$0xf] }
 0x19d   : > { %v1369_v8 = vadd.f32 %v1368_v6, %v4420_v28  ;;  %v1537_v10 = vpop.f32.mrf.mxu3  ;;  %v1033_v12 = vadd.f32 %v1032_v11, %v4415_v19  ;;  %v1201_v13 = vpop.f32.mrf.mxu1  ;;  %v3365_v6 = vld [vmem:[%s4354_s21 + $0x148] sm:$0xf0] }
 0x19f   : > { %v1538_v15 = vadd.f32 %v1537_v10, %v1369_v8  ;;  %v1202_v16 = vadd.f32 %v1201_v13, %v1033_v12  ;;  %v3841_v8 = vld [vmem:[#allocation8 + $0xd4] sm:$0xf]  ;;  %v3693_v10 = vld [vmem:[#allocation8 + $0xd8] sm:$0xf0] }
 0x1a0   : > { %v3696_v13 = vor.u32 %v3841_v8, %v3693_v10 }
 0x1a1   : > { %v1689_v24 = vmax.f32 %v1202_v16, 0.0  ;;  %v1688_v45 = vmax.f32 %v1538_v15, 0.0  ;;  %v3627_v15 = vld [vmem:[#allocation8 + $0x50] sm:$0xf]  ;;  %v3826_v16 = vld [vmem:[#allocation8 + $0x54] sm:$0xf0] }
 0x1a2   : > { %v3628_v17 = vor.u32 %v3826_v16, %v3627_v15  ;;  %2546 = vmatpush.bf16.msrb.mxu3 %v3696_v13 }
 0x1a3   : > { %v4548_v31 = vpack.c.bf16 %v1689_v24, %v1687_v23  ;;  %v3842_v23 = vld [vmem:[#allocation8 + $0xd4] sm:$0xf0] }
 0x1a4   : > { %v1370_v27 = vpop.f32.mrf.mxu2  ;;  %v1035_v36 = vpop.f32.mrf.mxu0  ;;  %v3692_v26 = vor.u32 %v3842_v23, %v3691_v22  ;;  %2039 = vmatpush.bf16.msrb.mxu0 %v3628_v17 }
 0x1a5   : > { %v1371_v33 = vadd.f32 %v1370_v27, %v4420_v28  ;;  %v1539_v35 = vpop.f32.mrf.mxu3  ;;  %v1036_v38 = vadd.f32 %v1035_v36, %v4415_v19  ;;  %v1204_v40 = vpop.f32.mrf.mxu1  ;;  %v3368_v36 = vor.u32 %v3759_v4, %v3365_v6  ;;  %v3373_v4 = vld [vmem:[%s4354_s21 + $0x158] sm:$0xf0] }
 0x1a6   : > { %2208 = vmatpush.bf16.msrb.mxu1 %v3692_v26  ;;  %v3376_v15 = vor.u32 %v3761_v3, %v3373_v4 }
 0x1a7   : > { %v1540_v41 = vadd.f32 %v1539_v35, %v1371_v33  ;;  %v1205_v44 = vadd.f32 %v1204_v40, %v1036_v38  ;;  %1074 = vmatmul.bf16.gmra.mxu0 %v3356_v29 }
 0x1a8   : > { %1243 = vmatmul.bf16.gmra.mxu1 %v3360_v37 }
 0x1a9   : > { %v1690_v46 = vmax.f32 %v1540_v41, 0.0  ;;  %1412 = vmatmul.bf16.gmra.mxu2 %v3356_v29  ;;  %v1691_v11 = vmax.f32 %v1205_v44, 0.0 }
 0x1aa   : > { %1581 = vmatmul.bf16.gmra.mxu3 %v3360_v37 }
 0x1ab   : > { %v4552_v50 = vpack.c.bf16 %v1690_v46, %v1688_v45 }
 0x1ac   : > { %v1373_v52 = vpop.f32.mrf.mxu2  ;;  %v1037_v60 = vpop.f32.mrf.mxu0 }
 0x1ad   : > { %v1374_v57 = vadd.f32 %v1373_v52, %v4420_v28  ;;  %v1542_v59 = vpop.f32.mrf.mxu3  ;;  %v1038_v61 = vadd.f32 %v1037_v60, %v4415_v19  ;;  %v1206_v62 = vpop.f32.mrf.mxu1 }
 0x1af   : > { %v1543_v63 = vadd.f32 %v1542_v59, %v1374_v57  ;;  %v1207_v1 = vadd.f32 %v1206_v62, %v1038_v61  ;;  %v3371_v62 = vld [vmem:[%s4354_s21 + $0x150] sm:$0xf] }
 0x1b1   : > { %v1693_v12 = vmax.f32 %v1207_v1, 0.0  ;;  %v1692_v44 = vmax.f32 %v1543_v63, 0.0  ;;  %v3762_v63 = vld [vmem:[%s4354_s21 + $0x154] sm:$0xf0] }
 0x1b2   : > { %v3372_v8 = vor.u32 %v3762_v63, %v3371_v62 }
 0x1b3   : > { %v4560_v27 = vpack.c.bf16 %v1693_v12, %v1691_v11 }
 0x1b4   : > { %v1375_v24 = vpop.f32.mrf.mxu2  ;;  %v1040_v35 = vpop.f32.mrf.mxu0 }
 0x1b5   : > { %v1376_v29 = vadd.f32 %v1375_v24, %v4420_v28  ;;  %v1544_v33 = vpop.f32.mrf.mxu3  ;;  %v1041_v37 = vadd.f32 %v1040_v35, %v4415_v19  ;;  %v1209_v38 = vpop.f32.mrf.mxu1 }
 0x1b7   : > { %v1545_v40 = vadd.f32 %v1544_v33, %v1376_v29  ;;  %v1210_v41 = vadd.f32 %v1209_v38, %v1041_v37  ;;  %1079 = vmatmul.bf16.gmra.mxu0 %v3364_v25 }
 0x1b8   : > { %1248 = vmatmul.bf16.gmra.mxu1 %v3368_v36 }
 0x1b9   : > { %v1694_v45 = vmax.f32 %v1545_v40, 0.0  ;;  %1417 = vmatmul.bf16.gmra.mxu2 %v3364_v25  ;;  %v1695_v1 = vmax.f32 %v1210_v41, 0.0 }
 0x1ba   : > { %1586 = vmatmul.bf16.gmra.mxu3 %v3368_v36 }
 0x1bb   : > { %v4564_v46 = vpack.c.bf16 %v1694_v45, %v1692_v44  ;;  %v3379_v44 = vld [vmem:[%s4354_s21 + $0x160] sm:$0xf]  ;;  %v3764_v45 = vld [vmem:[%s4354_s21 + $0x164] sm:$0xf0] }
 0x1bc   : > { %v1378_v47 = vpop.f32.mrf.mxu2  ;;  %v1042_v52 = vpop.f32.mrf.mxu0 }
 0x1bd   : > { %v1379_v48 = vadd.f32 %v1378_v47, %v4420_v28  ;;  %v1547_v49 = vpop.f32.mrf.mxu3  ;;  %v1043_v57 = vadd.f32 %v1042_v52, %v4415_v19  ;;  %v1211_v59 = vpop.f32.mrf.mxu1  ;;  %v3381_v52 = vld [vmem:[%s4354_s21 + $0x168] sm:$0xf0] }
 0x1bf   : > { %v1548_v60 = vadd.f32 %v1547_v49, %v1379_v48  ;;  %v1212_v61 = vadd.f32 %v1211_v59, %v1043_v57  ;;  %v3763_v49 = vld [vmem:[%s4354_s21 + $0x164] sm:$0xf]  ;;  %v3380_v59 = vor.u32 %v3764_v45, %v3379_v44 }
 0x1c1   : > { %v1697_v2 = vmax.f32 %v1212_v61, 0.0  ;;  %v1696_v24 = vmax.f32 %v1548_v60, 0.0 }
 0x1c3   : > { %v4572_v10 = vpack.c.bf16 %v1697_v2, %v1695_v1  ;;  %v3384_v1 = vor.u32 %v3763_v49, %v3381_v52 }
 0x1c4   : > { %v1380_v6 = vpop.f32.mrf.mxu2  ;;  %v1045_v13 = vpop.f32.mrf.mxu0 }
 0x1c5   : > { %v1381_v11 = vadd.f32 %v1380_v6, %v4420_v28  ;;  %v1549_v12 = vpop.f32.mrf.mxu3  ;;  %v1046_v16 = vadd.f32 %v1045_v13, %v4415_v19  ;;  %v1214_v17 = vpop.f32.mrf.mxu1 }
 0x1c7   : > { %v1550_v22 = vadd.f32 %v1549_v12, %v1381_v11  ;;  %v1215_v23 = vadd.f32 %v1214_v17, %v1046_v16  ;;  %1084 = vmatmul.bf16.gmra.mxu0 %v3372_v8 }
 0x1c8   : > { %1253 = vmatmul.bf16.gmra.mxu1 %v3376_v15 }
 0x1c9   : > { %v1698_v25 = vmax.f32 %v1550_v22, 0.0  ;;  %1422 = vmatmul.bf16.gmra.mxu2 %v3372_v8  ;;  %v1699_v47 = vmax.f32 %v1215_v23, 0.0 }
 0x1ca   : > { %1591 = vmatmul.bf16.gmra.mxu3 %v3376_v15 }
 0x1cb   : > { %v4576_v26 = vpack.c.bf16 %v1698_v25, %v1696_v24 }
 0x1cc   : > { %v1383_v29 = vpop.f32.mrf.mxu2  ;;  %v1047_v36 = vpop.f32.mrf.mxu0 }
 0x1cd   : > { %v1384_v33 = vadd.f32 %v1383_v29, %v4420_v28  ;;  %v1552_v35 = vpop.f32.mrf.mxu3  ;;  %v1048_v37 = vadd.f32 %v1047_v36, %v4415_v19  ;;  %v1216_v38 = vpop.f32.mrf.mxu1  ;;  %v3387_v29 = vld [vmem:[%s4354_s21 + $0x170] sm:$0xf] }
 0x1cf   : > { %v1553_v40 = vadd.f32 %v1552_v35, %v1384_v33  ;;  %v1217_v41 = vadd.f32 %v1216_v38, %v1048_v37  ;;  %v3766_v33 = vld [vmem:[%s4354_s21 + $0x174] sm:$0xf0]  ;;  %v3765_v37 = vld [vmem:[%s4354_s21 + $0x174] sm:$0xf]  ;;  %v3389_v38 = vld [vmem:[%s4354_s21 + $0x178] sm:$0xf0] }
 0x1d0   : > { %v3392_v49 = vor.u32 %v3765_v37, %v3389_v38 }
 0x1d1   : > { %v1701_v48 = vmax.f32 %v1217_v41, 0.0  ;;  %v1700_v8 = vmax.f32 %v1553_v40, 0.0  ;;  %v3388_v41 = vor.u32 %v3766_v33, %v3387_v29  ;;  %v3397_v29 = vld [vmem:[%s4354_s21 + $0x188] sm:$0xf0] }
 0x1d2   : > { %v3839_v33 = vld [vmem:[#allocation8 + $0xc4] sm:$0xf] }
 0x1d3   : > { %v4584_v60 = vpack.c.bf16 %v1701_v48, %v1699_v47 }
 0x1d4   : > { %v1385_v57 = vpop.f32.mrf.mxu2  ;;  %v1050_v63 = vpop.f32.mrf.mxu0 }
 0x1d5   : > { %v1386_v61 = vadd.f32 %v1385_v57, %v4420_v28  ;;  %v1554_v62 = vpop.f32.mrf.mxu3  ;;  %v1051_v2 = vadd.f32 %v1050_v63, %v4415_v19  ;;  %v1219_v3 = vpop.f32.mrf.mxu1 }
 0x1d7   : > { %v1555_v4 = vadd.f32 %v1554_v62, %v1386_v61  ;;  %v1220_v6 = vadd.f32 %v1219_v3, %v1051_v2  ;;  %1089 = vmatmul.bf16.gmra.mxu0 %v3380_v59  ;;  %v3621_v2 = vld [vmem:[#allocation8 + $0x48] sm:$0xf0] }
 0x1d8   : > { %1258 = vmatmul.bf16.gmra.mxu1 %v3384_v1 }
 0x1d9   : > { %v1702_v11 = vmax.f32 %v1555_v4, 0.0  ;;  %1427 = vmatmul.bf16.gmra.mxu2 %v3380_v59  ;;  %v1703_v35 = vmax.f32 %v1220_v6, 0.0 }
 0x1da   : > { %1596 = vmatmul.bf16.gmra.mxu3 %v3384_v1  ;;  %v3823_v1 = vld [vmem:[#allocation8 + $0x44] sm:$0xf] }
 0x1db   : > { %v4588_v12 = vpack.c.bf16 %v1702_v11, %v1700_v8  ;;  %v3624_v3 = vor.u32 %v3823_v1, %v3621_v2 }
 0x1dc   : > { %v1388_v13 = vpop.f32.mrf.mxu2  ;;  %v1052_v17 = vpop.f32.mrf.mxu0 }
 0x1dd   : > { %v1389_v15 = vadd.f32 %v1388_v13, %v4420_v28  ;;  %v1557_v16 = vpop.f32.mrf.mxu3  ;;  %v1053_v22 = vadd.f32 %v1052_v17, %v4415_v19  ;;  %v1221_v23 = vpop.f32.mrf.mxu1  ;;  %2378 = vmatpush.bf16.msrb.mxu2 %v3624_v3 }
 0x1df   : > { %v1558_v24 = vadd.f32 %v1557_v16, %v1389_v15  ;;  %v1222_v25 = vadd.f32 %v1221_v23, %v1053_v22  ;;  %v3395_v23 = vld [vmem:[%s4354_s21 + $0x180] sm:$0xf] }
 0x1e1   : > { %v1705_v36 = vmax.f32 %v1222_v25, 0.0  ;;  %v1704_v62 = vmax.f32 %v1558_v24, 0.0  ;;  %v3768_v24 = vld [vmem:[%s4354_s21 + $0x184] sm:$0xf0]  ;;  %v3767_v25 = vld [vmem:[%s4354_s21 + $0x184] sm:$0xf] }
 0x1e2   : > { %v3400_v2 = vor.u32 %v3767_v25, %v3397_v29 }
 0x1e3   : > { %v4596_v44 = vpack.c.bf16 %v1705_v36, %v1703_v35  ;;  %v3685_v35 = vld [vmem:[#allocation8 + $0xc8] sm:$0xf0] }
 0x1e4   : > { %v1390_v40 = vpop.f32.mrf.mxu2  ;;  %v1055_v48 = vpop.f32.mrf.mxu0  ;;  %v3688_v38 = vor.u32 %v3839_v33, %v3685_v35 }
 0x1e5   : > { %v1391_v45 = vadd.f32 %v1390_v40, %v4420_v28  ;;  %v1559_v47 = vpop.f32.mrf.mxu3  ;;  %v1056_v52 = vadd.f32 %v1055_v48, %v4415_v19  ;;  %v1224_v57 = vpop.f32.mrf.mxu1  ;;  %v3619_v40 = vld [vmem:[#allocation8 + $0x40] sm:$0xf]  ;;  %v3840_v48 = vld [vmem:[#allocation8 + $0xc4] sm:$0xf0] }
 0x1e6   : > { %2547 = vmatpush.bf16.msrb.mxu3 %v3688_v38 }
 0x1e7   : > { %v1560_v59 = vadd.f32 %v1559_v47, %v1391_v45  ;;  %v1225_v61 = vadd.f32 %v1224_v57, %v1056_v52  ;;  %1094 = vmatmul.bf16.gmra.mxu0 %v3388_v41  ;;  %v3683_v47 = vld [vmem:[#allocation8 + $0xc0] sm:$0xf]  ;;  %v3396_v52 = vor.u32 %v3768_v24, %v3395_v23 }
 0x1e8   : > { %1263 = vmatmul.bf16.gmra.mxu1 %v3392_v49  ;;  %v3684_v57 = vor.u32 %v3840_v48, %v3683_v47 }
 0x1e9   : > { %v1706_v63 = vmax.f32 %v1560_v59, 0.0  ;;  %1432 = vmatmul.bf16.gmra.mxu2 %v3388_v41  ;;  %v1707_v36 = vmax.f32 %v1225_v61, 0.0  ;;  %v3824_v41 = vld [vmem:[#allocation8 + $0x44] sm:$0xf0] }
 0x1ea   : > { %1601 = vmatmul.bf16.gmra.mxu3 %v3392_v49  ;;  %v3620_v45 = vor.u32 %v3824_v41, %v3619_v40  ;;  %2209 = vmatpush.bf16.msrb.mxu1 %v3684_v57  ;;  %v3769_v40 = vld [vmem:[%s4354_s21 + $0x194] sm:$0xf]  ;;  %v3405_v41 = vld [vmem:[%s4354_s21 + $0x198] sm:$0xf0] }
 0x1eb   : > { %v4600_v4 = vpack.c.bf16 %v1706_v63, %v1704_v62 }
 0x1ec   : > { %v1393_v6 = vpop.f32.mrf.mxu2  ;;  %v1057_v13 = vpop.f32.mrf.mxu0  ;;  %2040 = vmatpush.bf16.msrb.mxu0 %v3620_v45 }
 0x1ed   : > { %v1394_v8 = vadd.f32 %v1393_v6, %v4420_v28  ;;  %v1562_v11 = vpop.f32.mrf.mxu3  ;;  %v1058_v15 = vadd.f32 %v1057_v13, %v4415_v19  ;;  %v1226_v16 = vpop.f32.mrf.mxu1 }
 0x1ef   : > { %v1563_v17 = vadd.f32 %v1562_v11, %v1394_v8  ;;  %v1227_v22 = vadd.f32 %v1226_v16, %v1058_v15 }
 0x1f1   : > { %v1709_v37 = vmax.f32 %v1227_v22, 0.0  ;;  %v1708_v11 = vmax.f32 %v1563_v17, 0.0  ;;  %v3770_v17 = vld [vmem:[%s4354_s21 + $0x194] sm:$0xf0] }
 0x1f3   : > { %v4608_v59 = vpack.c.bf16 %v1709_v37, %v1707_v36  ;;  %v3403_v36 = vld [vmem:[%s4354_s21 + $0x190] sm:$0xf] }
 0x1f4   : > { %v1395_v49 = vpop.f32.mrf.mxu2  ;;  %v1060_v1 = vpop.f32.mrf.mxu0  ;;  %v3404_v47 = vor.u32 %v3770_v17, %v3403_v36 }
 0x1f5   : > { %v1396_v62 = vadd.f32 %v1395_v49, %v4420_v28  ;;  %v1564_v63 = vpop.f32.mrf.mxu3  ;;  %v1061_v61 = vadd.f32 %v1060_v1, %v4415_v19  ;;  %v1229_v3 = vpop.f32.mrf.mxu1 }
 0x1f7   : > { %v1565_v6 = vadd.f32 %v1564_v63, %v1396_v62  ;;  %v1230_v8 = vadd.f32 %v1229_v3, %v1061_v61  ;;  %1099 = vmatmul.bf16.gmra.mxu0 %v3396_v52  ;;  %v3408_v62 = vor.u32 %v3769_v40, %v3405_v41 }
 0x1f8   : > { %1268 = vmatmul.bf16.gmra.mxu1 %v3400_v2 }
 0x1f9   : > { %v1710_v13 = vmax.f32 %v1565_v6, 0.0  ;;  %1437 = vmatmul.bf16.gmra.mxu2 %v3396_v52  ;;  %v1711_v37 = vmax.f32 %v1230_v8, 0.0 }
 0x1fa   : > { %1606 = vmatmul.bf16.gmra.mxu3 %v3400_v2 }
 0x1fb   : > { %v4612_v15 = vpack.c.bf16 %v1710_v13, %v1708_v11 }
 0x1fc   : > { %v1398_v16 = vpop.f32.mrf.mxu2  ;;  %v1062_v24 = vpop.f32.mrf.mxu0 }
 0x1fd   : > { %v1399_v22 = vadd.f32 %v1398_v16, %v4420_v28  ;;  %v1567_v23 = vpop.f32.mrf.mxu3  ;;  %v1063_v25 = vadd.f32 %v1062_v24, %v4415_v19  ;;  %v1231_v29 = vpop.f32.mrf.mxu1 }
 0x1ff   : > { %v1568_v33 = vadd.f32 %v1567_v23, %v1399_v22  ;;  %v1232_v35 = vadd.f32 %v1231_v29, %v1063_v25 }
 0x201   : > { %v1713_v38 = vmax.f32 %v1232_v35, 0.0  ;;  %v1712_v3 = vmax.f32 %v1568_v33, 0.0  ;;  %v3411_v35 = vld [vmem:[%s4354_s21 + $0x1a0] sm:$0xf]  ;;  %v3772_v33 = vld [vmem:[%s4354_s21 + $0x1a4] sm:$0xf0] }
 0x202   : > { %v3412_v41 = vor.u32 %v3772_v33, %v3411_v35  ;;  %v3419_v33 = vld [vmem:[%s4354_s21 + $0x1b0] sm:$0xf] }
 0x203   : > { %v4620_v48 = vpack.c.bf16 %v1713_v38, %v1711_v37  ;;  %v3771_v37 = vld [vmem:[%s4354_s21 + $0x1a4] sm:$0xf]  ;;  %v3413_v38 = vld [vmem:[%s4354_s21 + $0x1a8] sm:$0xf0] }
 0x204   : > { %v1400_v45 = vpop.f32.mrf.mxu2  ;;  %v1065_v57 = vpop.f32.mrf.mxu0 }
 0x205   : > { %v1401_v49 = vadd.f32 %v1400_v45, %v4420_v28  ;;  %v1569_v52 = vpop.f32.mrf.mxu3  ;;  %v1066_v63 = vadd.f32 %v1065_v57, %v4415_v19  ;;  %v1234_v1 = vpop.f32.mrf.mxu1  ;;  %v3416_v57 = vor.u32 %v3771_v37, %v3413_v38  ;;  %v3773_v37 = vld [vmem:[%s4354_s21 + $0x1b4] sm:$0xf]  ;;  %v3421_v38 = vld [vmem:[%s4354_s21 + $0x1b8] sm:$0xf0] }
 0x207   : > { %v1570_v2 = vadd.f32 %v1569_v52, %v1401_v49  ;;  %v1235_v61 = vadd.f32 %v1234_v1, %v1066_v63  ;;  %1104 = vmatmul.bf16.gmra.mxu0 %v3404_v47 }
 0x208   : > { %1273 = vmatmul.bf16.gmra.mxu1 %v3408_v62 }
 0x209   : > { %v1714_v6 = vmax.f32 %v1570_v2, 0.0  ;;  %1442 = vmatmul.bf16.gmra.mxu2 %v3404_v47  ;;  %v1715_v36 = vmax.f32 %v1235_v61, 0.0 }
 0x20a   : > { %1611 = vmatmul.bf16.gmra.mxu3 %v3408_v62 }
 0x20b   : > { %v4624_v8 = vpack.c.bf16 %v1714_v6, %v1712_v3 }
 0x20c   : > { %v1403_v11 = vpop.f32.mrf.mxu2  ;;  %v1067_v22 = vpop.f32.mrf.mxu0 }
 0x20d   : > { %v1404_v13 = vadd.f32 %v1403_v11, %v4420_v28  ;;  %v1572_v16 = vpop.f32.mrf.mxu3  ;;  %v1068_v23 = vadd.f32 %v1067_v22, %v4415_v19  ;;  %v1236_v24 = vpop.f32.mrf.mxu1 }
 0x20f   : > { %v1573_v25 = vadd.f32 %v1572_v16, %v1404_v13  ;;  %v1237_v29 = vadd.f32 %v1236_v24, %v1068_v23 }
 0x211   : > { %v1717_v17 = vmax.f32 %v1237_v29, 0.0  ;;  %v1716_v61 = vmax.f32 %v1573_v25, 0.0  ;;  %v3774_v25 = vld [vmem:[%s4354_s21 + $0x1b4] sm:$0xf0] }
 0x213   : > { %v4632_v45 = vpack.c.bf16 %v1717_v17, %v1715_v36 }
 0x214   : > { %v1405_v40 = vpop.f32.mrf.mxu2  ;;  %v1070_v52 = vpop.f32.mrf.mxu0 }
 0x215   : > { %5304 = vst [vmem:[#allocation20_spill] sm:$0xff] %v4632_v45  ;;  %v1406_v47 = vadd.f32 %v1405_v40, %v4420_v28  ;;  %v1574_v49 = vpop.f32.mrf.mxu3  ;;  %v1071_v62 = vadd.f32 %v1070_v52, %v4415_v19  ;;  %v1239_v63 = vpop.f32.mrf.mxu1 }
 0x217   : > { %v1575_v1 = vadd.f32 %v1574_v49, %v1406_v47  ;;  %v1240_v2 = vadd.f32 %v1239_v63, %v1071_v62  ;;  %1109 = vmatmul.bf16.gmra.mxu0 %v3412_v41  ;;  %v3424_v62 = vor.u32 %v3773_v37, %v3421_v38  ;;  %v3427_v38 = vld [vmem:[%s4354_s21 + $0x1c0] sm:$0xf] }
 0x218   : > { %1278 = vmatmul.bf16.gmra.mxu1 %v3416_v57 }
 0x219   : > { %v1718_v3 = vmax.f32 %v1575_v1, 0.0  ;;  %1447 = vmatmul.bf16.gmra.mxu2 %v3412_v41  ;;  %v1719_v36 = vmax.f32 %v1240_v2, 0.0  ;;  %v3420_v41 = vor.u32 %v3774_v25, %v3419_v33 }
 0x21a   : > { %1616 = vmatmul.bf16.gmra.mxu3 %v3416_v57 }
 0x21b   : > { %v4636_v6 = vpack.c.bf16 %v1718_v3, %v1716_v61 }
 0x21c   : > { %v1408_v11 = vpop.f32.mrf.mxu2  ;;  %v1072_v22 = vpop.f32.mrf.mxu0 }
 0x21d   : > { %5305 = vst [vmem:[#allocation21_spill] sm:$0xff] %v4636_v6  ;;  %v1409_v13 = vadd.f32 %v1408_v11, %v4420_v28  ;;  %v1577_v16 = vpop.f32.mrf.mxu3  ;;  %v1073_v23 = vadd.f32 %v1072_v22, %v4415_v19  ;;  %v1241_v24 = vpop.f32.mrf.mxu1  ;;  %v3651_v6 = vld [vmem:[#allocation8 + $0x80] sm:$0xf] }
 0x21f   : > { %v1578_v29 = vadd.f32 %v1577_v16, %v1409_v13  ;;  %v1242_v35 = vadd.f32 %v1241_v24, %v1073_v23  ;;  %v3821_v13 = vld [vmem:[#allocation8 + $0x34] sm:$0xf]  ;;  %v3613_v16 = vld [vmem:[#allocation8 + $0x38] sm:$0xf0] }
 0x220   : > { %v3616_v22 = vor.u32 %v3821_v13, %v3613_v16  ;;  %v3675_v13 = vld [vmem:[#allocation8 + $0xb0] sm:$0xf]  ;;  %v3838_v16 = vld [vmem:[#allocation8 + $0xb4] sm:$0xf0] }
 0x221   : > { %v1721_v17 = vmax.f32 %v1242_v35, 0.0  ;;  %v1720_v11 = vmax.f32 %v1578_v29, 0.0 }
 0x222   : > { %2379 = vmatpush.bf16.msrb.mxu2 %v3616_v22 }
 0x223   : > { %v4644_v47 = vpack.c.bf16 %v1721_v17, %v1719_v36 }
 0x224   : > { %v1410_v40 = vpop.f32.mrf.mxu2  ;;  %v1075_v57 = vpop.f32.mrf.mxu0 }
 0x225   : > { %5306 = vst [vmem:[#allocation22_spill] sm:$0xff] %v4644_v47  ;;  %v1411_v49 = vadd.f32 %v1410_v40, %v4420_v28  ;;  %v1579_v52 = vpop.f32.mrf.mxu3  ;;  %v1076_v63 = vadd.f32 %v1075_v57, %v4415_v19  ;;  %v1244_v1 = vpop.f32.mrf.mxu1  ;;  %v3776_v40 = vld [vmem:[%s4354_s21 + $0x1c4] sm:$0xf0]  ;;  %v3677_v57 = vld [vmem:[#allocation8 + $0xb8] sm:$0xf0] }
 0x226   : > { %v3833_v47 = vld [vmem:[#allocation8 + $0x94] sm:$0xf] }
 0x227   : > { %v1580_v61 = vadd.f32 %v1579_v52, %v1411_v49  ;;  %v1245_v3 = vadd.f32 %v1244_v1, %v1076_v63  ;;  %1114 = vmatmul.bf16.gmra.mxu0 %v3420_v41  ;;  %v3429_v49 = vld [vmem:[%s4354_s21 + $0x1c8] sm:$0xf0]  ;;  %v3837_v52 = vld [vmem:[#allocation8 + $0xb4] sm:$0xf] }
 0x228   : > { %1283 = vmatmul.bf16.gmra.mxu1 %v3424_v62  ;;  %v3680_v1 = vor.u32 %v3837_v52, %v3677_v57 }
 0x229   : > { %v1722_v2 = vmax.f32 %v1580_v61, 0.0  ;;  %1452 = vmatmul.bf16.gmra.mxu2 %v3420_v41  ;;  %v3775_v41 = vld [vmem:[%s4354_s21 + $0x1c4] sm:$0xf]  ;;  %v3611_v61 = vld [vmem:[#allocation8 + $0x30] sm:$0xf] }
 0x22a   : > { %1621 = vmatmul.bf16.gmra.mxu3 %v3424_v62  ;;  %v1723_v62 = vmax.f32 %v1245_v3, 0.0 }
 0x22b   : > { %v4648_v23 = vpack.c.bf16 %v1722_v2, %v1720_v11  ;;  %v3822_v11 = vld [vmem:[#allocation8 + $0x34] sm:$0xf0]  ;;  %2548 = vmatpush.bf16.msrb.mxu3 %v3680_v1 }
 0x22c   : > { %v1413_v24 = vpop.f32.mrf.mxu2  ;;  %v1077_v25 = vpop.f32.mrf.mxu0  ;;  %v3612_v2 = vor.u32 %v3822_v11, %v3611_v61 }
 0x22d   : > { %5307 = vst [vmem:[#allocation23_spill] sm:$0xff] %v4648_v23  ;;  %v1414_v35 = vadd.f32 %v1413_v24, %v4420_v28  ;;  %v1582_v33 = vpop.f32.mrf.mxu3  ;;  %v1078_v29 = vadd.f32 %v1077_v25, %v4415_v19  ;;  %v1246_v36 = vpop.f32.mrf.mxu1  ;;  %v3428_v24 = vor.u32 %v3776_v40, %v3427_v38  ;;  %v3676_v25 = vor.u32 %v3838_v16, %v3675_v13  ;;  %v3435_v16 = vld [vmem:[%s4354_s21 + $0x1d0] sm:$0xf] }
 0x22e   : > { %v3432_v23 = vor.u32 %v3775_v41, %v3429_v49  ;;  %2041 = vmatpush.bf16.msrb.mxu0 %v3612_v2 }
 0x22f   : > { %v1583_v17 = vadd.f32 %v1582_v33, %v1414_v35  ;;  %v1247_v37 = vadd.f32 %v1246_v36, %v1078_v29  ;;  %2210 = vmatpush.bf16.msrb.mxu1 %v3676_v25 }
 0x231   : > { %v1725_v63 = vmax.f32 %v1247_v37, 0.0  ;;  %v1724_v38 = vmax.f32 %v1583_v17, 0.0  ;;  %v3778_v17 = vld [vmem:[%s4354_s21 + $0x1d4] sm:$0xf0] }
 0x233   : > { %v4656_v35 = vpack.c.bf16 %v1725_v63, %v1723_v62 }
 0x234   : > { %v1415_v22 = vpop.f32.mrf.mxu2  ;;  %v1080_v36 = vpop.f32.mrf.mxu0 }
 0x235   : > { %5308 = vst [vmem:[#allocation24_spill] sm:$0xff] %v4656_v35  ;;  %v1416_v33 = vadd.f32 %v1415_v22, %v4420_v28  ;;  %v1584_v29 = vpop.f32.mrf.mxu3  ;;  %v1081_v3 = vadd.f32 %v1080_v36, %v4415_v19  ;;  %v1249_v37 = vpop.f32.mrf.mxu1 }
 0x237   : > { %v1585_v52 = vadd.f32 %v1584_v29, %v1416_v33  ;;  %v1250_v57 = vadd.f32 %v1249_v37, %v1081_v3  ;;  %1119 = vmatmul.bf16.gmra.mxu0 %v3428_v24  ;;  %v3777_v33 = vld [vmem:[%s4354_s21 + $0x1d4] sm:$0xf] }
 0x238   : > { %1288 = vmatmul.bf16.gmra.mxu1 %v3432_v23 }
 0x239   : > { %v1726_v40 = vmax.f32 %v1585_v52, 0.0  ;;  %1457 = vmatmul.bf16.gmra.mxu2 %v3428_v24  ;;  %v1727_v22 = vmax.f32 %v1250_v57, 0.0  ;;  %v3437_v24 = vld [vmem:[%s4354_s21 + $0x1d8] sm:$0xf0] }
 0x23a   : > { %1626 = vmatmul.bf16.gmra.mxu3 %v3432_v23  ;;  %v3436_v23 = vor.u32 %v3778_v17, %v3435_v16  ;;  %v3820_v16 = vld [vmem:[#allocation8 + $0x24] sm:$0xf0]  ;;  %v3667_v17 = vld [vmem:[#allocation8 + $0xa0] sm:$0xf] }
 0x23b   : > { %v4660_v62 = vpack.c.bf16 %v1726_v40, %v1724_v38  ;;  %v3440_v38 = vor.u32 %v3777_v33, %v3437_v24 }
 0x23c   : > { %v1418_v41 = vpop.f32.mrf.mxu2  ;;  %v1082_v1 = vpop.f32.mrf.mxu0 }
 0x23d   : > { %5309 = vst [vmem:[#allocation25_spill] sm:$0xff] %v4660_v62  ;;  %v1419_v49 = vadd.f32 %v1418_v41, %v4420_v28  ;;  %v1587_v63 = vpop.f32.mrf.mxu3  ;;  %v1083_v61 = vadd.f32 %v1082_v1, %v4415_v19  ;;  %v1251_v11 = vpop.f32.mrf.mxu1  ;;  %v3659_v62 = vld [vmem:[#allocation8 + $0x90] sm:$0xf] }
 0x23f   : > { %v1588_v2 = vadd.f32 %v1587_v63, %v1419_v49  ;;  %v1252_v13 = vadd.f32 %v1251_v11, %v1083_v61 }
 0x241   : > { %v1729_v25 = vmax.f32 %v1252_v13, 0.0  ;;  %v1728_v1 = vmax.f32 %v1588_v2, 0.0  ;;  %v3603_v13 = vld [vmem:[#allocation8 + $0x20] sm:$0xf]  ;;  %v3819_v2 = vld [vmem:[#allocation8 + $0x24] sm:$0xf] }
 0x242   : > { %v3604_v24 = vor.u32 %v3820_v16, %v3603_v13  ;;  %v3779_v13 = vld [vmem:[%s4354_s21 + $0x1e4] sm:$0xf]  ;;  %v3595_v16 = vld [vmem:[#allocation8 + $0x10] sm:$0xf] }
 0x243   : > { %v4668_v36 = vpack.c.bf16 %v1729_v25, %v1727_v22 }
 0x244   : > { %v1420_v29 = vpop.f32.mrf.mxu2  ;;  %v1085_v52 = vpop.f32.mrf.mxu0  ;;  %2042 = vmatpush.bf16.msrb.mxu0 %v3604_v24 }
 0x245   : > { %5310 = vst [vmem:[#allocation26_spill] sm:$0xff] %v4668_v36  ;;  %v1421_v3 = vadd.f32 %v1420_v29, %v4420_v28  ;;  %v1589_v37 = vpop.f32.mrf.mxu3  ;;  %v1086_v40 = vadd.f32 %v1085_v52, %v4415_v19  ;;  %v1254_v41 = vpop.f32.mrf.mxu1  ;;  %v3836_v29 = vld [vmem:[#allocation8 + $0xa4] sm:$0xf0]  ;;  %v3818_v36 = vld [vmem:[#allocation8 + $0x14] sm:$0xf0] }
 0x246   : > { %v3668_v52 = vor.u32 %v3836_v29, %v3667_v17  ;;  %v3596_v17 = vor.u32 %v3818_v36, %v3595_v16  ;;  %v3834_v29 = vld [vmem:[#allocation8 + $0x94] sm:$0xf0]  ;;  %v3832_v16 = vld [vmem:[#allocation8 + $0x84] sm:$0xf0] }
 0x247   : > { %v1590_v49 = vadd.f32 %v1589_v37, %v1421_v3  ;;  %v1255_v63 = vadd.f32 %v1254_v41, %v1086_v40  ;;  %1124 = vmatmul.bf16.gmra.mxu0 %v3436_v23  ;;  %v3605_v3 = vld [vmem:[#allocation8 + $0x28] sm:$0xf0]  ;;  %v3835_v40 = vld [vmem:[#allocation8 + $0xa4] sm:$0xf] }
 0x248   : > { %1293 = vmatmul.bf16.gmra.mxu1 %v3440_v38  ;;  %v3669_v41 = vld [vmem:[#allocation8 + $0xa8] sm:$0xf0]  ;;  %2043 = vmatpush.bf16.msrb.mxu0 %v3596_v17  ;;  %v3815_v17 = vld [vmem:[#allocation8 + $0x4] sm:$0xf] }
 0x249   : > { %v1730_v57 = vmax.f32 %v1590_v49, 0.0  ;;  %1462 = vmatmul.bf16.gmra.mxu2 %v3436_v23  ;;  %2211 = vmatpush.bf16.msrb.mxu1 %v3668_v52 }
 0x24a   : > { %1631 = vmatmul.bf16.gmra.mxu3 %v3440_v38  ;;  %v3608_v38 = vor.u32 %v3819_v2, %v3605_v3  ;;  %v3817_v2 = vld [vmem:[#allocation8 + $0x14] sm:$0xf]  ;;  %v1731_v3 = vmax.f32 %v1255_v63, 0.0 }
 0x24b   : > { %v4672_v61 = vpack.c.bf16 %v1730_v57, %v1728_v1  ;;  %v3443_v1 = vld [vmem:[%s4354_s21 + $0x1e0] sm:$0xf]  ;;  %v3780_v57 = vld [vmem:[%s4354_s21 + $0x1e4] sm:$0xf0] }
 0x24c   : > { %v1423_v11 = vpop.f32.mrf.mxu2  ;;  %v1087_v33 = vpop.f32.mrf.mxu0  ;;  %2380 = vmatpush.bf16.msrb.mxu2 %v3608_v38  ;;  %v3587_v38 = vld [vmem:[#allocation8] sm:$0xf] }
 0x24d   : > { %5311 = vst [vmem:[#allocation27_spill] sm:$0xff] %v4672_v61  ;;  %v1424_v22 = vadd.f32 %v1423_v11, %v4420_v28  ;;  %v1592_v25 = vpop.f32.mrf.mxu3  ;;  %v1088_v23 = vadd.f32 %v1087_v33, %v4415_v19  ;;  %v1256_v37 = vpop.f32.mrf.mxu1  ;;  %v3672_v11 = vor.u32 %v3835_v40, %v3669_v41  ;;  %v3445_v33 = vld [vmem:[%s4354_s21 + $0x1e8] sm:$0xf0]  ;;  %v3661_v40 = vld [vmem:[#allocation8 + $0x98] sm:$0xf0] }
 0x24e   : > { %v3664_v52 = vor.u32 %v3833_v47, %v3661_v40  ;;  %v3816_v41 = vld [vmem:[#allocation8 + $0x4] sm:$0xf0]  ;;  %v3652_v47 = vor.u32 %v3832_v16, %v3651_v6  ;;  %v3781_v16 = vld [vmem:[%s4354_s21 + $0x1f4] sm:$0xf] }
 0x24f   : > { %v4676_v49 = vadd.f32 %v1592_v25, %v1424_v22  ;;  %v1257_v61 = vadd.f32 %v1256_v37, %v1088_v23  ;;  %2549 = vmatpush.bf16.msrb.mxu3 %v3672_v11  ;;  %v3660_v22 = vor.u32 %v3834_v29, %v3659_v62  ;;  %v3597_v25 = vld [vmem:[#allocation8 + $0x18] sm:$0xf0]  ;;  %v3444_v37 = vor.u32 %v3780_v57, %v3443_v1  ;;  %v3589_v29 = vld [vmem:[#allocation8 + $0x8] sm:$0xf0] }
 0x250   : > { %v3600_v24 = vor.u32 %v3817_v2, %v3597_v25  ;;  %v3588_v62 = vor.u32 %v3816_v41, %v3587_v38  ;;  %v3592_v57 = vor.u32 %v3815_v17, %v3589_v29  ;;  %v3653_v25 = vld [vmem:[#allocation8 + $0x88] sm:$0xf0]  ;;  %v3453_v17 = vld [vmem:[%s4354_s21 + $0x1f8] sm:$0xf0] }
 0x251   : > { %v1733_v35 = vmax.f32 %v1257_v61, 0.0  ;;  %2212 = vmatpush.bf16.msrb.mxu1 %v3660_v22  ;;  %v3448_v61 = vor.u32 %v3779_v13, %v3445_v33  ;;  %v3831_v22 = vld [vmem:[#allocation8 + $0x84] sm:$0xf]  ;;  %v1732_v13 = vmax.f32 %v4676_v49, 0.0 }
 0x252   : > { %2381 = vmatpush.bf16.msrb.mxu2 %v3600_v24  ;;  %2044 = vmatpush.bf16.msrb.mxu0 %v3588_v62  ;;  %v3782_v62 = vld [vmem:[%s4354_s21 + $0x1f4] sm:$0xf0] }
 0x253   : > { %v4682_v45 = vpack.c.bf16 %v1733_v35, %v1731_v3  ;;  %2550 = vmatpush.bf16.msrb.mxu3 %v3664_v52  ;;  %v3656_v3 = vor.u32 %v3831_v22, %v3653_v25  ;;  %v3456_v25 = vor.u32 %v3781_v16, %v3453_v17 }
 0x254   : > { %v1425_v23 = vpop.f32.mrf.mxu2  ;;  %v1090_v63 = vpop.f32.mrf.mxu0 }
 0x255   : > { %v1426_v36 = vadd.f32 %v1425_v23, %v4420_v28  ;;  %v1594_v11 = vpop.f32.mrf.mxu3  ;;  %v1091_v2 = vadd.f32 %v1090_v63, %v4415_v19  ;;  %v1259_v1 = vpop.f32.mrf.mxu1  ;;  %2213 = vmatpush.bf16.msrb.mxu1 %v3652_v47  ;;  %v3451_v63 = vld [vmem:[%s4354_s21 + $0x1f0] sm:$0xf] }
 0x256   : > { %2382 = vmatpush.bf16.msrb.mxu2 %v3592_v57 }
 0x257   : > { %v1595_v35 = vadd.f32 %v1594_v11, %v1426_v36  ;;  %v1260_v40 = vadd.f32 %v1259_v1, %v1091_v2  ;;  %1129 = vmatmul.bf16.gmra.mxu0 %v3444_v37  ;;  %2551 = vmatpush.bf16.msrb.mxu3 %v3656_v3  ;;  %v3452_v2 = vor.u32 %v3782_v62, %v3451_v63 }
 0x258   : > { %1298 = vmatmul.bf16.gmra.mxu1 %v3448_v61 }
 0x259   : > { %v1734_v33 = vmax.f32 %v1595_v35, 0.0  ;;  %1467 = vmatmul.bf16.gmra.mxu2 %v3444_v37  ;;  %v1735_v37 = vmax.f32 %v1260_v40, 0.0 }
 0x25a   : > { %1636 = vmatmul.bf16.gmra.mxu3 %v3448_v61 }
 0x25b   : > { %v4687_v6 = vpack.c.bf16 %v1734_v33, %v1732_v13 }
 0x25c   : > { %v1428_v24 = vpop.f32.mrf.mxu2  ;;  %v1092_v38 = vpop.f32.mrf.mxu0 }
 0x25d   : > { %v1429_v23 = vadd.f32 %v1428_v24, %v4420_v28  ;;  %v1597_v52 = vpop.f32.mrf.mxu3  ;;  %v1093_v41 = vadd.f32 %v1092_v38, %v4415_v19  ;;  %v1261_v49 = vpop.f32.mrf.mxu1 }
 0x25f   : > { %v1598_v36 = vadd.f32 %v1597_v52, %v1429_v23  ;;  %v1262_v11 = vadd.f32 %v1261_v49, %v1093_v41 }
 0x261   : > { %v1737_v61 = vmax.f32 %v1262_v11, 0.0  ;;  %v1736_v24 = vmax.f32 %v1598_v36, 0.0 }
 0x263   : > { %v4695_v1 = vpack.c.bf16 %v1737_v61, %v1735_v37 }
 0x264   : > { %v1430_v29 = vpop.f32.mrf.mxu2  ;;  %v1095_v22 = vpop.f32.mrf.mxu0 }
 0x265   : > { %v1431_v47 = vadd.f32 %v1430_v29, %v4420_v28  ;;  %v1599_v57 = vpop.f32.mrf.mxu3  ;;  %v1096_v35 = vadd.f32 %v1095_v22, %v4415_v19  ;;  %v1264_v3 = vpop.f32.mrf.mxu1 }
 0x267   : > { %v1600_v13 = vadd.f32 %v1599_v57, %v1431_v47  ;;  %v1265_v33 = vadd.f32 %v1264_v3, %v1096_v35  ;;  %1134 = vmatmul.bf16.gmra.mxu0 %v3452_v2 }
 0x268   : > { %1303 = vmatmul.bf16.gmra.mxu1 %v3456_v25 }
 0x269   : > { %v1738_v40 = vmax.f32 %v1600_v13, 0.0  ;;  %1472 = vmatmul.bf16.gmra.mxu2 %v3452_v2  ;;  %v1739_v61 = vmax.f32 %v1265_v33, 0.0 }
 0x26a   : > { %1641 = vmatmul.bf16.gmra.mxu3 %v3456_v25 }
 0x26b   : > { %v4699_v23 = vpack.c.bf16 %v1738_v40, %v1736_v24 }
 0x26c   : > { %v1433_v52 = vpop.f32.mrf.mxu2  ;;  %v1097_v49 = vpop.f32.mrf.mxu0 }
 0x26d   : > { %v1434_v38 = vadd.f32 %v1433_v52, %v4420_v28  ;;  %v1602_v41 = vpop.f32.mrf.mxu3  ;;  %v1098_v11 = vadd.f32 %v1097_v49, %v4415_v19  ;;  %v1266_v63 = vpop.f32.mrf.mxu1 }
 0x26f   : > { %v1603_v62 = vadd.f32 %v1602_v41, %v1434_v38  ;;  %v1267_v37 = vadd.f32 %v1266_v63, %v1098_v11 }
 0x271   : > { %v1741_v16 = vmax.f32 %v1267_v37, 0.0  ;;  %v1740_v3 = vmax.f32 %v1603_v62, 0.0 }
 0x273   : > { %v4703_v36 = vpack.c.bf16 %v1741_v16, %v1739_v61 }
 0x274   : > { %v1435_v17 = vpop.f32.mrf.mxu2  ;;  %v1100_v47 = vpop.f32.mrf.mxu0 }
 0x275   : > { %v1436_v29 = vadd.f32 %v1435_v17, %v4420_v28  ;;  %v1604_v2 = vpop.f32.mrf.mxu3  ;;  %v1101_v57 = vadd.f32 %v1100_v47, %v4415_v19  ;;  %v1269_v22 = vpop.f32.mrf.mxu1 }
 0x277   : > { %v1605_v25 = vadd.f32 %v1604_v2, %v1436_v29  ;;  %v1270_v35 = vadd.f32 %v1269_v22, %v1101_v57  ;;  %2045 = vmatmul.bf16.vlgmr.msrb.gmra.mxu0 %v4428_v43 }
 0x278   : > { %2214 = vmatmul.bf16.vlgmr.msrb.gmra.mxu1 %v4432_v56 }
 0x279   : > { %v1742_v13 = vmax.f32 %v1605_v25, 0.0  ;;  %2383 = vmatmul.bf16.vlgmr.msrb.gmra.mxu2 %v4428_v43  ;;  %v1743_v62 = vmax.f32 %v1270_v35, 0.0 }
 0x27a   : > { %2552 = vmatmul.bf16.vlgmr.msrb.gmra.mxu3 %v4432_v56 }
 0x27b   : > { %v4711_v33 = vpack.c.bf16 %v1742_v13, %v1740_v3 }
 0x27c   : > { %v1438_v24 = vpop.f32.mrf.mxu2  ;;  %v1102_v38 = vpop.f32.mrf.mxu0 }
 0x27d   : > { %v1439_v40 = vadd.f32 %v1438_v24, %v4420_v28  ;;  %v1607_v52 = vpop.f32.mrf.mxu3  ;;  %v1103_v41 = vadd.f32 %v1102_v38, %v4415_v19  ;;  %v1271_v49 = vpop.f32.mrf.mxu1 }
 0x27f   : > { %v1608_v11 = vadd.f32 %v1607_v52, %v1439_v40  ;;  %v1272_v63 = vadd.f32 %v1271_v49, %v1103_v41 }
 0x281   : > { %v1745_v37 = vmax.f32 %v1272_v63, 0.0  ;;  %v1744_v22 = vmax.f32 %v1608_v11, 0.0 }
 0x283   : > { %v4715_v16 = vpack.c.bf16 %v1745_v37, %v1743_v62 }
 0x284   : > { %v1440_v61 = vpop.f32.mrf.mxu2  ;;  %v1105_v17 = vpop.f32.mrf.mxu0 }
 0x285   : > { %v1441_v43 = vadd.f32 %v1440_v61, %v4420_v28  ;;  %v1609_v56 = vpop.f32.mrf.mxu3  ;;  %v1106_v29 = vadd.f32 %v1105_v17, %v4415_v19  ;;  %v1274_v2 = vpop.f32.mrf.mxu1 }
 0x287   : > { %v1610_v47 = vadd.f32 %v1609_v56, %v1441_v43  ;;  %v1275_v57 = vadd.f32 %v1274_v2, %v1106_v29  ;;  %2050 = vmatmul.bf16.gmra.mxu0 %v4440_v9 }
 0x288   : > { %2219 = vmatmul.bf16.gmra.mxu1 %v4444_v21 }
 0x289   : > { %v1746_v25 = vmax.f32 %v1610_v47, 0.0  ;;  %2388 = vmatmul.bf16.gmra.mxu2 %v4440_v9  ;;  %v1747_v11 = vmax.f32 %v1275_v57, 0.0 }
 0x28a   : > { %2557 = vmatmul.bf16.gmra.mxu3 %v4444_v21 }
 0x28b   : > { %v4723_v35 = vpack.c.bf16 %v1746_v25, %v1744_v22 }
 0x28c   : > { %v1443_v3 = vpop.f32.mrf.mxu2  ;;  %v1107_v40 = vpop.f32.mrf.mxu0 }
 0x28d   : > { %v1444_v13 = vadd.f32 %v1443_v3, %v4420_v28  ;;  %v1612_v24 = vpop.f32.mrf.mxu3  ;;  %v1108_v52 = vadd.f32 %v1107_v40, %v4415_v19  ;;  %v1276_v38 = vpop.f32.mrf.mxu1 }
 0x28f   : > { %v1613_v41 = vadd.f32 %v1612_v24, %v1444_v13  ;;  %v1277_v49 = vadd.f32 %v1276_v38, %v1108_v52 }
 0x291   : > { %v1749_v63 = vmax.f32 %v1277_v49, 0.0  ;;  %v1748_v2 = vmax.f32 %v1613_v41, 0.0 }
 0x293   : > { %v4727_v37 = vpack.c.bf16 %v1749_v63, %v1747_v11 }
 0x294   : > { %v1445_v62 = vpop.f32.mrf.mxu2  ;;  %v1110_v61 = vpop.f32.mrf.mxu0 }
 0x295   : > { %v1446_v9 = vadd.f32 %v1445_v62, %v4420_v28  ;;  %v1614_v21 = vpop.f32.mrf.mxu3  ;;  %v1111_v43 = vadd.f32 %v1110_v61, %v4415_v19  ;;  %v1279_v56 = vpop.f32.mrf.mxu1 }
 0x297   : > { %v1615_v17 = vadd.f32 %v1614_v21, %v1446_v9  ;;  %v1280_v29 = vadd.f32 %v1279_v56, %v1111_v43  ;;  %2055 = vmatmul.bf16.gmra.mxu0 %v4452_v39 }
 0x298   : > { %2224 = vmatmul.bf16.gmra.mxu1 %v4456_v54 }
 0x299   : > { %v1750_v47 = vmax.f32 %v1615_v17, 0.0  ;;  %2393 = vmatmul.bf16.gmra.mxu2 %v4452_v39  ;;  %v1751_v41 = vmax.f32 %v1280_v29, 0.0 }
 0x29a   : > { %2562 = vmatmul.bf16.gmra.mxu3 %v4456_v54 }
 0x29b   : > { %v4735_v57 = vpack.c.bf16 %v1750_v47, %v1748_v2 }
 0x29c   : > { %v1448_v22 = vpop.f32.mrf.mxu2  ;;  %v1112_v13 = vpop.f32.mrf.mxu0 }
 0x29d   : > { %v1449_v25 = vadd.f32 %v1448_v22, %v4420_v28  ;;  %v1617_v3 = vpop.f32.mrf.mxu3  ;;  %v1113_v24 = vadd.f32 %v1112_v13, %v4415_v19  ;;  %v1281_v40 = vpop.f32.mrf.mxu1 }
 0x29f   : > { %v1618_v52 = vadd.f32 %v1617_v3, %v1449_v25  ;;  %v1282_v38 = vadd.f32 %v1281_v40, %v1113_v24 }
 0x2a1   : > { %v1753_v49 = vmax.f32 %v1282_v38, 0.0  ;;  %v1752_v56 = vmax.f32 %v1618_v52, 0.0 }
 0x2a3   : > { %v4739_v63 = vpack.c.bf16 %v1753_v49, %v1751_v41 }
 0x2a4   : > { %v1450_v11 = vpop.f32.mrf.mxu2  ;;  %v1115_v62 = vpop.f32.mrf.mxu0 }
 0x2a5   : > { %v1451_v39 = vadd.f32 %v1450_v11, %v4420_v28  ;;  %v1619_v54 = vpop.f32.mrf.mxu3  ;;  %v1116_v9 = vadd.f32 %v1115_v62, %v4415_v19  ;;  %v1284_v21 = vpop.f32.mrf.mxu1 }
 0x2a7   : > { %v1620_v61 = vadd.f32 %v1619_v54, %v1451_v39  ;;  %v1285_v43 = vadd.f32 %v1284_v21, %v1116_v9  ;;  %2060 = vmatmul.bf16.gmra.mxu0 %v4464_v18 }
 0x2a8   : > { %2229 = vmatmul.bf16.gmra.mxu1 %v4468_v32 }
 0x2a9   : > { %v1754_v17 = vmax.f32 %v1620_v61, 0.0  ;;  %2398 = vmatmul.bf16.gmra.mxu2 %v4464_v18  ;;  %v1755_v52 = vmax.f32 %v1285_v43, 0.0 }
 0x2aa   : > { %2567 = vmatmul.bf16.gmra.mxu3 %v4468_v32 }
 0x2ab   : > { %v4747_v29 = vpack.c.bf16 %v1754_v17, %v1752_v56 }
 0x2ac   : > { %v1453_v2 = vpop.f32.mrf.mxu2  ;;  %v1117_v25 = vpop.f32.mrf.mxu0 }
 0x2ad   : > { %v1454_v47 = vadd.f32 %v1453_v2, %v4420_v28  ;;  %v1622_v22 = vpop.f32.mrf.mxu3  ;;  %v1118_v3 = vadd.f32 %v1117_v25, %v4415_v19  ;;  %v1286_v13 = vpop.f32.mrf.mxu1 }
 0x2af   : > { %v1623_v24 = vadd.f32 %v1622_v22, %v1454_v47  ;;  %v1287_v40 = vadd.f32 %v1286_v13, %v1118_v3 }
 0x2b1   : > { %v1757_v38 = vmax.f32 %v1287_v40, 0.0  ;;  %v1756_v21 = vmax.f32 %v1623_v24, 0.0 }
 0x2b3   : > { %v4751_v49 = vpack.c.bf16 %v1757_v38, %v1755_v52 }
 0x2b4   : > { %v1455_v41 = vpop.f32.mrf.mxu2  ;;  %v1120_v11 = vpop.f32.mrf.mxu0 }
 0x2b5   : > { %v1456_v18 = vadd.f32 %v1455_v41, %v4420_v28  ;;  %v1624_v32 = vpop.f32.mrf.mxu3  ;;  %v1121_v39 = vadd.f32 %v1120_v11, %v4415_v19  ;;  %v1289_v54 = vpop.f32.mrf.mxu1 }
 0x2b7   : > { %v1625_v62 = vadd.f32 %v1624_v32, %v1456_v18  ;;  %v1290_v9 = vadd.f32 %v1289_v54, %v1121_v39  ;;  %2065 = vmatmul.bf16.gmra.mxu0 %v4476_v51 }
 0x2b8   : > { %2234 = vmatmul.bf16.gmra.mxu1 %v4480_v0 }
 0x2b9   : > { %v1758_v61 = vmax.f32 %v1625_v62, 0.0  ;;  %2403 = vmatmul.bf16.gmra.mxu2 %v4476_v51  ;;  %v1759_v24 = vmax.f32 %v1290_v9, 0.0 }
 0x2ba   : > { %2572 = vmatmul.bf16.gmra.mxu3 %v4480_v0 }
 0x2bb   : > { %v4759_v43 = vpack.c.bf16 %v1758_v61, %v1756_v21 }
 0x2bc   : > { %v1458_v56 = vpop.f32.mrf.mxu2  ;;  %v1122_v47 = vpop.f32.mrf.mxu0 }
 0x2bd   : > { %5312 = vst [vmem:[#allocation28_spill] sm:$0xff] %v4759_v43  ;;  %v1459_v17 = vadd.f32 %v1458_v56, %v4420_v28  ;;  %v1627_v2 = vpop.f32.mrf.mxu3  ;;  %v1123_v22 = vadd.f32 %v1122_v47, %v4415_v19  ;;  %v1291_v25 = vpop.f32.mrf.mxu1 }
 0x2bf   : > { %v1628_v3 = vadd.f32 %v1627_v2, %v1459_v17  ;;  %v1292_v13 = vadd.f32 %v1291_v25, %v1123_v22 }
 0x2c1   : > { %v1761_v40 = vmax.f32 %v1292_v13, 0.0  ;;  %v1760_v54 = vmax.f32 %v1628_v3, 0.0 }
 0x2c3   : > { %v4763_v38 = vpack.c.bf16 %v1761_v40, %v1759_v24 }
 0x2c4   : > { %v1460_v52 = vpop.f32.mrf.mxu2  ;;  %v1125_v41 = vpop.f32.mrf.mxu0 }
 0x2c5   : > { %5313 = vst [vmem:[#allocation29_spill] sm:$0xff] %v4763_v38  ;;  %v1461_v51 = vadd.f32 %v1460_v52, %v4420_v28  ;;  %v1629_v0 = vpop.f32.mrf.mxu3  ;;  %v1126_v18 = vadd.f32 %v1125_v41, %v4415_v19  ;;  %v1294_v32 = vpop.f32.mrf.mxu1 }
 0x2c7   : > { %v1630_v11 = vadd.f32 %v1629_v0, %v1461_v51  ;;  %v1295_v39 = vadd.f32 %v1294_v32, %v1126_v18  ;;  %2070 = vmatmul.bf16.gmra.mxu0 %v4488_v20 }
 0x2c8   : > { %2239 = vmatmul.bf16.gmra.mxu1 %v4492_v34 }
 0x2c9   : > { %v1762_v62 = vmax.f32 %v1630_v11, 0.0  ;;  %2408 = vmatmul.bf16.gmra.mxu2 %v4488_v20  ;;  %v1763_v3 = vmax.f32 %v1295_v39, 0.0 }
 0x2ca   : > { %2577 = vmatmul.bf16.gmra.mxu3 %v4492_v34 }
 0x2cb   : > { %v4771_v9 = vpack.c.bf16 %v1762_v62, %v1760_v54 }
 0x2cc   : > { %v1463_v21 = vpop.f32.mrf.mxu2  ;;  %v1127_v17 = vpop.f32.mrf.mxu0 }
 0x2cd   : > { %5314 = vst [vmem:[#allocation30_spill] sm:$0xff] %v4771_v9  ;;  %v1464_v61 = vadd.f32 %v1463_v21, %v4420_v28  ;;  %v1632_v56 = vpop.f32.mrf.mxu3  ;;  %v1128_v2 = vadd.f32 %v1127_v17, %v4415_v19  ;;  %v1296_v47 = vpop.f32.mrf.mxu1 }
 0x2cf   : > { %v1633_v22 = vadd.f32 %v1632_v56, %v1464_v61  ;;  %v1297_v25 = vadd.f32 %v1296_v47, %v1128_v2 }
 0x2d1   : > { %v1765_v13 = vmax.f32 %v1297_v25, 0.0  ;;  %v1764_v32 = vmax.f32 %v1633_v22, 0.0 }
 0x2d3   : > { %v4775_v40 = vpack.c.bf16 %v1765_v13, %v1763_v3 }
 0x2d4   : > { %v1465_v24 = vpop.f32.mrf.mxu2  ;;  %v1130_v52 = vpop.f32.mrf.mxu0 }
 0x2d5   : > { %5315 = vst [vmem:[#allocation31_spill] sm:$0xff] %v4775_v40  ;;  %v1466_v20 = vadd.f32 %v1465_v24, %v4420_v28  ;;  %v1634_v34 = vpop.f32.mrf.mxu3  ;;  %v1131_v51 = vadd.f32 %v1130_v52, %v4415_v19  ;;  %v1299_v0 = vpop.f32.mrf.mxu1 }
 0x2d7   : > { %v1635_v41 = vadd.f32 %v1634_v34, %v1466_v20  ;;  %v1300_v18 = vadd.f32 %v1299_v0, %v1131_v51  ;;  %2075 = vmatmul.bf16.gmra.mxu0 %v4500_v55 }
 0x2d8   : > { %2244 = vmatmul.bf16.gmra.mxu1 %v4504_v7 }
 0x2d9   : > { %v1766_v11 = vmax.f32 %v1635_v41, 0.0  ;;  %2413 = vmatmul.bf16.gmra.mxu2 %v4500_v55  ;;  %v1767_v22 = vmax.f32 %v1300_v18, 0.0 }
 0x2da   : > { %2582 = vmatmul.bf16.gmra.mxu3 %v4504_v7 }
 0x2db   : > { %v4783_v39 = vpack.c.bf16 %v1766_v11, %v1764_v32 }
 0x2dc   : > { %v1468_v54 = vpop.f32.mrf.mxu2  ;;  %v1132_v61 = vpop.f32.mrf.mxu0 }
 0x2dd   : > { %5316 = vst [vmem:[#allocation32_spill] sm:$0xff] %v4783_v39  ;;  %v1469_v62 = vadd.f32 %v1468_v54, %v4420_v28  ;;  %v1637_v21 = vpop.f32.mrf.mxu3  ;;  %v1133_v56 = vadd.f32 %v1132_v61, %v4415_v19  ;;  %v1301_v17 = vpop.f32.mrf.mxu1 }
 0x2df   : > { %v1638_v2 = vadd.f32 %v1637_v21, %v1469_v62  ;;  %v1302_v47 = vadd.f32 %v1301_v17, %v1133_v56  ;;  %v1871_v17 = vld [vmem:[%s5262_s5] sm:$0x3] }
 0x2e1   : > { %v1769_v25 = vmax.f32 %v1302_v47, 0.0  ;;  %v1768_v0 = vmax.f32 %v1638_v2, 0.0 }
 0x2e3   : > { %v4787_v13 = vpack.c.bf16 %v1769_v25, %v1767_v22  ;;  %v4802_v22 = vperm.slane %v1871_v17, 0 }
 0x2e4   : > { %v1470_v3 = vpop.f32.mrf.mxu2  ;;  %v1135_v24 = vpop.f32.mrf.mxu0 }
 0x2e5   : > { %5317 = vst [vmem:[#allocation33_spill] sm:$0xff] %v4787_v13  ;;  %v1471_v55 = vadd.f32 %v1470_v3, %v4420_v28  ;;  %v1639_v7 = vpop.f32.mrf.mxu3  ;;  %v1136_v20 = vadd.f32 %v1135_v24, %v4415_v19  ;;  %v1304_v34 = vpop.f32.mrf.mxu1 }
 0x2e7   : > { %v1640_v52 = vadd.f32 %v1639_v7, %v1471_v55  ;;  %v1305_v51 = vadd.f32 %v1304_v34, %v1136_v20  ;;  %2080 = vmatmul.bf16.gmra.mxu0 %v4512_v42 }
 0x2e8   : > { %2249 = vmatmul.bf16.gmra.mxu1 %v4516_v58 }
 0x2e9   : > { %v1770_v41 = vmax.f32 %v1640_v52, 0.0  ;;  %2418 = vmatmul.bf16.gmra.mxu2 %v4512_v42  ;;  %v1771_v47 = vmax.f32 %v1305_v51, 0.0  ;;  %v4811_v51 = vperm.slane %v1871_v17, 1 }
 0x2ea   : > { %2587 = vmatmul.bf16.gmra.mxu3 %v4516_v58 }
 0x2eb   : > { %v4795_v18 = vpack.c.bf16 %v1770_v41, %v1768_v0 }
 0x2ec   : > { %v1473_v32 = vpop.f32.mrf.mxu2  ;;  %v1137_v62 = vpop.f32.mrf.mxu0 }
 0x2ed   : > { %5318 = vst [vmem:[#allocation34_spill] sm:$0xff] %v4795_v18  ;;  %v1474_v11 = vadd.f32 %v1473_v32, %v4420_v28  ;;  %v1642_v54 = vpop.f32.mrf.mxu3  ;;  %v1138_v21 = vadd.f32 %v1137_v62, %v4415_v19  ;;  %v1306_v61 = vpop.f32.mrf.mxu1 }
 0x2ef   : > { %v1643_v56 = vadd.f32 %v1642_v54, %v1474_v11  ;;  %v1307_v2 = vadd.f32 %v1306_v61, %v1138_v21 }
 0x2f1   : > { %v1773_v42 = vmax.f32 %v1307_v2, 0.0  ;;  %v1772_v52 = vmax.f32 %v1643_v56, 0.0 }
 0x2f3   : > { %v4804_v25 = vpack.c.bf16 %v1773_v42, %v1771_v47 }
 0x2f4   : > { %v1475_v58 = vpop.f32.mrf.mxu2  ;;  %v2046_v7 = vpop.f32.mrf.mxu0 }
 0x2f5   : > { %5319 = vst [vmem:[#allocation35_spill] sm:$0xff] %v4804_v25  ;;  %v1476_v3 = vadd.f32 %v1475_v58, %v4420_v28  ;;  %v1644_v55 = vpop.f32.mrf.mxu3  ;;  %v2047_v19 = vadd.f32 %v2046_v7, %v4802_v22  ;;  %v2215_v24 = vpop.f32.mrf.mxu1 }
 0x2f7   : > { %v1645_v20 = vadd.f32 %v1644_v55, %v1476_v3  ;;  %v2216_v34 = vadd.f32 %v2215_v24, %v2047_v19  ;;  %2085 = vmatmul.bf16.gmra.mxu0 %v4524_v14 }
 0x2f8   : > { %2254 = vmatmul.bf16.gmra.mxu1 %v4528_v30 }
 0x2f9   : > { %v1774_v0 = vmax.f32 %v1645_v20, 0.0  ;;  %2423 = vmatmul.bf16.gmra.mxu2 %v4524_v14  ;;  %v2713_v2 = vmax.f32 %v2216_v34, 0.0 }
 0x2fa   : > { %2592 = vmatmul.bf16.gmra.mxu3 %v4528_v30 }
 0x2fb   : > { %v4814_v28 = vpack.c.bf16 %v1774_v0, %v1772_v52 }
 0x2fc   : > { %v2384_v41 = vpop.f32.mrf.mxu2  ;;  %v2048_v54 = vpop.f32.mrf.mxu0 }
 0x2fd   : > { %5320 = vst [vmem:[#allocation36_spill] sm:$0xff] %v4814_v28  ;;  %v2385_v32 = vadd.f32 %v2384_v41, %v4811_v51  ;;  %v2553_v11 = vpop.f32.mrf.mxu3  ;;  %v2049_v62 = vadd.f32 %v2048_v54, %v4802_v22  ;;  %v2217_v21 = vpop.f32.mrf.mxu1 }
 0x2ff   : > { %v2554_v61 = vadd.f32 %v2553_v11, %v2385_v32  ;;  %v2218_v56 = vadd.f32 %v2217_v21, %v2049_v62 }
 0x301   : > { %v2715_v47 = vmax.f32 %v2218_v56, 0.0  ;;  %v2714_v24 = vmax.f32 %v2554_v61, 0.0 }
 0x303   : > { %v4818_v14 = vpack.c.bf16 %v2715_v47, %v2713_v2 }
 0x304   : > { %v2386_v42 = vpop.f32.mrf.mxu2  ;;  %v2051_v58 = vpop.f32.mrf.mxu0 }
 0x305   : > { %v2387_v17 = vadd.f32 %v2386_v42, %v4811_v51  ;;  %v2555_v30 = vpop.f32.mrf.mxu3  ;;  %v2052_v3 = vadd.f32 %v2051_v58, %v4802_v22  ;;  %v2220_v55 = vpop.f32.mrf.mxu1 }
 0x307   : > { %v2556_v7 = vadd.f32 %v2555_v30, %v2387_v17  ;;  %v2221_v19 = vadd.f32 %v2220_v55, %v2052_v3  ;;  %2090 = vmatmul.bf16.gmra.mxu0 %v4536_v53 }
 0x308   : > { %2259 = vmatmul.bf16.gmra.mxu1 %v4540_v5 }
 0x309   : > { %v2716_v20 = vmax.f32 %v2556_v7, 0.0  ;;  %2428 = vmatmul.bf16.gmra.mxu2 %v4536_v53  ;;  %v2717_v61 = vmax.f32 %v2221_v19, 0.0 }
 0x30a   : > { %2597 = vmatmul.bf16.gmra.mxu3 %v4540_v5 }
 0x30b   : > { %v4826_v34 = vpack.c.bf16 %v2716_v20, %v2714_v24 }
 0x30c   : > { %v2389_v52 = vpop.f32.mrf.mxu2  ;;  %v2053_v32 = vpop.f32.mrf.mxu0 }
 0x30d   : > { %v2390_v0 = vadd.f32 %v2389_v52, %v4811_v51  ;;  %v2558_v41 = vpop.f32.mrf.mxu3  ;;  %v2054_v11 = vadd.f32 %v2053_v32, %v4802_v22  ;;  %v2222_v54 = vpop.f32.mrf.mxu1 }
 0x30f   : > { %v2559_v62 = vadd.f32 %v2558_v41, %v2390_v0  ;;  %v2223_v21 = vadd.f32 %v2222_v54, %v2054_v11 }
 0x311   : > { %v2719_v56 = vmax.f32 %v2223_v21, 0.0  ;;  %v2718_v55 = vmax.f32 %v2559_v62, 0.0 }
 0x313   : > { %v4830_v47 = vpack.c.bf16 %v2719_v56, %v2717_v61 }
 0x314   : > { %v2391_v2 = vpop.f32.mrf.mxu2  ;;  %v2056_v42 = vpop.f32.mrf.mxu0 }
 0x315   : > { %v2392_v53 = vadd.f32 %v2391_v2, %v4811_v51  ;;  %v2560_v5 = vpop.f32.mrf.mxu3  ;;  %v2057_v17 = vadd.f32 %v2056_v42, %v4802_v22  ;;  %v2225_v30 = vpop.f32.mrf.mxu1 }
 0x317   : > { %v2561_v58 = vadd.f32 %v2560_v5, %v2392_v53  ;;  %v2226_v3 = vadd.f32 %v2225_v30, %v2057_v17  ;;  %2095 = vmatmul.bf16.gmra.mxu0 %v4548_v31 }
 0x318   : > { %2264 = vmatmul.bf16.gmra.mxu1 %v4552_v50 }
 0x319   : > { %v2720_v7 = vmax.f32 %v2561_v58, 0.0  ;;  %2433 = vmatmul.bf16.gmra.mxu2 %v4548_v31  ;;  %v2721_v62 = vmax.f32 %v2226_v3, 0.0 }
 0x31a   : > { %2602 = vmatmul.bf16.gmra.mxu3 %v4552_v50 }
 0x31b   : > { %v4838_v19 = vpack.c.bf16 %v2720_v7, %v2718_v55 }
 0x31c   : > { %v2394_v24 = vpop.f32.mrf.mxu2  ;;  %v2058_v0 = vpop.f32.mrf.mxu0 }
 0x31d   : > { %v2395_v20 = vadd.f32 %v2394_v24, %v4811_v51  ;;  %v2563_v52 = vpop.f32.mrf.mxu3  ;;  %v2059_v41 = vadd.f32 %v2058_v0, %v4802_v22  ;;  %v2227_v32 = vpop.f32.mrf.mxu1 }
 0x31f   : > { %v2564_v11 = vadd.f32 %v2563_v52, %v2395_v20  ;;  %v2228_v54 = vadd.f32 %v2227_v32, %v2059_v41 }
 0x321   : > { %v2723_v21 = vmax.f32 %v2228_v54, 0.0  ;;  %v2722_v30 = vmax.f32 %v2564_v11, 0.0 }
 0x323   : > { %v4842_v56 = vpack.c.bf16 %v2723_v21, %v2721_v62 }
 0x324   : > { %v2396_v61 = vpop.f32.mrf.mxu2  ;;  %v2061_v2 = vpop.f32.mrf.mxu0 }
 0x325   : > { %v2397_v31 = vadd.f32 %v2396_v61, %v4811_v51  ;;  %v2565_v50 = vpop.f32.mrf.mxu3  ;;  %v2062_v53 = vadd.f32 %v2061_v2, %v4802_v22  ;;  %v2230_v5 = vpop.f32.mrf.mxu1 }
 0x327   : > { %v2566_v42 = vadd.f32 %v2565_v50, %v2397_v31  ;;  %v2231_v17 = vadd.f32 %v2230_v5, %v2062_v53  ;;  %2100 = vmatmul.bf16.gmra.mxu0 %v4560_v27 }
 0x328   : > { %2269 = vmatmul.bf16.gmra.mxu1 %v4564_v46 }
 0x329   : > { %v2724_v58 = vmax.f32 %v2566_v42, 0.0  ;;  %2438 = vmatmul.bf16.gmra.mxu2 %v4560_v27  ;;  %v2725_v11 = vmax.f32 %v2231_v17, 0.0 }
 0x32a   : > { %2607 = vmatmul.bf16.gmra.mxu3 %v4564_v46 }
 0x32b   : > { %v4850_v3 = vpack.c.bf16 %v2724_v58, %v2722_v30 }
 0x32c   : > { %v2399_v55 = vpop.f32.mrf.mxu2  ;;  %v2063_v20 = vpop.f32.mrf.mxu0 }
 0x32d   : > { %v2400_v7 = vadd.f32 %v2399_v55, %v4811_v51  ;;  %v2568_v24 = vpop.f32.mrf.mxu3  ;;  %v2064_v52 = vadd.f32 %v2063_v20, %v4802_v22  ;;  %v2232_v0 = vpop.f32.mrf.mxu1 }
 0x32f   : > { %v2569_v41 = vadd.f32 %v2568_v24, %v2400_v7  ;;  %v2233_v32 = vadd.f32 %v2232_v0, %v2064_v52 }
 0x331   : > { %v2727_v54 = vmax.f32 %v2233_v32, 0.0  ;;  %v2726_v5 = vmax.f32 %v2569_v41, 0.0 }
 0x333   : > { %v4854_v21 = vpack.c.bf16 %v2727_v54, %v2725_v11 }
 0x334   : > { %v2401_v62 = vpop.f32.mrf.mxu2  ;;  %v2066_v61 = vpop.f32.mrf.mxu0 }
 0x335   : > { %v2402_v27 = vadd.f32 %v2401_v62, %v4811_v51  ;;  %v2570_v46 = vpop.f32.mrf.mxu3  ;;  %v2067_v31 = vadd.f32 %v2066_v61, %v4802_v22  ;;  %v2235_v50 = vpop.f32.mrf.mxu1 }
 0x337   : > { %v2571_v2 = vadd.f32 %v2570_v46, %v2402_v27  ;;  %v2236_v53 = vadd.f32 %v2235_v50, %v2067_v31  ;;  %2105 = vmatmul.bf16.gmra.mxu0 %v4572_v10 }
 0x338   : > { %2274 = vmatmul.bf16.gmra.mxu1 %v4576_v26 }
 0x339   : > { %v2728_v42 = vmax.f32 %v2571_v2, 0.0  ;;  %2443 = vmatmul.bf16.gmra.mxu2 %v4572_v10  ;;  %v2729_v41 = vmax.f32 %v2236_v53, 0.0 }
 0x33a   : > { %2612 = vmatmul.bf16.gmra.mxu3 %v4576_v26 }
 0x33b   : > { %v4862_v17 = vpack.c.bf16 %v2728_v42, %v2726_v5 }
 0x33c   : > { %v2404_v30 = vpop.f32.mrf.mxu2  ;;  %v2068_v7 = vpop.f32.mrf.mxu0 }
 0x33d   : > { %v2405_v58 = vadd.f32 %v2404_v30, %v4811_v51  ;;  %v2573_v55 = vpop.f32.mrf.mxu3  ;;  %v2069_v24 = vadd.f32 %v2068_v7, %v4802_v22  ;;  %v2237_v20 = vpop.f32.mrf.mxu1 }
 0x33f   : > { %v2574_v52 = vadd.f32 %v2573_v55, %v2405_v58  ;;  %v2238_v0 = vadd.f32 %v2237_v20, %v2069_v24 }
 0x341   : > { %v2731_v32 = vmax.f32 %v2238_v0, 0.0  ;;  %v2730_v61 = vmax.f32 %v2574_v52, 0.0 }
 0x343   : > { %v4866_v54 = vpack.c.bf16 %v2731_v32, %v2729_v41 }
 0x344   : > { %v2406_v11 = vpop.f32.mrf.mxu2  ;;  %v4869_v62 = vpop.f32.mrf.mxu0 }
 0x345   : > { %v2407_v10 = vadd.f32 %v2406_v11, %v4811_v51  ;;  %v2575_v26 = vpop.f32.mrf.mxu3  ;;  %v4871_v27 = vpop.f32.mrf.mxu1 }
 0x347   : > { %v2576_v46 = vadd.f32 %v2575_v26, %v2407_v10  ;;  %2110 = vmatmul.bf16.gmra.mxu0 %v4584_v60 }
 0x348   : > { %2279 = vmatmul.bf16.gmra.mxu1 %v4588_v12 }
 0x349   : > { %v2732_v31 = vmax.f32 %v2576_v46, 0.0  ;;  %2448 = vmatmul.bf16.gmra.mxu2 %v4584_v60 }
 0x34a   : > { %2617 = vmatmul.bf16.gmra.mxu3 %v4588_v12 }
 0x34b   : > { %v4877_v50 = vpack.c.bf16 %v2732_v31, %v2730_v61 }
 0x34c   : > { %v4879_v2 = vpop.f32.mrf.mxu2  ;;  %v2073_v5 = vpop.f32.mrf.mxu0 }
 0x34d   : > { %v4881_v53 = vpop.f32.mrf.mxu3  ;;  %v2242_v42 = vpop.f32.mrf.mxu1 }
 0x354   : > { %v4883_v30 = vpop.f32.mrf.mxu2  ;;  %v2076_v55 = vpop.f32.mrf.mxu0 }
 0x355   : > { %v4885_v58 = vpop.f32.mrf.mxu3  ;;  %v2245_v7 = vpop.f32.mrf.mxu1  ;;  %v2077_v18 = vadd.f32 %v2076_v55, %v4802_v22  ;;  %v2074_v55 = vadd.f32 %v2073_v5, %v4802_v22 }
 0x357   : > { %2115 = vmatmul.bf16.gmra.mxu0 %v4596_v44 }
 0x358   : > { %2284 = vmatmul.bf16.gmra.mxu1 %v4600_v4 }
 0x359   : > { %2453 = vmatmul.bf16.gmra.mxu2 %v4596_v44 }
 0x35a   : > { %2622 = vmatmul.bf16.gmra.mxu3 %v4600_v4 }
 0x35c   : > { %v2414_v60 = vpop.f32.mrf.mxu2  ;;  %v2078_v24 = vpop.f32.mrf.mxu0 }
 0x35d   : > { %v2583_v12 = vpop.f32.mrf.mxu3  ;;  %v2247_v20 = vpop.f32.mrf.mxu1  ;;  %v2079_v31 = vadd.f32 %v2078_v24, %v4802_v22 }
 0x35f   : > { %v2248_v39 = vadd.f32 %v2247_v20, %v2079_v31 }
 0x364   : > { %v2416_v52 = vpop.f32.mrf.mxu2  ;;  %v2081_v41 = vpop.f32.mrf.mxu0 }
 0x365   : > { %v2585_v0 = vpop.f32.mrf.mxu3  ;;  %v2250_v32 = vpop.f32.mrf.mxu1  ;;  %v2082_v11 = vadd.f32 %v2081_v41, %v4802_v22  ;;  %v2417_v24 = vadd.f32 %v2416_v52, %v4811_v51 }
 0x367   : > { %2120 = vmatmul.bf16.gmra.mxu0 %v4608_v59  ;;  %v2251_v26 = vadd.f32 %v2250_v32, %v2082_v11  ;;  %v2246_v11 = vadd.f32 %v2245_v7, %v2077_v18  ;;  %v2072_v18 = vadd.f32 %v4869_v62, %v4802_v22 }
 0x368   : > { %2289 = vmatmul.bf16.gmra.mxu1 %v4612_v15 }
 0x369   : > { %2458 = vmatmul.bf16.gmra.mxu2 %v4608_v59  ;;  %v2741_v13 = vmax.f32 %v2251_v26, 0.0  ;;  %v2739_v26 = vmax.f32 %v2248_v39, 0.0  ;;  %v2737_v7 = vmax.f32 %v2246_v11, 0.0  ;;  %v2243_v39 = vadd.f32 %v2242_v42, %v2074_v55 }
 0x36a   : > { %2627 = vmatmul.bf16.gmra.mxu3 %v4612_v15 }
 0x36b   : > { %v2854_v5 = vpack.c.bf16 %v2739_v26, %v2737_v7  ;;  %v2735_v42 = vmax.f32 %v2243_v39, 0.0  ;;  %v5322_v39 = vld [vmem:[#allocation21_spill] sm:$0xff] }
 0x36c   : > { %v2419_v44 = vpop.f32.mrf.mxu2  ;;  %v2083_v10 = vpop.f32.mrf.mxu0 }
 0x36d   : > { %v2588_v4 = vpop.f32.mrf.mxu3  ;;  %v2084_v46 = vadd.f32 %v2083_v10, %v4802_v22  ;;  %v2252_v61 = vpop.f32.mrf.mxu1  ;;  %v2420_v25 = vadd.f32 %v2419_v44, %v4811_v51 }
 0x36f   : > { %v2253_v28 = vadd.f32 %v2252_v61, %v2084_v46  ;;  %v2589_v15 = vadd.f32 %v2588_v4, %v2420_v25  ;;  %v2241_v46 = vadd.f32 %v4871_v27, %v2072_v18 }
 0x371   : > { %v2743_v59 = vmax.f32 %v2253_v28, 0.0  ;;  %v2742_v25 = vmax.f32 %v2589_v15, 0.0 }
 0x373   : > { %v2856_v41 = vpack.c.bf16 %v2743_v59, %v2741_v13  ;;  %v2415_v13 = vadd.f32 %v2414_v60, %v4811_v51 }
 0x374   : > { %v2421_v40 = vpop.f32.mrf.mxu2  ;;  %v2086_v32 = vpop.f32.mrf.mxu0 }
 0x375   : > { %v2422_v9 = vadd.f32 %v2421_v40, %v4811_v51  ;;  %v2590_v38 = vpop.f32.mrf.mxu3  ;;  %v2087_v10 = vadd.f32 %v2086_v32, %v4802_v22  ;;  %v2255_v43 = vpop.f32.mrf.mxu1  ;;  %2922 = vmatpush.bf16.xpose.msra.mxu0 %v2856_v41  ;;  %v2584_v20 = vadd.f32 %v2583_v12, %v2415_v13  ;;  %v2410_v12 = vadd.f32 %v4879_v2, %v4811_v51 }
 0x376   : > { %v2733_v41 = vmax.f32 %v2241_v46, 0.0 }
 0x377   : > { %v2591_v44 = vadd.f32 %v2590_v38, %v2422_v9  ;;  %v2256_v28 = vadd.f32 %v2255_v43, %v2087_v10  ;;  %2125 = vmatmul.bf16.gmra.mxu0 %v4620_v48  ;;  %v2586_v38 = vadd.f32 %v2585_v0, %v2417_v24  ;;  %v2738_v59 = vmax.f32 %v2584_v20, 0.0 }
 0x378   : > { %2294 = vmatmul.bf16.gmra.mxu1 %v4624_v8  ;;  %v2852_v24 = vpack.c.bf16 %v2735_v42, %v2733_v41 }
 0x379   : > { %v2744_v40 = vmax.f32 %v2591_v44, 0.0  ;;  %2463 = vmatmul.bf16.gmra.mxu2 %v4620_v48  ;;  %v2740_v62 = vmax.f32 %v2586_v38, 0.0  ;;  %v2745_v15 = vmax.f32 %v2256_v28, 0.0 }
 0x37a   : > { %2632 = vmatmul.bf16.gmra.mxu3 %v4624_v8  ;;  %v2412_v8 = vadd.f32 %v4883_v30, %v4811_v51  ;;  %v2579_v30 = vadd.f32 %v4881_v53, %v2410_v12 }
 0x37b   : > { %v2857_v9 = vpack.c.bf16 %v2744_v40, %v2742_v25  ;;  %v2855_v11 = vpack.c.bf16 %v2740_v62, %v2738_v59 }
 0x37c   : > { %v2424_v43 = vpop.f32.mrf.mxu2  ;;  %v2088_v4 = vpop.f32.mrf.mxu0  ;;  %v2581_v27 = vadd.f32 %v4885_v58, %v2412_v8  ;;  %v5321_v58 = vld [vmem:[#allocation20_spill] sm:$0xff]  ;;  %v2734_v7 = vmax.f32 %v2579_v30, 0.0 }
 0x37d   : > { %v2425_v60 = vadd.f32 %v2424_v43, %v4811_v51  ;;  %v2593_v52 = vpop.f32.mrf.mxu3  ;;  %2935 = vmatpush.bf16.xpose.msra.mxu1 %v2857_v9  ;;  %v2089_v48 = vadd.f32 %v2088_v4, %v4802_v22  ;;  %v2257_v61 = vpop.f32.mrf.mxu1  ;;  %2923 = vmatpush.bf16.xpose.msra.mxu0 %v2854_v5 }
 0x37e   : > { %v2736_v28 = vmax.f32 %v2581_v27, 0.0  ;;  %v5323_v27 = vld [vmem:[#allocation22_spill] sm:$0xff] }
 0x37f   : > { %v2594_v0 = vadd.f32 %v2593_v52, %v2425_v60  ;;  %v2258_v31 = vadd.f32 %v2257_v61, %v2089_v48 }
 0x380   : > { %v2853_v53 = vpack.c.bf16 %v2736_v28, %v2734_v7 }
 0x381   : > { %v2747_v32 = vmax.f32 %v2258_v31, 0.0  ;;  %v2746_v38 = vmax.f32 %v2594_v0, 0.0 }
 0x383   : > { %v4919_v44 = vpack.c.bf16 %v2747_v32, %v2745_v15 }
 0x384   : > { %v2426_v10 = vpop.f32.mrf.mxu2  ;;  %v2091_v13 = vpop.f32.mrf.mxu0 }
 0x385   : > { %v2427_v55 = vadd.f32 %v2426_v10, %v4811_v51  ;;  %v2595_v26 = vpop.f32.mrf.mxu3  ;;  %2936 = vmatpush.bf16.xpose.msra.mxu1 %v2855_v11  ;;  %v2092_v2 = vadd.f32 %v2091_v13, %v4802_v22  ;;  %v2260_v25 = vpop.f32.mrf.mxu1  ;;  %2924 = vmatpush.bf16.xpose.msra.mxu0 %v2852_v24  ;;  %v5324_v24 = vld [vmem:[#allocation23_spill] sm:$0xff] }
 0x387   : > { %v2596_v40 = vadd.f32 %v2595_v26, %v2427_v55  ;;  %v2261_v18 = vadd.f32 %v2260_v25, %v2092_v2  ;;  %2130 = vmatmul.bf16.gmra.mxu0 %v5321_v58 }
 0x388   : > { %2299 = vmatmul.bf16.gmra.mxu1 %v5322_v39 }
 0x389   : > { %v2748_v9 = vmax.f32 %v2596_v40, 0.0  ;;  %2468 = vmatmul.bf16.gmra.mxu2 %v5321_v58  ;;  %v2749_v8 = vmax.f32 %v2261_v18, 0.0 }
 0x38a   : > { %2637 = vmatmul.bf16.gmra.mxu3 %v5322_v39 }
 0x38b   : > { %v4928_v43 = vpack.c.bf16 %v2748_v9, %v2746_v38 }
 0x38c   : > { %v2429_v5 = vpop.f32.mrf.mxu2  ;;  %v2093_v52 = vpop.f32.mrf.mxu0 }
 0x38d   : > { %v2430_v20 = vadd.f32 %v2429_v5, %v4811_v51  ;;  %v2598_v60 = vpop.f32.mrf.mxu3  ;;  %2937 = vmatpush.bf16.xpose.msra.mxu1 %v2853_v53  ;;  %v2094_v4 = vadd.f32 %v2093_v52, %v4802_v22  ;;  %v2262_v46 = vpop.f32.mrf.mxu1  ;;  %2925 = vmatpush.bf16.xpose.msra.mxu0 %v4866_v54 }
 0x38f   : > { %v2599_v48 = vadd.f32 %v2598_v60, %v2430_v20  ;;  %v2263_v61 = vadd.f32 %v2262_v46, %v2094_v4  ;;  %v5325_v20 = vld [vmem:[#allocation24_spill] sm:$0xff]  ;;  %v5326_v4 = vld [vmem:[#allocation25_spill] sm:$0xff] }
 0x391   : > { %v2751_v62 = vmax.f32 %v2263_v61, 0.0  ;;  %v2750_v11 = vmax.f32 %v2599_v48, 0.0 }
 0x393   : > { %v4933_v42 = vpack.c.bf16 %v2751_v62, %v2749_v8 }
 0x394   : > { %v2431_v0 = vpop.f32.mrf.mxu2  ;;  %v2096_v59 = vpop.f32.mrf.mxu0 }
 0x395   : > { %v2432_v31 = vadd.f32 %v2431_v0, %v4811_v51  ;;  %v2600_v12 = vpop.f32.mrf.mxu3  ;;  %2938 = vmatpush.bf16.xpose.msra.mxu1 %v4877_v50  ;;  %v2097_v41 = vadd.f32 %v2096_v59, %v4802_v22  ;;  %v2265_v15 = vpop.f32.mrf.mxu1  ;;  %2926 = vmatpush.bf16.xpose.msra.mxu0 %v4854_v21 }
 0x397   : > { %v2601_v32 = vadd.f32 %v2600_v12, %v2432_v31  ;;  %v2266_v54 = vadd.f32 %v2265_v15, %v2097_v41  ;;  %2135 = vmatmul.bf16.gmra.mxu0 %v5323_v27 }
 0x398   : > { %2304 = vmatmul.bf16.gmra.mxu1 %v5324_v24 }
 0x399   : > { %v2752_v10 = vmax.f32 %v2601_v32, 0.0  ;;  %2473 = vmatmul.bf16.gmra.mxu2 %v5323_v27  ;;  %v2753_v40 = vmax.f32 %v2266_v54, 0.0 }
 0x39a   : > { %2642 = vmatmul.bf16.gmra.mxu3 %v5324_v24 }
 0x39b   : > { %v4943_v30 = vpack.c.bf16 %v2752_v10, %v2750_v11 }
 0x39c   : > { %v2434_v50 = vpop.f32.mrf.mxu2  ;;  %v2098_v21 = vpop.f32.mrf.mxu0 }
 0x39d   : > { %v2435_v55 = vadd.f32 %v2434_v50, %v4811_v51  ;;  %v2603_v26 = vpop.f32.mrf.mxu3  ;;  %2939 = vmatpush.bf16.xpose.msra.mxu1 %v4862_v17  ;;  %v2099_v13 = vadd.f32 %v2098_v21, %v4802_v22  ;;  %v2267_v2 = vpop.f32.mrf.mxu1  ;;  %2927 = vmatpush.bf16.xpose.msra.mxu0 %v4842_v56  ;;  %v5327_v50 = vld [vmem:[#allocation26_spill] sm:$0xff] }
 0x39f   : > { %v2604_v25 = vadd.f32 %v2603_v26, %v2435_v55  ;;  %v2268_v28 = vadd.f32 %v2267_v2, %v2099_v13  ;;  %v5328_v26 = vld [vmem:[#allocation27_spill] sm:$0xff] }
 0x3a1   : > { %v2755_v18 = vmax.f32 %v2268_v28, 0.0  ;;  %v2754_v60 = vmax.f32 %v2604_v25, 0.0 }
 0x3a3   : > { %v4949_v7 = vpack.c.bf16 %v2755_v18, %v2753_v40 }
 0x3a4   : > { %v2436_v58 = vpop.f32.mrf.mxu2  ;;  %v2101_v39 = vpop.f32.mrf.mxu0 }
 0x3a5   : > { %v2437_v38 = vadd.f32 %v2436_v58, %v4811_v51  ;;  %v2605_v9 = vpop.f32.mrf.mxu3  ;;  %2940 = vmatpush.bf16.xpose.msra.mxu1 %v4850_v3  ;;  %v2102_v17 = vadd.f32 %v2101_v39, %v4802_v22  ;;  %v2270_v53 = vpop.f32.mrf.mxu1  ;;  %2928 = vmatpush.bf16.xpose.msra.mxu0 %v4830_v47 }
 0x3a7   : > { %v2606_v5 = vadd.f32 %v2605_v9, %v2437_v38  ;;  %v2271_v56 = vadd.f32 %v2270_v53, %v2102_v17  ;;  %2140 = vmatmul.bf16.gmra.mxu0 %v5325_v20 }
 0x3a8   : > { %2309 = vmatmul.bf16.gmra.mxu1 %v5326_v4 }
 0x3a9   : > { %v2756_v52 = vmax.f32 %v2606_v5, 0.0  ;;  %2478 = vmatmul.bf16.gmra.mxu2 %v5325_v20  ;;  %v2757_v12 = vmax.f32 %v2271_v56, 0.0 }
 0x3aa   : > { %2647 = vmatmul.bf16.gmra.mxu3 %v5326_v4 }
 0x3ab   : > { %v4959_v46 = vpack.c.bf16 %v2756_v52, %v2754_v60 }
 0x3ac   : > { %v2439_v3 = vpop.f32.mrf.mxu2  ;;  %v2103_v47 = vpop.f32.mrf.mxu0 }
 0x3ad   : > { %v2440_v48 = vadd.f32 %v2439_v3, %v4811_v51  ;;  %v2608_v61 = vpop.f32.mrf.mxu3  ;;  %2941 = vmatpush.bf16.xpose.msra.mxu1 %v4838_v19  ;;  %v2104_v8 = vadd.f32 %v2103_v47, %v4802_v22  ;;  %v2272_v62 = vpop.f32.mrf.mxu1  ;;  %2929 = vmatpush.bf16.xpose.msra.mxu0 %v4818_v14 }
 0x3af   : > { %v2609_v0 = vadd.f32 %v2608_v61, %v2440_v48  ;;  %v2273_v31 = vadd.f32 %v2272_v62, %v2104_v8 }
 0x3b1   : > { %v2759_v59 = vmax.f32 %v2273_v31, 0.0  ;;  %v2758_v14 = vmax.f32 %v2609_v0, 0.0 }
 0x3b3   : > { %v4965_v15 = vpack.c.bf16 %v2759_v59, %v2757_v12 }
 0x3b4   : > { %v2441_v41 = vpop.f32.mrf.mxu2  ;;  %v2106_v27 = vpop.f32.mrf.mxu0 }
 0x3b5   : > { %v2442_v32 = vadd.f32 %v2441_v41, %v4811_v51  ;;  %v2610_v54 = vpop.f32.mrf.mxu3  ;;  %2942 = vmatpush.bf16.xpose.msra.mxu1 %v4826_v34  ;;  %v2107_v19 = vadd.f32 %v2106_v27, %v4802_v22  ;;  %v2275_v11 = vpop.f32.mrf.mxu1 }
 0x3b7   : > { %v2611_v10 = vadd.f32 %v2610_v54, %v2442_v32  ;;  %v2276_v24 = vadd.f32 %v2275_v11, %v2107_v19  ;;  %2145 = vmatmul.bf16.gmra.mxu0 %v5327_v50 }
 0x3b8   : > { %2314 = vmatmul.bf16.gmra.mxu1 %v5328_v26 }
 0x3b9   : > { %v2760_v55 = vmax.f32 %v2611_v10, 0.0  ;;  %2483 = vmatmul.bf16.gmra.mxu2 %v5327_v50  ;;  %v2761_v38 = vmax.f32 %v2276_v24, 0.0 }
 0x3ba   : > { %2652 = vmatmul.bf16.gmra.mxu3 %v5328_v26 }
 0x3bb   : > { %v4974_v21 = vpack.c.bf16 %v2760_v55, %v2758_v14 }
 0x3bc   : > { %v2444_v13 = vpop.f32.mrf.mxu2  ;;  %v2108_v25 = vpop.f32.mrf.mxu0 }
 0x3bd   : > { %v2445_v34 = vadd.f32 %v2444_v13, %v4811_v51  ;;  %v2613_v2 = vpop.f32.mrf.mxu3  ;;  %v2109_v28 = vadd.f32 %v2108_v25, %v4802_v22  ;;  %v2277_v40 = vpop.f32.mrf.mxu1 }
 0x3bf   : > { %v2614_v18 = vadd.f32 %v2613_v2, %v2445_v34  ;;  %v2278_v58 = vadd.f32 %v2277_v40, %v2109_v28 }
 0x3c1   : > { %v2763_v9 = vmax.f32 %v2278_v58, 0.0  ;;  %v2762_v52 = vmax.f32 %v2614_v18, 0.0 }
 0x3c3   : > { %v4978_v17 = vpack.c.bf16 %v2763_v9, %v2761_v38 }
 0x3c4   : > { %v2446_v39 = vpop.f32.mrf.mxu2  ;;  %v4981_v56 = vpop.f32.mrf.mxu0 }
 0x3c5   : > { %v2447_v53 = vadd.f32 %v2446_v39, %v4811_v51  ;;  %v2615_v5 = vpop.f32.mrf.mxu3  ;;  %v4983_v20 = vpop.f32.mrf.mxu1 }
 0x3c7   : > { %v2616_v60 = vadd.f32 %v2615_v5, %v2447_v53  ;;  %2150 = vmatmul.bf16.gmra.mxu0 %v4682_v45 }
 0x3c8   : > { %2319 = vmatmul.bf16.gmra.mxu1 %v4687_v6 }
 0x3c9   : > { %v2764_v4 = vmax.f32 %v2616_v60, 0.0  ;;  %2488 = vmatmul.bf16.gmra.mxu2 %v4682_v45 }
 0x3ca   : > { %2657 = vmatmul.bf16.gmra.mxu3 %v4687_v6 }
 0x3cb   : > { %v4989_v3 = vpack.c.bf16 %v2764_v4, %v2762_v52 }
 0x3cc   : > { %v4991_v48 = vpop.f32.mrf.mxu2  ;;  %v2113_v47 = vpop.f32.mrf.mxu0 }
 0x3cd   : > { %v4993_v61 = vpop.f32.mrf.mxu3  ;;  %v2282_v8 = vpop.f32.mrf.mxu1  ;;  %v2114_v52 = vadd.f32 %v2113_v47, %v4802_v22 }
 0x3d4   : > { %v4995_v62 = vpop.f32.mrf.mxu2  ;;  %v2116_v31 = vpop.f32.mrf.mxu0 }
 0x3d5   : > { %v4997_v0 = vpop.f32.mrf.mxu3  ;;  %v2285_v12 = vpop.f32.mrf.mxu1  ;;  %v2117_v34 = vadd.f32 %v2116_v31, %v4802_v22 }
 0x3d7   : > { %2155 = vmatmul.bf16.gmra.mxu0 %v4695_v1  ;;  %v2286_v9 = vadd.f32 %v2285_v12, %v2117_v34  ;;  %v2112_v12 = vadd.f32 %v4981_v56, %v4802_v22 }
 0x3d8   : > { %2324 = vmatmul.bf16.gmra.mxu1 %v4699_v23 }
 0x3d9   : > { %2493 = vmatmul.bf16.gmra.mxu2 %v4695_v1 }
 0x3da   : > { %2662 = vmatmul.bf16.gmra.mxu3 %v4699_v23 }
 0x3dc   : > { %v2454_v45 = vpop.f32.mrf.mxu2  ;;  %v2118_v59 = vpop.f32.mrf.mxu0 }
 0x3dd   : > { %v2623_v6 = vpop.f32.mrf.mxu3  ;;  %v2287_v41 = vpop.f32.mrf.mxu1  ;;  %v2119_v55 = vadd.f32 %v2118_v59, %v4802_v22  ;;  %v2455_v59 = vadd.f32 %v2454_v45, %v4811_v51 }
 0x3df   : > { %v2288_v25 = vadd.f32 %v2287_v41, %v2119_v55 }
 0x3e1   : > { %v2771_v4 = vmax.f32 %v2288_v25, 0.0 }
 0x3e4   : > { %v2456_v32 = vpop.f32.mrf.mxu2  ;;  %v2121_v27 = vpop.f32.mrf.mxu0 }
 0x3e5   : > { %v2625_v54 = vpop.f32.mrf.mxu3  ;;  %v2290_v19 = vpop.f32.mrf.mxu1  ;;  %v2122_v11 = vadd.f32 %v2121_v27, %v4802_v22  ;;  %v2457_v5 = vadd.f32 %v2456_v32, %v4811_v51 }
 0x3e7   : > { %2160 = vmatmul.bf16.gmra.mxu0 %v4703_v36  ;;  %v2291_v24 = vadd.f32 %v2290_v19, %v2122_v11  ;;  %v2769_v19 = vmax.f32 %v2286_v9, 0.0  ;;  %v2626_v32 = vadd.f32 %v2625_v54, %v2457_v5  ;;  %v2283_v11 = vadd.f32 %v2282_v8, %v2114_v52 }
 0x3e8   : > { %2329 = vmatmul.bf16.gmra.mxu1 %v4711_v33 }
 0x3e9   : > { %2498 = vmatmul.bf16.gmra.mxu2 %v4703_v36  ;;  %v2773_v2 = vmax.f32 %v2291_v24, 0.0  ;;  %v2772_v56 = vmax.f32 %v2626_v32, 0.0  ;;  %v2767_v8 = vmax.f32 %v2283_v11, 0.0 }
 0x3ea   : > { %2667 = vmatmul.bf16.gmra.mxu3 %v4711_v33 }
 0x3ec   : > { %v2459_v1 = vpop.f32.mrf.mxu2  ;;  %v2123_v10 = vpop.f32.mrf.mxu0 }
 0x3ed   : > { %v2628_v23 = vpop.f32.mrf.mxu3  ;;  %v2124_v50 = vadd.f32 %v2123_v10, %v4802_v22  ;;  %v2292_v14 = vpop.f32.mrf.mxu1  ;;  %v2460_v13 = vadd.f32 %v2459_v1, %v4811_v51  ;;  %v2624_v10 = vadd.f32 %v2623_v6, %v2455_v59  ;;  %v2450_v6 = vadd.f32 %v4991_v48, %v4811_v51 }
 0x3ef   : > { %v2293_v26 = vadd.f32 %v2292_v14, %v2124_v50  ;;  %v2629_v33 = vadd.f32 %v2628_v23, %v2460_v13  ;;  %v2870_v23 = vpack.c.bf16 %v2771_v4, %v2769_v19  ;;  %v2281_v14 = vadd.f32 %v4983_v20, %v2112_v12 }
 0x3f0   : > { %v2770_v13 = vmax.f32 %v2624_v10, 0.0 }
 0x3f1   : > { %v2775_v36 = vmax.f32 %v2293_v26, 0.0  ;;  %v2774_v41 = vmax.f32 %v2629_v33, 0.0  ;;  %v2765_v34 = vmax.f32 %v2281_v14, 0.0 }
 0x3f2   : > { %v2871_v25 = vpack.c.bf16 %v2772_v56, %v2770_v13 }
 0x3f3   : > { %v2872_v28 = vpack.c.bf16 %v2775_v36, %v2773_v2 }
 0x3f4   : > { %v2461_v40 = vpop.f32.mrf.mxu2  ;;  %v2126_v38 = vpop.f32.mrf.mxu0 }
 0x3f5   : > { %v2462_v18 = vadd.f32 %v2461_v40, %v4811_v51  ;;  %v2630_v58 = vpop.f32.mrf.mxu3  ;;  %v2127_v39 = vadd.f32 %v2126_v38, %v4802_v22  ;;  %v2295_v53 = vpop.f32.mrf.mxu1  ;;  %2948 = vmatpush.bf16.xpose.msra.mxu2 %v2872_v28  ;;  %v2868_v40 = vpack.c.bf16 %v2767_v8, %v2765_v34 }
 0x3f7   : > { %v2631_v60 = vadd.f32 %v2630_v58, %v2462_v18  ;;  %v2296_v31 = vadd.f32 %v2295_v53, %v2127_v39  ;;  %2165 = vmatmul.bf16.gmra.mxu0 %v4715_v16 }
 0x3f8   : > { %2334 = vmatmul.bf16.gmra.mxu1 %v4723_v35 }
 0x3f9   : > { %v2776_v27 = vmax.f32 %v2631_v60, 0.0  ;;  %2503 = vmatmul.bf16.gmra.mxu2 %v4715_v16  ;;  %v2777_v2 = vmax.f32 %v2296_v31, 0.0 }
 0x3fa   : > { %2672 = vmatmul.bf16.gmra.mxu3 %v4723_v35  ;;  %v2452_v35 = vadd.f32 %v4995_v62, %v4811_v51  ;;  %v2619_v62 = vadd.f32 %v4993_v61, %v2450_v6 }
 0x3fb   : > { %v2873_v47 = vpack.c.bf16 %v2776_v27, %v2774_v41 }
 0x3fc   : > { %v2464_v1 = vpop.f32.mrf.mxu2  ;;  %v2128_v50 = vpop.f32.mrf.mxu0  ;;  %v2621_v20 = vadd.f32 %v4997_v0, %v2452_v35  ;;  %v2766_v0 = vmax.f32 %v2619_v62, 0.0 }
 0x3fd   : > { %v2465_v45 = vadd.f32 %v2464_v1, %v4811_v51  ;;  %v2633_v24 = vpop.f32.mrf.mxu3  ;;  %2961 = vmatpush.bf16.xpose.msra.mxu3 %v2873_v47  ;;  %v2129_v16 = vadd.f32 %v2128_v50, %v4802_v22  ;;  %v2297_v55 = vpop.f32.mrf.mxu1  ;;  %2949 = vmatpush.bf16.xpose.msra.mxu2 %v2870_v23 }
 0x3fe   : > { %v2768_v39 = vmax.f32 %v2621_v20, 0.0 }
 0x3ff   : > { %v2634_v54 = vadd.f32 %v2633_v24, %v2465_v45  ;;  %v2298_v26 = vadd.f32 %v2297_v55, %v2129_v16 }
 0x400   : > { %v2869_v61 = vpack.c.bf16 %v2768_v39, %v2766_v0 }
 0x401   : > { %v2779_v36 = vmax.f32 %v2298_v26, 0.0  ;;  %v2778_v60 = vmax.f32 %v2634_v54, 0.0 }
 0x403   : > { %v5031_v33 = vpack.c.bf16 %v2779_v36, %v2777_v2 }
 0x404   : > { %v2466_v28 = vpop.f32.mrf.mxu2  ;;  %v2131_v38 = vpop.f32.mrf.mxu0 }
 0x405   : > { %v2467_v18 = vadd.f32 %v2466_v28, %v4811_v51  ;;  %v2635_v58 = vpop.f32.mrf.mxu3  ;;  %2962 = vmatpush.bf16.xpose.msra.mxu3 %v2871_v25  ;;  %v2132_v48 = vadd.f32 %v2131_v38, %v4802_v22  ;;  %v2300_v9 = vpop.f32.mrf.mxu1  ;;  %2950 = vmatpush.bf16.xpose.msra.mxu2 %v2868_v40 }
 0x407   : > { %v2636_v53 = vadd.f32 %v2635_v58, %v2467_v18  ;;  %v2301_v5 = vadd.f32 %v2300_v9, %v2132_v48  ;;  %2170 = vmatmul.bf16.gmra.mxu0 %v4727_v37  ;;  %v5329_v58 = vld [vmem:[#allocation28_spill] sm:$0xff] }
 0x408   : > { %2339 = vmatmul.bf16.gmra.mxu1 %v4735_v57 }
 0x409   : > { %v2780_v52 = vmax.f32 %v2636_v53, 0.0  ;;  %2508 = vmatmul.bf16.gmra.mxu2 %v4727_v37  ;;  %v2781_v11 = vmax.f32 %v2301_v5, 0.0 }
 0x40a   : > { %2677 = vmatmul.bf16.gmra.mxu3 %v4735_v57 }
 0x40b   : > { %v5040_v4 = vpack.c.bf16 %v2780_v52, %v2778_v60 }
 0x40c   : > { %v2469_v31 = vpop.f32.mrf.mxu2  ;;  %v2133_v27 = vpop.f32.mrf.mxu0 }
 0x40d   : > { %v2470_v59 = vadd.f32 %v2469_v31, %v4811_v51  ;;  %v2638_v41 = vpop.f32.mrf.mxu3  ;;  %2963 = vmatpush.bf16.xpose.msra.mxu3 %v2869_v61  ;;  %v2134_v12 = vadd.f32 %v2133_v27, %v4802_v22  ;;  %v2302_v19 = vpop.f32.mrf.mxu1  ;;  %2951 = vmatpush.bf16.xpose.msra.mxu2 %v4978_v17 }
 0x40f   : > { %v2639_v32 = vadd.f32 %v2638_v41, %v2470_v59  ;;  %v2303_v47 = vadd.f32 %v2302_v19, %v2134_v12 }
 0x411   : > { %v2783_v37 = vmax.f32 %v2303_v47, 0.0  ;;  %v2782_v16 = vmax.f32 %v2639_v32, 0.0 }
 0x413   : > { %v5045_v57 = vpack.c.bf16 %v2783_v37, %v2781_v11  ;;  %v5331_v11 = vld [vmem:[#allocation30_spill] sm:$0xff] }
 0x414   : > { %v2471_v1 = vpop.f32.mrf.mxu2  ;;  %v2136_v45 = vpop.f32.mrf.mxu0 }
 0x415   : > { %v2472_v23 = vadd.f32 %v2471_v1, %v4811_v51  ;;  %v2640_v10 = vpop.f32.mrf.mxu3  ;;  %2964 = vmatpush.bf16.xpose.msra.mxu3 %v4989_v3  ;;  %v2137_v24 = vadd.f32 %v2136_v45, %v4802_v22  ;;  %v2305_v50 = vpop.f32.mrf.mxu1  ;;  %2952 = vmatpush.bf16.xpose.msra.mxu2 %v4965_v15 }
 0x417   : > { %v2641_v14 = vadd.f32 %v2640_v10, %v2472_v23  ;;  %v2306_v17 = vadd.f32 %v2305_v50, %v2137_v24  ;;  %2175 = vmatmul.bf16.gmra.mxu0 %v4739_v63 }
 0x418   : > { %2344 = vmatmul.bf16.gmra.mxu1 %v4747_v29 }
 0x419   : > { %v2784_v55 = vmax.f32 %v2641_v14, 0.0  ;;  %2513 = vmatmul.bf16.gmra.mxu2 %v4739_v63  ;;  %v2785_v34 = vmax.f32 %v2306_v17, 0.0 }
 0x41a   : > { %2682 = vmatmul.bf16.gmra.mxu3 %v4747_v29 }
 0x41b   : > { %v5055_v35 = vpack.c.bf16 %v2784_v55, %v2782_v16  ;;  %v5332_v55 = vld [vmem:[#allocation31_spill] sm:$0xff] }
 0x41c   : > { %v2474_v3 = vpop.f32.mrf.mxu2  ;;  %v2138_v15 = vpop.f32.mrf.mxu0 }
 0x41d   : > { %v2475_v56 = vadd.f32 %v2474_v3, %v4811_v51  ;;  %v2643_v54 = vpop.f32.mrf.mxu3  ;;  %2965 = vmatpush.bf16.xpose.msra.mxu3 %v4974_v21  ;;  %v2139_v8 = vadd.f32 %v2138_v15, %v4802_v22  ;;  %v2307_v26 = vpop.f32.mrf.mxu1  ;;  %2953 = vmatpush.bf16.xpose.msra.mxu2 %v4949_v7  ;;  %v5333_v3 = vld [vmem:[#allocation32_spill] sm:$0xff] }
 0x41f   : > { %v2644_v6 = vadd.f32 %v2643_v54, %v2475_v56  ;;  %v2308_v13 = vadd.f32 %v2307_v26, %v2139_v8 }
 0x421   : > { %v2787_v63 = vmax.f32 %v2308_v13, 0.0  ;;  %v2786_v62 = vmax.f32 %v2644_v6, 0.0 }
 0x423   : > { %v5061_v29 = vpack.c.bf16 %v2787_v63, %v2785_v34  ;;  %v5334_v63 = vld [vmem:[#allocation33_spill] sm:$0xff] }
 0x424   : > { %v2476_v2 = vpop.f32.mrf.mxu2  ;;  %v2141_v25 = vpop.f32.mrf.mxu0 }
 0x425   : > { %v2477_v36 = vadd.f32 %v2476_v2, %v4811_v51  ;;  %v2645_v20 = vpop.f32.mrf.mxu3  ;;  %2966 = vmatpush.bf16.xpose.msra.mxu3 %v4959_v46  ;;  %v2142_v21 = vadd.f32 %v2141_v25, %v4802_v22  ;;  %v2310_v28 = vpop.f32.mrf.mxu1  ;;  %2954 = vmatpush.bf16.xpose.msra.mxu2 %v4933_v42  ;;  %v5335_v2 = vld [vmem:[#allocation34_spill] sm:$0xff] }
 0x427   : > { %v2646_v40 = vadd.f32 %v2645_v20, %v2477_v36  ;;  %v2311_v7 = vadd.f32 %v2310_v28, %v2142_v21  ;;  %2180 = vmatmul.bf16.gmra.mxu0 %v4751_v49 }
 0x428   : > { %2349 = vmatmul.bf16.gmra.mxu1 %v5329_v58 }
 0x429   : > { %v2788_v18 = vmax.f32 %v2646_v40, 0.0  ;;  %2518 = vmatmul.bf16.gmra.mxu2 %v4751_v49  ;;  %v2789_v60 = vmax.f32 %v2311_v7, 0.0 }
 0x42a   : > { %2687 = vmatmul.bf16.gmra.mxu3 %v5329_v58  ;;  %v5337_v58 = vld [vmem:[#allocation36_spill] sm:$0xff] }
 0x42b   : > { %v5071_v38 = vpack.c.bf16 %v2788_v18, %v2786_v62  ;;  %v5336_v18 = vld [vmem:[#allocation35_spill] sm:$0xff] }
 0x42c   : > { %v2479_v46 = vpop.f32.mrf.mxu2  ;;  %v2143_v42 = vpop.f32.mrf.mxu0 }
 0x42d   : > { %v2480_v48 = vadd.f32 %v2479_v46, %v4811_v51  ;;  %v2648_v9 = vpop.f32.mrf.mxu3  ;;  %2967 = vmatpush.bf16.xpose.msra.mxu3 %v4943_v30  ;;  %v2144_v39 = vadd.f32 %v2143_v42, %v4802_v22  ;;  %v2312_v53 = vpop.f32.mrf.mxu1  ;;  %2955 = vmatpush.bf16.xpose.msra.mxu2 %v4919_v44  ;;  %v5330_v44 = vld [vmem:[#allocation29_spill] sm:$0xff] }
 0x42f   : > { %v2649_v5 = vadd.f32 %v2648_v9, %v2480_v48  ;;  %v2313_v0 = vadd.f32 %v2312_v53, %v2144_v39 }
 0x431   : > { %v2791_v49 = vmax.f32 %v2313_v0, 0.0  ;;  %v2790_v32 = vmax.f32 %v2649_v5, 0.0 }
 0x433   : > { %v5077_v61 = vpack.c.bf16 %v2791_v49, %v2789_v60 }
 0x434   : > { %v2481_v52 = vpop.f32.mrf.mxu2  ;;  %v2146_v41 = vpop.f32.mrf.mxu0 }
 0x435   : > { %v2482_v31 = vadd.f32 %v2481_v52, %v4811_v51  ;;  %v2650_v59 = vpop.f32.mrf.mxu3  ;;  %2968 = vmatpush.bf16.xpose.msra.mxu3 %v4928_v43  ;;  %v2147_v30 = vadd.f32 %v2146_v41, %v4802_v22  ;;  %v2315_v27 = vpop.f32.mrf.mxu1 }
 0x437   : > { %v2651_v12 = vadd.f32 %v2650_v59, %v2482_v31  ;;  %v5082_v19 = vadd.f32 %v2315_v27, %v2147_v30  ;;  %2185 = vmatmul.bf16.gmra.mxu0 %v5330_v44 }
 0x438   : > { %2354 = vmatmul.bf16.gmra.mxu1 %v5331_v11 }
 0x439   : > { %v2792_v47 = vmax.f32 %v2651_v12, 0.0  ;;  %2523 = vmatmul.bf16.gmra.mxu2 %v5330_v44 }
 0x43a   : > { %2692 = vmatmul.bf16.gmra.mxu3 %v5331_v11 }
 0x43b   : > { %v5088_v37 = vpack.c.bf16 %v2792_v47, %v2790_v32 }
 0x43c   : > { %v2484_v43 = vpop.f32.mrf.mxu2  ;;  %v5091_v10 = vpop.f32.mrf.mxu0 }
 0x43d   : > { %v2485_v1 = vadd.f32 %v2484_v43, %v4811_v51  ;;  %v2653_v23 = vpop.f32.mrf.mxu3  ;;  %v5093_v45 = vpop.f32.mrf.mxu1 }
 0x43f   : > { %v5095_v24 = vadd.f32 %v2653_v23, %v2485_v1 }
 0x444   : > { %v5097_v50 = vpop.f32.mrf.mxu2  ;;  %v2151_v17 = vpop.f32.mrf.mxu0 }
 0x445   : > { %v5099_v14 = vpop.f32.mrf.mxu3  ;;  %v5101_v16 = vpop.f32.mrf.mxu1 }
 0x447   : > { %2190 = vmatmul.bf16.gmra.mxu0 %v5332_v55 }
 0x448   : > { %2359 = vmatmul.bf16.gmra.mxu1 %v5333_v3 }
 0x449   : > { %2528 = vmatmul.bf16.gmra.mxu2 %v5332_v55 }
 0x44a   : > { %2697 = vmatmul.bf16.gmra.mxu3 %v5333_v3 }
 0x44c   : > { %v5107_v56 = vpop.f32.mrf.mxu2  ;;  %v2153_v15 = vpop.f32.mrf.mxu0 }
 0x44d   : > { %v5109_v54 = vpop.f32.mrf.mxu3  ;;  %v2322_v8 = vpop.f32.mrf.mxu1  ;;  %v2154_v3 = vadd.f32 %v2153_v15, %v4802_v22 }
 0x454   : > { %v5111_v26 = vpop.f32.mrf.mxu2  ;;  %v2156_v13 = vpop.f32.mrf.mxu0 }
 0x455   : > { %v5113_v6 = vpop.f32.mrf.mxu3  ;;  %v2325_v34 = vpop.f32.mrf.mxu1  ;;  %v2157_v52 = vadd.f32 %v2156_v13, %v4802_v22 }
 0x457   : > { %2195 = vmatmul.bf16.gmra.mxu0 %v5334_v63  ;;  %v2326_v11 = vadd.f32 %v2325_v34, %v2157_v52 }
 0x458   : > { %2364 = vmatmul.bf16.gmra.mxu1 %v5335_v2 }
 0x459   : > { %2533 = vmatmul.bf16.gmra.mxu2 %v5334_v63 }
 0x45a   : > { %2702 = vmatmul.bf16.gmra.mxu3 %v5335_v2 }
 0x45c   : > { %v2494_v36 = vpop.f32.mrf.mxu2  ;;  %v2158_v25 = vpop.f32.mrf.mxu0 }
 0x45d   : > { %v2663_v20 = vpop.f32.mrf.mxu3  ;;  %v2327_v21 = vpop.f32.mrf.mxu1  ;;  %v2159_v0 = vadd.f32 %v2158_v25, %v4802_v22  ;;  %v2495_v2 = vadd.f32 %v2494_v36, %v4811_v51 }
 0x45f   : > { %v2328_v41 = vadd.f32 %v2327_v21, %v2159_v0 }
 0x461   : > { %v2803_v13 = vmax.f32 %v2328_v41, 0.0 }
 0x464   : > { %v2496_v28 = vpop.f32.mrf.mxu2  ;;  %v2161_v7 = vpop.f32.mrf.mxu0 }
 0x465   : > { %v2665_v40 = vpop.f32.mrf.mxu3  ;;  %v2330_v62 = vpop.f32.mrf.mxu1  ;;  %v2162_v46 = vadd.f32 %v2161_v7, %v4802_v22  ;;  %v2497_v23 = vadd.f32 %v2496_v28, %v4811_v51  ;;  %v2152_v7 = vadd.f32 %v2151_v17, %v4802_v22  ;;  %v2492_v17 = vadd.f32 %v5111_v26, %v4811_v51 }
 0x467   : > { %2200 = vmatmul.bf16.gmra.mxu0 %v5336_v18  ;;  %v2331_v39 = vadd.f32 %v2330_v62, %v2162_v46  ;;  %v2801_v62 = vmax.f32 %v2326_v11, 0.0 }
 0x468   : > { %2369 = vmatmul.bf16.gmra.mxu1 %v5337_v58 }
 0x469   : > { %2538 = vmatmul.bf16.gmra.mxu2 %v5336_v18  ;;  %v2805_v31 = vmax.f32 %v2331_v39, 0.0  ;;  %v2666_v18 = vadd.f32 %v2665_v40, %v2497_v23  ;;  %v2886_v46 = vpack.c.bf16 %v2803_v13, %v2801_v62  ;;  %v2321_v39 = vadd.f32 %v5101_v16, %v2152_v7 }
 0x46a   : > { %2707 = vmatmul.bf16.gmra.mxu3 %v5337_v58  ;;  %v2323_v58 = vadd.f32 %v2322_v8, %v2154_v3  ;;  %v2149_v8 = vadd.f32 %v5091_v10, %v4802_v22 }
 0x46b   : > { %v2804_v40 = vmax.f32 %v2666_v18, 0.0  ;;  %v2797_v52 = vmax.f32 %v2321_v39, 0.0 }
 0x46c   : > { %v2499_v48 = vpop.f32.mrf.mxu2  ;;  %v2163_v42 = vpop.f32.mrf.mxu0 }
 0x46d   : > { %v2668_v9 = vpop.f32.mrf.mxu3  ;;  %v2164_v53 = vadd.f32 %v2163_v42, %v4802_v22  ;;  %v2332_v5 = vpop.f32.mrf.mxu1  ;;  %v2500_v49 = vadd.f32 %v2499_v48, %v4811_v51 }
 0x46f   : > { %v2333_v60 = vadd.f32 %v2332_v5, %v2164_v53  ;;  %v2669_v12 = vadd.f32 %v2668_v9, %v2500_v49  ;;  %v2664_v9 = vadd.f32 %v2663_v20, %v2495_v2  ;;  %v2799_v20 = vmax.f32 %v2323_v58, 0.0 }
 0x471   : > { %v2807_v59 = vmax.f32 %v2333_v60, 0.0  ;;  %v2806_v25 = vmax.f32 %v2669_v12, 0.0  ;;  %v2490_v60 = vadd.f32 %v5107_v56, %v4811_v51  ;;  %v2802_v49 = vmax.f32 %v2664_v9, 0.0 }
 0x472   : > { %v2884_v12 = vpack.c.bf16 %v2799_v20, %v2797_v52 }
 0x473   : > { %v2888_v30 = vpack.c.bf16 %v2807_v59, %v2805_v31  ;;  %v2661_v59 = vadd.f32 %v5113_v6, %v2492_v17  ;;  %v2887_v41 = vpack.c.bf16 %v2804_v40, %v2802_v49  ;;  %v2659_v10 = vadd.f32 %v5109_v54, %v2490_v60 }
 0x474   : > { %v2501_v27 = vpop.f32.mrf.mxu2  ;;  %v2166_v47 = vpop.f32.mrf.mxu0  ;;  %v2487_v6 = vadd.f32 %v5097_v50, %v4811_v51  ;;  %v2793_v54 = vmax.f32 %v5082_v19, 0.0  ;;  %v2794_v19 = vmax.f32 %v5095_v24, 0.0 }
 0x475   : > { %v2502_v44 = vadd.f32 %v2501_v27, %v4811_v51  ;;  %v2670_v32 = vpop.f32.mrf.mxu3  ;;  %v2167_v43 = vadd.f32 %v2166_v47, %v4802_v22  ;;  %v2335_v1 = vpop.f32.mrf.mxu1  ;;  %2974 = vmatpush.bf16.xpose.msrb.mxu0 %v2888_v30  ;;  %v2318_v30 = vadd.f32 %v5093_v45, %v2149_v8 }
 0x477   : > { %v2671_v55 = vadd.f32 %v2670_v32, %v2502_v44  ;;  %v2336_v63 = vadd.f32 %v2335_v1, %v2167_v43  ;;  %v2800_v43 = vmax.f32 %v2661_v59, 0.0  ;;  %v2795_v1 = vmax.f32 %v2318_v30, 0.0 }
 0x479   : > { %v2808_v21 = vmax.f32 %v2671_v55, 0.0  ;;  %v2809_v16 = vmax.f32 %v2336_v63, 0.0  ;;  %v2798_v55 = vmax.f32 %v2659_v10, 0.0  ;;  %v2656_v63 = vadd.f32 %v5099_v14, %v2487_v6 }
 0x47a   : > { %v2882_v7 = vpack.c.bf16 %v2795_v1, %v2793_v54 }
 0x47b   : > { %v2889_v34 = vpack.c.bf16 %v2808_v21, %v2806_v25  ;;  %v2885_v25 = vpack.c.bf16 %v2800_v43, %v2798_v55 }
 0x47c   : > { %v2504_v48 = vpop.f32.mrf.mxu2  ;;  %v2168_v15 = vpop.f32.mrf.mxu0 }
 0x47d   : > { %v2505_v28 = vadd.f32 %v2504_v48, %v4811_v51  ;;  %v2673_v42 = vpop.f32.mrf.mxu3  ;;  %2987 = vmatpush.bf16.xpose.msrb.mxu1 %v2889_v34  ;;  %v2169_v36 = vadd.f32 %v2168_v15, %v4802_v22  ;;  %v2337_v53 = vpop.f32.mrf.mxu1  ;;  %2975 = vmatpush.bf16.xpose.msrb.mxu0 %v2886_v46  ;;  %v2796_v46 = vmax.f32 %v2656_v63, 0.0 }
 0x47f   : > { %v2674_v5 = vadd.f32 %v2673_v42, %v2505_v28  ;;  %v2338_v0 = vadd.f32 %v2337_v53, %v2169_v36  ;;  %v2883_v42 = vpack.c.bf16 %v2796_v46, %v2794_v19 }
 0x481   : > { %v2811_v31 = vmax.f32 %v2338_v0, 0.0  ;;  %v2810_v3 = vmax.f32 %v2674_v5, 0.0 }
 0x483   : > { %v5145_v26 = vpack.c.bf16 %v2811_v31, %v2809_v16 }
 0x484   : > { %v2506_v27 = vpop.f32.mrf.mxu2  ;;  %v2171_v56 = vpop.f32.mrf.mxu0 }
 0x485   : > { %v2507_v44 = vadd.f32 %v2506_v27, %v4811_v51  ;;  %v2675_v32 = vpop.f32.mrf.mxu3  ;;  %2988 = vmatpush.bf16.xpose.msrb.mxu1 %v2887_v41  ;;  %v2172_v47 = vadd.f32 %v2171_v56, %v4802_v22  ;;  %v2340_v11 = vpop.f32.mrf.mxu1  ;;  %2976 = vmatpush.bf16.xpose.msrb.mxu0 %v2884_v12 }
 0x487   : > { %v2676_v45 = vadd.f32 %v2675_v32, %v2507_v44  ;;  %v2341_v23 = vadd.f32 %v2340_v11, %v2172_v47 }
 0x489   : > { %v2812_v13 = vmax.f32 %v2676_v45, 0.0  ;;  %v2813_v14 = vmax.f32 %v2341_v23, 0.0 }
 0x48b   : > { %v5154_v2 = vpack.c.bf16 %v2812_v13, %v2810_v3 }
 0x48c   : > { %v2509_v21 = vpop.f32.mrf.mxu2  ;;  %v2173_v50 = vpop.f32.mrf.mxu0 }
 0x48d   : > { %v2510_v62 = vadd.f32 %v2509_v21, %v4811_v51  ;;  %v2678_v18 = vpop.f32.mrf.mxu3  ;;  %2989 = vmatpush.bf16.xpose.msrb.mxu1 %v2885_v25  ;;  %v2174_v34 = vadd.f32 %v2173_v50, %v4802_v22  ;;  %v2342_v58 = vpop.f32.mrf.mxu1  ;;  %2977 = vmatpush.bf16.xpose.msrb.mxu0 %v2882_v7 }
 0x48f   : > { %v2679_v48 = vadd.f32 %v2678_v18, %v2510_v62  ;;  %v2343_v9 = vadd.f32 %v2342_v58, %v2174_v34 }
 0x491   : > { %v2815_v28 = vmax.f32 %v2343_v9, 0.0  ;;  %v2814_v0 = vmax.f32 %v2679_v48, 0.0 }
 0x493   : > { %v5159_v15 = vpack.c.bf16 %v2815_v28, %v2813_v14 }
 0x494   : > { %v2511_v39 = vpop.f32.mrf.mxu2  ;;  %v2176_v17 = vpop.f32.mrf.mxu0 }
 0x495   : > { %v2512_v36 = vadd.f32 %v2511_v39, %v4811_v51  ;;  %v2680_v53 = vpop.f32.mrf.mxu3  ;;  %2990 = vmatpush.bf16.xpose.msrb.mxu1 %v2883_v42  ;;  %v2177_v40 = vadd.f32 %v2176_v17, %v4802_v22  ;;  %v2345_v5 = vpop.f32.mrf.mxu1  ;;  %2978 = vmatpush.bf16.xpose.msrb.mxu0 %v5077_v61 }
 0x497   : > { %v2681_v8 = vadd.f32 %v2680_v53, %v2512_v36  ;;  %v2346_v20 = vadd.f32 %v2345_v5, %v2177_v40 }
 0x499   : > { %v2816_v24 = vmax.f32 %v2681_v8, 0.0  ;;  %v2817_v27 = vmax.f32 %v2346_v20, 0.0 }
 0x49b   : > { %v5164_v60 = vpack.c.bf16 %v2816_v24, %v2814_v0 }
 0x49c   : > { %v2514_v49 = vpop.f32.mrf.mxu2  ;;  %v2178_v31 = vpop.f32.mrf.mxu0 }
 0x49d   : > { %v2515_v52 = vadd.f32 %v2514_v49, %v4811_v51  ;;  %v2683_v16 = vpop.f32.mrf.mxu3  ;;  %2991 = vmatpush.bf16.xpose.msrb.mxu1 %v5088_v37  ;;  %v2179_v59 = vadd.f32 %v2178_v31, %v4802_v22  ;;  %v2347_v41 = vpop.f32.mrf.mxu1  ;;  %2979 = vmatpush.bf16.xpose.msrb.mxu0 %v5061_v29 }
 0x49f   : > { %v2684_v30 = vadd.f32 %v2683_v16, %v2515_v52  ;;  %v2348_v61 = vadd.f32 %v2347_v41, %v2179_v59 }
 0x4a1   : > { %v2819_v12 = vmax.f32 %v2348_v61, 0.0  ;;  %v2818_v43 = vmax.f32 %v2684_v30, 0.0 }
 0x4a3   : > { %v5170_v10 = vpack.c.bf16 %v2819_v12, %v2817_v27 }
 0x4a4   : > { %v2516_v44 = vpop.f32.mrf.mxu2  ;;  %v2181_v47 = vpop.f32.mrf.mxu0 }
 0x4a5   : > { %v2517_v32 = vadd.f32 %v2516_v44, %v4811_v51  ;;  %v2685_v56 = vpop.f32.mrf.mxu3  ;;  %2992 = vmatpush.bf16.xpose.msrb.mxu1 %v5071_v38  ;;  %v2182_v37 = vadd.f32 %v2181_v47, %v4802_v22  ;;  %v2350_v11 = vpop.f32.mrf.mxu1  ;;  %2980 = vmatpush.bf16.xpose.msrb.mxu0 %v5045_v57 }
 0x4a7   : > { %v2686_v6 = vadd.f32 %v2685_v56, %v2517_v32  ;;  %v2351_v29 = vadd.f32 %v2350_v11, %v2182_v37 }
 0x4a9   : > { %v2820_v45 = vmax.f32 %v2686_v6, 0.0  ;;  %v2821_v25 = vmax.f32 %v2351_v29, 0.0 }
 0x4ab   : > { %v5176_v1 = vpack.c.bf16 %v2820_v45, %v2818_v43 }
 0x4ac   : > { %v2519_v23 = vpop.f32.mrf.mxu2  ;;  %v2183_v13 = vpop.f32.mrf.mxu0 }
 0x4ad   : > { %v2520_v55 = vadd.f32 %v2519_v23, %v4811_v51  ;;  %v2688_v3 = vpop.f32.mrf.mxu3  ;;  %2993 = vmatpush.bf16.xpose.msrb.mxu1 %v5055_v35  ;;  %v2184_v38 = vadd.f32 %v2183_v13, %v4802_v22  ;;  %v2352_v54 = vpop.f32.mrf.mxu1  ;;  %2981 = vmatpush.bf16.xpose.msrb.mxu0 %v5031_v33 }
 0x4af   : > { %v2689_v63 = vadd.f32 %v2688_v3, %v2520_v55  ;;  %v2353_v57 = vadd.f32 %v2352_v54, %v2184_v38 }
 0x4b1   : > { %v2823_v21 = vmax.f32 %v2353_v57, 0.0  ;;  %v2822_v9 = vmax.f32 %v2689_v63, 0.0 }
 0x4b3   : > { %v5182_v7 = vpack.c.bf16 %v2823_v21, %v2821_v25 }
 0x4b4   : > { %v2521_v62 = vpop.f32.mrf.mxu2  ;;  %v2186_v34 = vpop.f32.mrf.mxu0 }
 0x4b5   : > { %v2522_v18 = vadd.f32 %v2521_v62, %v4811_v51  ;;  %v2690_v50 = vpop.f32.mrf.mxu3  ;;  %2994 = vmatpush.bf16.xpose.msrb.mxu1 %v5040_v4  ;;  %v2187_v35 = vadd.f32 %v2186_v34, %v4802_v22  ;;  %v2355_v58 = vpop.f32.mrf.mxu1 }
 0x4b7   : > { %v2691_v46 = vadd.f32 %v2690_v50, %v2522_v18  ;;  %v2356_v48 = vadd.f32 %v2355_v58, %v2187_v35 }
 0x4b9   : > { %v2824_v33 = vmax.f32 %v2691_v46, 0.0  ;;  %v2825_v40 = vmax.f32 %v2356_v48, 0.0 }
 0x4bb   : > { %v5187_v19 = vpack.c.bf16 %v2824_v33, %v2822_v9 }
 0x4bc   : > { %v2524_v14 = vpop.f32.mrf.mxu2  ;;  %v2188_v39 = vpop.f32.mrf.mxu0 }
 0x4bd   : > { %v2525_v28 = vadd.f32 %v2524_v14, %v4811_v51  ;;  %v2693_v42 = vpop.f32.mrf.mxu3  ;;  %v2189_v36 = vadd.f32 %v2188_v39, %v4802_v22  ;;  %v2357_v53 = vpop.f32.mrf.mxu1 }
 0x4bf   : > { %v2694_v17 = vadd.f32 %v2693_v42, %v2525_v28  ;;  %v2358_v4 = vadd.f32 %v2357_v53, %v2189_v36 }
 0x4c1   : > { %v2827_v5 = vmax.f32 %v2358_v4, 0.0  ;;  %v2826_v31 = vmax.f32 %v2694_v17, 0.0 }
 0x4c3   : > { %v5191_v8 = vpack.c.bf16 %v2827_v5, %v2825_v40 }
 0x4c4   : > { %v2526_v20 = vpop.f32.mrf.mxu2  ;;  %v2191_v49 = vpop.f32.mrf.mxu0 }
 0x4c5   : > { %v2527_v0 = vadd.f32 %v2526_v20, %v4811_v51  ;;  %v2695_v24 = vpop.f32.mrf.mxu3  ;;  %v2360_v52 = vpop.f32.mrf.mxu1  ;;  %v2192_v5 = vadd.f32 %v2191_v49, %v4802_v22 }
 0x4c7   : > { %v2696_v16 = vadd.f32 %v2695_v24, %v2527_v0  ;;  %v2841_v0 = vld [vmem:[#allocation10] sm:$0x3] }
 0x4c8   : > { %2908 = vst [vmem:[#allocation1] ss:$9 sm:$0xff] %v2841_v0 }
 0x4c9   : > { %v2828_v59 = vmax.f32 %v2696_v16, 0.0 }
 0x4cb   : > { %v5194_v41 = vpack.c.bf16 %v2828_v59, %v2826_v31 }
 0x4cc   : > { %v2529_v30 = vpop.f32.mrf.mxu2  ;;  %v2193_v27 = vpop.f32.mrf.mxu0 }
 0x4cd   : > { %v5196_v61 = vpop.f32.mrf.mxu3  ;;  %v2362_v12 = vpop.f32.mrf.mxu1  ;;  %v2194_v36 = vadd.f32 %v2193_v27, %v4802_v22 }
 0x4cf   : > { %v2363_v31 = vadd.f32 %v2362_v12, %v2194_v36  ;;  %v2910_v12 = vld [vmem:[#allocation1 + $0x9] sm:$0xff] }
 0x4d0   : > { %2943 = vmatmul.bf16.vlgmr.msra.gmra.mxu1 %v2910_v12  ;;  %2969 = vmatmul.bf16.vlgmr.msra.gmra.mxu3 %v2910_v12 }
 0x4d4   : > { %v2531_v44 = vpop.f32.mrf.mxu2  ;;  %v2196_v56 = vpop.f32.mrf.mxu0 }
 0x4d5   : > { %v2700_v32 = vpop.f32.mrf.mxu3  ;;  %v2365_v47 = vpop.f32.mrf.mxu1  ;;  %v2197_v50 = vadd.f32 %v2196_v56, %v4802_v22  ;;  %v2532_v27 = vadd.f32 %v2531_v44, %v4811_v51 }
 0x4d7   : > { %v2366_v14 = vadd.f32 %v2365_v47, %v2197_v50  ;;  %v2361_v47 = vadd.f32 %v2360_v52, %v2192_v5  ;;  %v2701_v49 = vadd.f32 %v2700_v32, %v2532_v27 }
 0x4d9   : > { %v2833_v20 = vmax.f32 %v2366_v14, 0.0  ;;  %v2832_v52 = vmax.f32 %v2701_v49, 0.0 }
 0x4dc   : > { %v2534_v37 = vpop.f32.mrf.mxu2  ;;  %v2198_v6 = vpop.f32.mrf.mxu0 }
 0x4dd   : > { %v2703_v11 = vpop.f32.mrf.mxu3  ;;  %v2367_v29 = vpop.f32.mrf.mxu1  ;;  %v2199_v21 = vadd.f32 %v2198_v6, %v4802_v22  ;;  %v2535_v17 = vadd.f32 %v2534_v37, %v4811_v51  ;;  %v2530_v37 = vadd.f32 %v2529_v30, %v4811_v51 }
 0x4df   : > { %v2368_v58 = vadd.f32 %v2367_v29, %v2199_v21  ;;  %v2704_v56 = vadd.f32 %v2703_v11, %v2535_v17  ;;  %v2831_v29 = vmax.f32 %v2363_v31, 0.0  ;;  %v2699_v11 = vadd.f32 %v5196_v61, %v2530_v37 }
 0x4e0   : > { %2995 = vmatmul.bf16.vlgmr.msrb.gmra.mxu1 %v2910_v12 }
 0x4e1   : > { %v2835_v53 = vmax.f32 %v2368_v58, 0.0  ;;  %v2830_v44 = vmax.f32 %v2699_v11, 0.0 }
 0x4e3   : > { %v2902_v59 = vpack.c.bf16 %v2835_v53, %v2833_v20 }
 0x4e4   : > { %v2536_v43 = vpop.f32.mrf.mxu2  ;;  %v2201_v23 = vpop.f32.mrf.mxu0 }
 0x4e5   : > { %v2705_v45 = vpop.f32.mrf.mxu3  ;;  %v2370_v55 = vpop.f32.mrf.mxu1  ;;  %v2202_v3 = vadd.f32 %v2201_v23, %v4802_v22  ;;  %v2537_v42 = vadd.f32 %v2536_v43, %v4811_v51  ;;  %v2834_v43 = vmax.f32 %v2704_v56, 0.0  ;;  %v2829_v23 = vmax.f32 %v2361_v47, 0.0 }
 0x4e7   : > { %v2371_v63 = vadd.f32 %v2370_v55, %v2202_v3  ;;  %v2706_v24 = vadd.f32 %v2705_v45, %v2537_v42  ;;  %v2900_v45 = vpack.c.bf16 %v2831_v29, %v2829_v23  ;;  %v2901_v3 = vpack.c.bf16 %v2832_v52, %v2830_v44 }
 0x4e9   : > { %v2837_v34 = vmax.f32 %v2371_v63, 0.0  ;;  %v2836_v6 = vmax.f32 %v2706_v24, 0.0 }
 0x4eb   : > { %v2903_v55 = vpack.c.bf16 %v2836_v6, %v2834_v43 }
 0x4ec   : > { %v2539_v13 = vpop.f32.mrf.mxu2  ;;  %v2203_v54 = vpop.f32.mrf.mxu0 }
 0x4ed   : > { %v2708_v38 = vpop.f32.mrf.mxu3  ;;  %v2204_v57 = vadd.f32 %v2203_v54, %v4802_v22  ;;  %v2372_v25 = vpop.f32.mrf.mxu1  ;;  %v2540_v18 = vadd.f32 %v2539_v13, %v4811_v51  ;;  %v2909_v22 = vld [vmem:[#allocation1] sm:$0xff]  ;;  %v2906_v13 = vld [vmem:[%s4364_s15] sm:$0xf] }
 0x4ee   : > { %2956 = vmatmul.bf16.vlgmr.msra.gmra.mxu2 %v2909_v22  ;;  %2930 = vmatmul.bf16.vlgmr.msra.gmra.mxu0 %v2909_v22  ;;  %v2914_v54 = vperm.slane %v2906_v13, 0 }
 0x4ef   : > { %v2373_v62 = vadd.f32 %v2372_v25, %v2204_v57  ;;  %v2709_v9 = vadd.f32 %v2708_v38, %v2540_v18  ;;  %v2916_v38 = vperm.slane %v2906_v13, 2  ;;  %v2917_v57 = vperm.slane %v2906_v13, 3 }
 0x4f1   : > { %v2839_v35 = vmax.f32 %v2373_v62, 0.0  ;;  %v2838_v4 = vmax.f32 %v2709_v9, 0.0 }
 0x4f3   : > { %v2904_v46 = vpack.c.bf16 %v2839_v35, %v2837_v34  ;;  %v3040_v35 = vlaneseq }
 0x4f4   : > { %v2541_v48 = vpop.f32.mrf.mxu2 }
 0x4f5   : > { %v2542_v33 = vadd.f32 %v2541_v48, %v4811_v51  ;;  %v2710_v28 = vpop.f32.mrf.mxu3  ;;  %3000 = vmatpush.bf16.xpose.msrb.mxu2 %v2904_v46  ;;  %vm3042_vm3 = vcmp.lt.s32.totalorder %v3040_v35, 512 }
 0x4f7   : > { %v2711_v39 = vadd.f32 %v2710_v28, %v2542_v33 }
 0x4f9   : > { %v2840_v40 = vmax.f32 %v2711_v39, 0.0 }
 0x4fb   : > { %v2905_v16 = vpack.c.bf16 %v2840_v40, %v2838_v4 }
 0x4fd   : > { %3013 = vmatpush.bf16.xpose.msrb.mxu3 %v2905_v16  ;;  %3001 = vmatpush.bf16.xpose.msrb.mxu2 %v2902_v59 }
 0x4fe   : > { %2982 = vmatmul.bf16.vlgmr.msrb.gmra.mxu0 %v2909_v22 }
 0x505   : > { %3014 = vmatpush.bf16.xpose.msrb.mxu3 %v2903_v55  ;;  %3002 = vmatpush.bf16.xpose.msrb.mxu2 %v2900_v45 }
 0x50d   : > { %3015 = vmatpush.bf16.xpose.msrb.mxu3 %v2901_v3  ;;  %3003 = vmatpush.bf16.xpose.msrb.mxu2 %v5191_v8 }
 0x515   : > { %3016 = vmatpush.bf16.xpose.msrb.mxu3 %v5194_v41  ;;  %3004 = vmatpush.bf16.xpose.msrb.mxu2 %v5182_v7 }
 0x51d   : > { %3017 = vmatpush.bf16.xpose.msrb.mxu3 %v5187_v19  ;;  %3005 = vmatpush.bf16.xpose.msrb.mxu2 %v5170_v10 }
 0x525   : > { %3018 = vmatpush.bf16.xpose.msrb.mxu3 %v5176_v1  ;;  %3006 = vmatpush.bf16.xpose.msrb.mxu2 %v5159_v15 }
 0x52d   : > { %3019 = vmatpush.bf16.xpose.msrb.mxu3 %v5164_v60  ;;  %3007 = vmatpush.bf16.xpose.msrb.mxu2 %v5145_v26  ;;  %v2915_v26 = vperm.slane %v2906_v13, 1 }
 0x534   : > { %3008 = vmatmul.bf16.vlgmr.msrb.gmra.mxu2 %v2909_v22 }
 0x535   : > { %3020 = vmatpush.bf16.xpose.msrb.mxu3 %v5154_v2 }
 0x53c   : > { %3021 = vmatmul.bf16.vlgmr.msrb.gmra.mxu3 %v2910_v12 }
 0x54d   : > { %v2944_v8 = vpop.f32.mrf.mxu1 }
 0x553   : > { %v2970_v19 = vpop.f32.mrf.mxu3 }
 0x555   : > { %v2946_v10 = vpop.f32.mrf.mxu1 }
 0x55b   : > { %v2972_v61 = vpop.f32.mrf.mxu3 }
 0x55d   : > { %v2996_v15 = vpop.f32.mrf.mxu1 }
 0x565   : > { %v2998_v60 = vpop.f32.mrf.mxu1 }
 0x56b   : > { %v2931_v51 = vpop.f32.mrf.mxu0 }
 0x56c   : > { %v2932_v21 = vadd.f32 %v2931_v51, %v2914_v54 }
 0x56e   : > { %v2945_v58 = vadd.f32 %v2944_v8, %v2932_v21 }
 0x571   : > { %v2957_v7 = vpop.f32.mrf.mxu2 }
 0x572   : > { %v2958_v2 = vadd.f32 %v2957_v7, %v2915_v26 }
 0x573   : > { %v2933_v41 = vpop.f32.mrf.mxu0 }
 0x574   : > { %v2971_v62 = vadd.f32 %v2970_v19, %v2958_v2 }
 0x576   : > { %v3030_v46 = vrot.slane %v2971_v62, 7 }
 0x578   : > { %v3034_v28 = vsel %vm3033_vm0, %v2945_v58, %v3030_v46 }
 0x579   : > { %v2959_v30 = vpop.f32.mrf.mxu2 }
 0x57b   : > { %v2983_v1 = vpop.f32.mrf.mxu0 }
 0x57c   : > { %v2984_v63 = vadd.f32 %v2983_v1, %v2916_v38 }
 0x57e   : > { %v2997_v50 = vadd.f32 %v2996_v15, %v2984_v63 }
 0x580   : > { %v3031_v48 = vrot.slane %v2997_v50, 6 }
 0x583   : > { %v2985_v32 = vpop.f32.mrf.mxu0 }
 0x5b7   : > { %v3009_v25 = vpop.f32.mrf.mxu2 }
 0x5b8   : > { %v3010_v18 = vadd.f32 %v3009_v25, %v2917_v57 }
 0x5bf   : > { %v3022_v34 = vpop.f32.mrf.mxu3  ;;  %v3011_v33 = vpop.f32.mrf.mxu2 }
 0x5c0   : > { %v3023_v9 = vadd.f32 %v3022_v34, %v3010_v18 }
 0x5c2   : > { %v3032_v14 = vrot.slane %v3023_v9, 5 }
 0x5c4   : > { %v3036_v42 = vsel %vm3035_vm1, %v3031_v48, %v3032_v14 }
 0x5c5   : > { %v3038_v39 = vsel %vm3037_vm2, %v3034_v28, %v3036_v42 }
 0x5c6   : > { %3044 = vst.msk [vmem:[%s385_s28] sm:$0xf] %vm3042_vm3, %v3038_v39 }
 0x5c7   : > { %v3024_v36 = vpop.f32.mrf.mxu3 }
 0x5c8   : > { %4108 = shalt.err (!%p4105_p9)
}
 0x5c9   : > { %3863 = dma.vmem_to_hbm [thread:$0]  (%p4295_p7), %s3059_s10, 64, %s3061_s26, %s3046_s20  }
 0x5ca PF: > { %s3072_s19 = sand.u32 1, %s4147_s24   ;;  %p5338_p12 = scmp.ge.s32.totalorder %s4159_s27, 2 }
 0x5cb   : > { %s3073_s15 = scalar_lea.sflag [#allocation4], %s3072_s19 }
 0x5cc   : > { %p3883_p13 = pnand %p5338_p12, %p4241_p6 }
 0x5ce   : > { %p3884_p0 = pneg %p3883_p13 }
 0x5d0   : > { %4142 = dma.done.wait (%p3884_p0), %s3073_s15, 64  }
 0x5d1   : > { %4144 = vsyncadd (%p3884_p0), %s3073_s15, 4294967232  ;;  %s5339_s27 = sld [smem:[#allocation18_spill]]  ;;  %s5342_s24 = smov %s4151_s25 }
 0x5d2   : > { %s5340_s30 = sld [smem:[#allocation17_spill]] }
 0x5d3   : > { %s5341_s26 = sld [smem:[#allocation19_spill]] }
 0x5d7   : > { %p24_p3 = scmp.ge.s32.totalorder %s5339_s27, 4  }
 0x5d8   : > { %s5343_s25 = smov %s5340_s30 }
 0x5d9   :  { %26 = sbr.rel (!%p24_p3) target bundleno = 12 (0xc), region = 118 }
 0x5de   :  { %3079 = vsyncpa [#allocation3], 1 }
 0x5df   :  { %3081 = vsyncpa [#allocation3 + $0x1], 1 }
 0x5e0   :  { %3082 = vsyncpa [#allocation6], 1 }
 0x5e1   :  { %3084 = vsyncpa [#allocation6 + $0x1], 1 }
 0x5e2   :  { %3085 = vsyncpa [#allocation9], 1 }
 0x5e3   :  { %3086 = vsyncpa [#allocation4], 1 }
 0x5e4   :  { %3088 = vsyncpa [#allocation4 + $0x1], 1 }

</bundles_post_ra>
